<compile_context>
chip_gen: v5e
topology: v5e:2x2
jax: 0.10.0
libtpu: 0.0.40
codegen_flags: <defaults>
</compile_context>

<pallas_src>
import jax
import jax.numpy as jnp
from jax.experimental import pallas as pl
from jax.experimental.pallas import tpu as pltpu


def _round_up(x, m):
    return (x + m - 1) // m * m


def gru_cell_kernel(x_ref, h_ref, w_ref, b_ref, uh_ref, out_ref):
    Hp = out_ref.shape[-1]          # padded hidden width (multiple of 128)
    mm_dtype = w_ref.dtype          # MXU operand dtype (f32 or bf16)

    x = x_ref[...]
    h = h_ref[...]
    h_f32 = h.astype(jnp.float32)

    # [h | x]: h slab lands on lanes [0, Hp) (plain aligned copy), x is the
    # short tail starting at an aligned 128-lane boundary -> no lane rotation.
    hx = jnp.concatenate([h.astype(mm_dtype), x.astype(mm_dtype)], axis=-1)

    # Single fused MXU matmul for all three gates:
    #   (TB, Hp+I) @ (Hp+I, 3*Hp) -> (TB, 3*Hp), columns = [z | r | n]
    # Weight rows are [Uz Ur 0 ; Wz Wr Wh]; the zero n-slab in the U rows keeps
    # the "reset applied before U_h" semantics of the reference module.
    gates = (jnp.dot(hx, w_ref[...], preferred_element_type=jnp.float32)
             + b_ref[...])

    # One EUP pass over the lane-dense (TB, 2*Hp) slab, then aligned splits.
    zr = jax.nn.sigmoid(gates[:, : 2 * Hp])
    z = zr[:, :Hp]
    r = zr[:, Hp:]

    # h_tilde = tanh(x @ Wh + bh + (r * h) @ Uh)   -- second (last) MXU dot.
    rh = (r * h_f32).astype(uh_ref.dtype)
    h_tilde = jnp.tanh(gates[:, 2 * Hp:]
                       + jnp.dot(rh, uh_ref[...],
                                 preferred_element_type=jnp.float32))

    # h_new = (1 - z) * h + z * h_tilde   (float32 blend, cast on store).
    out_ref[...] = ((1.0 - z) * h_f32 + z * h_tilde).astype(out_ref.dtype)


def _pick_block_b(B, I, Hp, act_itemsize, resident_weight_bytes,
                  vmem_limit_bytes, block_b):
    if block_b is None:
        # Rough per-row VMEM footprint: double-buffered x/h/out tiles plus the
        # float32 intermediates (hx, gates, zr, rh, h_tilde, blend).
        row_bytes = 2 * (I + 2 * Hp) * act_itemsize + (I + 10 * Hp) * 4
        budget = int(0.7 * vmem_limit_bytes) - resident_weight_bytes
        max_rows = max(32, budget // max(row_bytes, 1))
        if B <= max_rows:
            # Per-grid-step overhead (~0.35 us) dominates at small I/H, so run
            # the whole batch in one step.  For big batches use two parallel
            # steps so v7x's second TensorCore gets work (one extra, cheap
            # step on single-TC v5e/v6e).
            if B >= 1024 and B % 64 == 0:
                return B // 2
            return B
        block_b = int(max_rows)
    if block_b >= B:
        return B
    # Multiple of 32 sublane-rows: packs cleanly for f32 (8), bf16 (16) and
    # any future int8/fp8 (32) activation dtype.
    return max(32, block_b - block_b % 32)


def gru_cell(x, h, params, *, block_b=None, single_buffer_weights=False,
             vmem_limit_mb=64):
    """One GRUCell step.

    params (from pack_params):
      w_pack (Hp+I, 3*Hp): fused [[Uz Ur 0],[Wz Wr Wh]]   (matmul dtype)
      b_pack (1, 3*Hp)   : fused [bz | br | bh]           (float32)
      u_h    (Hp, Hp)    : zero-padded U_h                (matmul dtype)

    single_buffer_weights=True adds pipeline_mode=pl.Buffered(1) to the
    resident-weight specs (recommended on v7x, 64 MiB VMEM, for large H).
    vmem_limit_mb: scoped VMEM budget; 64 fits every generation, raise toward
    ~100-120 on v5e/v6e (128 MiB physical) for very large H / batch tiles.
    """
    B, I = x.shape
    H = h.shape[1]
    w_pack, b_pack, u_h = params["w_pack"], params["b_pack"], params["u_h"]
    Hp = u_h.shape[0]
    assert w_pack.shape == (Hp + I, 3 * Hp) and b_pack.shape == (1, 3 * Hp)
    assert Hp >= H and Hp % 128 == 0

    # Zero-pad the hidden state to the lane-dense width.  The padding stays
    # exactly zero through the cell, so in a recurrence the padded (B, Hp)
    # output can be fed straight back (and aliased onto h) without re-slicing.
    h_in = h if Hp == H else jnp.pad(h, ((0, 0), (0, Hp - H)))

    vmem_limit_bytes = int(vmem_limit_mb) << 20
    resident = (w_pack.size * w_pack.dtype.itemsize
                + b_pack.size * b_pack.dtype.itemsize
                + u_h.size * u_h.dtype.itemsize)
    if not single_buffer_weights:
        resident *= 2   # default pipelining double-buffers even resident blocks
    bb = _pick_block_b(B, I, Hp, jnp.dtype(x.dtype).itemsize, resident,
                       vmem_limit_bytes, block_b)
    grid = (pl.cdiv(B, bb),)

    wkw = dict(pipeline_mode=pl.Buffered(1)) if single_buffer_weights else {}

    out_padded = pl.pallas_call(
        gru_cell_kernel,
        out_shape=jax.ShapeDtypeStruct((B, Hp), h.dtype),
        grid_spec=pltpu.PrefetchScalarGridSpec(
            num_scalar_prefetch=0,
            grid=grid,
            in_specs=[
                pl.BlockSpec((bb, I), lambda i: (i, 0)),              # x tile
                pl.BlockSpec((bb, Hp), lambda i: (i, 0)),             # h tile
                pl.BlockSpec((Hp + I, 3 * Hp), lambda i: (0, 0), **wkw),  # fused [U;W]
                pl.BlockSpec((1, 3 * Hp), lambda i: (0, 0), **wkw),       # fused bias
                pl.BlockSpec((Hp, Hp), lambda i: (0, 0), **wkw),          # U_h
            ],
            out_specs=pl.BlockSpec((bb, Hp), lambda i: (i, 0)),
        ),
        compiler_params=pltpu.CompilerParams(
            dimension_semantics=("parallel",),
            vmem_limit_bytes=vmem_limit_bytes,
        ),
    )(x, h_in, w_pack, b_pack, u_h)

    # TODO(synk): for sequence use, keep h padded across timesteps (or move the
    # time loop into the kernel with weights resident) instead of re-slicing.
    return out_padded if Hp == H else out_padded[:, :H]


def pack_params(raw, dtype=jnp.float32):
    """Fuse per-gate weights into the padded, MXU-friendly layout.

    raw: dict of (in, out)-layout arrays
      wz, wr, wh : (I, H)    bz, br, bh : (1, H)    uz, ur, uh : (H, H)
    Matmul operands may be cast to bf16; biases stay float32 (they are only
    used in the f32 elementwise tail).
    """
    I, H = raw["wz"].shape
    Hp = _round_up(H, 128)

    def pad_gate(m):   # lane-pad one gate slab H -> Hp with zeros
        return jnp.pad(m.astype(jnp.float32), ((0, 0), (0, Hp - m.shape[1])))

    # W rows: (I, 3*Hp) = [Wz | Wr | Wh].
    w_rows = jnp.concatenate(
        [pad_gate(raw["wz"]), pad_gate(raw["wr"]), pad_gate(raw["wh"])], axis=1)
    # U rows: (Hp, 3*Hp) = [Uz | Ur | 0].  The n-gate slab MUST stay all-zero:
    # the reference module applies the reset gate before the U_h matmul.
    u_rows = jnp.zeros((Hp, 3 * Hp), jnp.float32)
    u_rows = u_rows.at[:H, 0 * Hp:0 * Hp + H].set(raw["uz"].astype(jnp.float32))
    u_rows = u_rows.at[:H, 1 * Hp:1 * Hp + H].set(raw["ur"].astype(jnp.float32))

    # Row order [U ; W] matches the in-kernel [h | x] concat.
    w_pack = jnp.concatenate([u_rows, w_rows], axis=0).astype(dtype)

    b_pack = jnp.concatenate(
        [pad_gate(raw["bz"]), pad_gate(raw["br"]), pad_gate(raw["bh"])], axis=1)

    u_h = jnp.zeros((Hp, Hp), jnp.float32)
    u_h = u_h.at[:H, :H].set(raw["uh"].astype(jnp.float32)).astype(dtype)

    return {"w_pack": w_pack, "b_pack": b_pack, "u_h": u_h}


def init_raw_params(key, input_size, hidden_size):
    """nn.Linear-style uniform(-1/sqrt(fan_in), +) init, (in, out) layout."""
    I, H = input_size, hidden_size
    ks = jax.random.split(key, 9)

    def lin(k, fan_in, shape):
        bound = 1.0 / jnp.sqrt(jnp.float32(fan_in))
        return jax.random.uniform(k, shape, jnp.float32, -bound, bound)

    return {
        "wz": lin(ks[0], I, (I, H)), "bz": lin(ks[1], I, (1, H)),
        "wr": lin(ks[2], I, (I, H)), "br": lin(ks[3], I, (1, H)),
        "wh": lin(ks[4], I, (I, H)), "bh": lin(ks[5], I, (1, H)),
        "uz": lin(ks[6], H, (H, H)),
        "ur": lin(ks[7], H, (H, H)),
        "uh": lin(ks[8], H, (H, H)),
    }


def gru_cell_ref(x, h, raw):
    """Pure-JAX float32 reference matching the PyTorch forward exactly."""
    f32 = lambda a: a.astype(jnp.float32)
    dot = lambda a, b: jnp.dot(a, f32(b), precision=jax.lax.Precision.HIGHEST)
    x, h = f32(x), f32(h)
    z = jax.nn.sigmoid(dot(x, raw["wz"]) + f32(raw["bz"]) + dot(h, raw["uz"]))
    r = jax.nn.sigmoid(dot(x, raw["wr"]) + f32(raw["br"]) + dot(h, raw["ur"]))
    h_tilde = jnp.tanh(dot(x, raw["wh"]) + f32(raw["bh"]) + dot(r * h, raw["uh"]))
    return (1.0 - z) * h + z * h_tilde


if __name__ == "__main__":
    B, INPUT_SIZE, HIDDEN_SIZE = 256, 16, 32

    key = jax.random.PRNGKey(0)
    k_x, k_h, k_p = jax.random.split(key, 3)
    x = jax.random.normal(k_x, (B, INPUT_SIZE), jnp.float32)
    h = jax.random.normal(k_h, (B, HIDDEN_SIZE), jnp.float32)

    raw = init_raw_params(k_p, INPUT_SIZE, HIDDEN_SIZE)

    # --- float32 path (checked against the unfused, per-gate reference) ---
    params_f32 = pack_params(raw, dtype=jnp.float32)
    out_f32 = gru_cell(x, h, params_f32)
    jax.block_until_ready(out_f32)
    ref_f32 = gru_cell_ref(x, h, raw)
    assert out_f32.shape == (B, HIDDEN_SIZE)
    assert jnp.allclose(out_f32, ref_f32, atol=1e-4, rtol=1e-4), "f32 mismatch"

    # --- bf16 MXU-operand path (f32 accumulation / gate math, bf16 store) ---
    params_bf16 = pack_params(raw, dtype=jnp.bfloat16)
    x_bf, h_bf = x.astype(jnp.bfloat16), h.astype(jnp.bfloat16)
    out_bf16 = gru_cell(x_bf, h_bf, params_bf16)
    jax.block_until_ready(out_bf16)
    assert out_bf16.dtype == jnp.bfloat16
    raw_bf = {k: v.astype(jnp.bfloat16) for k, v in raw.items()}
    ref_bf16 = gru_cell_ref(x_bf, h_bf, raw_bf)
    assert jnp.allclose(out_bf16.astype(jnp.float32), ref_bf16,
                        atol=5e-2, rtol=5e-2), "bf16 mismatch"

    # --- also exercise the batch-tiled (multi-grid-step) path ---
    out_tiled = gru_cell(x, h, params_f32, block_b=64)
    jax.block_until_ready(out_tiled)
    assert jnp.allclose(out_tiled, ref_f32, atol=1e-4, rtol=1e-4), "tiled mismatch"

    print("KERNEL_OK")
</pallas_src>

<mosaic_0001>
module attributes {stable_mosaic.version = 11 : i64} {
  func.func @gru_cell_kernel(%arg0: i32, %arg1: memref<256x16xf32, #tpu.memory_space<vmem>>, %arg2: memref<256x128xf32, #tpu.memory_space<vmem>>, %arg3: memref<144x384xf32, #tpu.memory_space<vmem>>, %arg4: memref<1x384xf32, #tpu.memory_space<vmem>>, %arg5: memref<128x128xf32, #tpu.memory_space<vmem>>, %arg6: memref<256x128xf32, #tpu.memory_space<vmem>>) attributes {dimension_semantics = [#tpu.dimension_semantics<parallel>], iteration_bounds = array<i64: 1>, scalar_prefetch = 0 : i64, scratch_operands = 0 : i64, tpu.core_type = #tpu.core_type<tc>, window_params = [{transform_indices = @transform_0, window_bounds = array<i64: 256, 16>}, {transform_indices = @transform_1, window_bounds = array<i64: 256, 128>}, {pipeline_mode = #tpu.pipeline_mode<synchronous>, transform_indices = @transform_2, window_bounds = array<i64: 144, 384>}, {pipeline_mode = #tpu.pipeline_mode<synchronous>, transform_indices = @transform_3, window_bounds = array<i64: 1, 384>}, {pipeline_mode = #tpu.pipeline_mode<synchronous>, transform_indices = @transform_4, window_bounds = array<i64: 128, 128>}, {transform_indices = @transform_5, window_bounds = array<i64: 256, 128>}]} {
    %c0 = arith.constant 0 : index
    %c0_0 = arith.constant 0 : index
    %0 = vector.load %arg1[%c0, %c0_0] : memref<256x16xf32, #tpu.memory_space<vmem>>, vector<256x16xf32>
    %c0_1 = arith.constant 0 : index
    %c0_2 = arith.constant 0 : index
    %1 = vector.load %arg2[%c0_1, %c0_2] : memref<256x128xf32, #tpu.memory_space<vmem>>, vector<256x128xf32>
    %2 = tpu.concatenate %1, %0 in 1 : vector<256x128xf32>, vector<256x16xf32> -> vector<256x144xf32>
    %c0_3 = arith.constant 0 : index
    %c0_4 = arith.constant 0 : index
    %3 = vector.load %arg3[%c0_3, %c0_4] : memref<144x384xf32, #tpu.memory_space<vmem>>, vector<144x384xf32>
    %cst = arith.constant dense<0.000000e+00> : vector<256x384xf32>
    %4 = tpu.matmul %2, %3, %cst {dimension_numbers = #tpu.dot_dimension_numbers<[1], [0], [0], [1], [0, 0, 1, 1], [], []>} : vector<256x144xf32>, vector<144x384xf32>, vector<256x384xf32> -> vector<256x384xf32>
    %c0_5 = arith.constant 0 : index
    %c0_6 = arith.constant 0 : index
    %5 = vector.load %arg4[%c0_5, %c0_6] : memref<1x384xf32, #tpu.memory_space<vmem>>, vector<1x384xf32>
    %6 = vector.broadcast %5 : vector<1x384xf32> to vector<256x384xf32>
    %7 = arith.addf %4, %6 : vector<256x384xf32>
    %8 = vector.extract_strided_slice %7 {offsets = [0, 0], sizes = [256, 256], strides = [1, 1]} : vector<256x384xf32> to vector<256x256xf32>
    %9 = arith.negf %8 : vector<256x256xf32>
    %10 = math.exp %9 : vector<256x256xf32>
    %cst_7 = arith.constant 1.000000e+00 : f32
    %11 = vector.broadcast %cst_7 : f32 to vector<256x256xf32>
    %12 = arith.addf %11, %10 : vector<256x256xf32>
    %13 = arith.divf %11, %12 : vector<256x256xf32>
    %14 = vector.extract_strided_slice %13 {offsets = [0, 0], sizes = [256, 128], strides = [1, 1]} : vector<256x256xf32> to vector<256x128xf32>
    %15 = vector.extract_strided_slice %13 {offsets = [0, 128], sizes = [256, 128], strides = [1, 1]} : vector<256x256xf32> to vector<256x128xf32>
    %16 = arith.mulf %15, %1 : vector<256x128xf32>
    %17 = vector.extract_strided_slice %7 {offsets = [0, 256], sizes = [256, 128], strides = [1, 1]} : vector<256x384xf32> to vector<256x128xf32>
    %c0_8 = arith.constant 0 : index
    %c0_9 = arith.constant 0 : index
    %18 = vector.load %arg5[%c0_8, %c0_9] : memref<128x128xf32, #tpu.memory_space<vmem>>, vector<128x128xf32>
    %cst_10 = arith.constant dense<0.000000e+00> : vector<256x128xf32>
    %19 = tpu.matmul %16, %18, %cst_10 {dimension_numbers = #tpu.dot_dimension_numbers<[1], [0], [0], [1], [0, 0, 1, 1], [], []>} : vector<256x128xf32>, vector<128x128xf32>, vector<256x128xf32> -> vector<256x128xf32>
    %20 = arith.addf %17, %19 : vector<256x128xf32>
    %21 = math.tanh %20 : vector<256x128xf32>
    %cst_11 = arith.constant 1.000000e+00 : f32
    %22 = vector.broadcast %cst_11 : f32 to vector<256x128xf32>
    %23 = arith.subf %22, %14 : vector<256x128xf32>
    %24 = arith.mulf %23, %1 : vector<256x128xf32>
    %25 = arith.mulf %14, %21 : vector<256x128xf32>
    %26 = arith.addf %24, %25 : vector<256x128xf32>
    %c0_12 = arith.constant 0 : index
    %c0_13 = arith.constant 0 : index
    %27 = vector.load %arg6[%c0_12, %c0_13] : memref<256x128xf32, #tpu.memory_space<vmem>>, vector<256x128xf32>
    tpu.vector_store %arg6[%c0_12, %c0_13], %26 {strides = array<i32>} : memref<256x128xf32, #tpu.memory_space<vmem>>, vector<256x128xf32>,
    return
  }
  func.func @transform_0(%arg0: i32) -> (i32, i32) {
    %c0_i32 = arith.constant 0 : i32
    %c0_i32_0 = arith.constant 0 : i32
    return %arg0, %c0_i32 : i32, i32
  }
  func.func @transform_1(%arg0: i32) -> (i32, i32) {
    %c0_i32 = arith.constant 0 : i32
    %c0_i32_0 = arith.constant 0 : i32
    return %arg0, %c0_i32 : i32, i32
  }
  func.func @transform_2(%arg0: i32) -> (i32, i32) {
    %c0_i32 = arith.constant 0 : i32
    %c0_i32_0 = arith.constant 0 : i32
    %c0_i32_1 = arith.constant 0 : i32
    return %c0_i32, %c0_i32_0 : i32, i32
  }
  func.func @transform_3(%arg0: i32) -> (i32, i32) {
    %c0_i32 = arith.constant 0 : i32
    %c0_i32_0 = arith.constant 0 : i32
    %c0_i32_1 = arith.constant 0 : i32
    return %c0_i32, %c0_i32_0 : i32, i32
  }
  func.func @transform_4(%arg0: i32) -> (i32, i32) {
    %c0_i32 = arith.constant 0 : i32
    %c0_i32_0 = arith.constant 0 : i32
    %c0_i32_1 = arith.constant 0 : i32
    return %c0_i32, %c0_i32_0 : i32, i32
  }
  func.func @transform_5(%arg0: i32) -> (i32, i32) {
    %c0_i32 = arith.constant 0 : i32
    %c0_i32_0 = arith.constant 0 : i32
    return %arg0, %c0_i32 : i32, i32
  }
}

</mosaic_0001>

<bundles_post_ra>
// kernel: tpu_custom_call.1
= control target key start
LH: loop header
LB: loop body
LE: loop exit
PB: predicated region body
PF: predicated region fallthrough
CT: control target
= control target key end

     0   :  { %10 = vsyncpa [#allocation3], 0  ;;  %s6325_s0 = inlined_call_operand.vmem [shape: f32[256,16], index: 0, kind: input, shape index: {}]   ;;  %s6326_s1 = inlined_call_operand.vmem [shape: f32[256,128], index: 1, kind: input, shape index: {}]   ;;  %s6327_s2 = inlined_call_operand.hbm [shape: f32[144,384], index: 2, kind: input, shape index: {}]   ;;  %s6328_s3 = inlined_call_operand.vmem [shape: f32[1,384], index: 3, kind: input, shape index: {}]   ;;  %s6329_s4 = inlined_call_operand.hbm [shape: f32[128,128], index: 4, kind: input, shape index: {}]   ;;  %s6330_s5 = inlined_call_operand.hbm [shape: f32[256,128], index: 5, kind: output, shape index: {}]  }
   0x1   :  { %11 = vsyncpa [#allocation6], 0 }
   0x2   :  { %12 = vsyncpa [#allocation4], 0  ;;  %s21_s20 = sshll.u32 %s6327_s2, 4  ;;  %s3234_s21 = smov [#allocation2]   ;;  %s22_s20 = int_to_ptr.hbm [resolvable:$true] %s21_s20 }
   0x3   :  { %s23_s22 = sshll.u32 %s3234_s21, 4  ;;  %s36_s25 = sshll.u32 %s6329_s4, 4  ;;  %s24_s22 = int_to_ptr.vmem [resolvable:$true] %s23_s22  ;;  %s37_s25 = int_to_ptr.hbm [resolvable:$true] %s36_s25 }
   0x4   :  { %s3235_s26 = smov 384   ;;  %s3236_s27 = smov 24  }
   0x5   :  { %29 = dma.hbm_to_vmem [thread:$0]  %s22_s20, 6912, %s24_s22, [#allocation3], %s3235_s26, %s3235_s26, %s3236_s27  }
   0x6   :  { %s3237_s28 = smov [#allocation5]   ;;  %s3238_s30 = smov 128  }
   0x7   :  { %s38_s29 = sshll.u32 %s3237_s28, 4  ;;  %s3239_s6 = smov 8   ;;  %s39_s29 = int_to_ptr.vmem [resolvable:$true] %s38_s29 }
   0x8   :  { %44 = dma.hbm_to_vmem [thread:$0]  %s37_s25, 2048, %s39_s29, [#allocation6], %s3238_s30, %s3238_s30, %s3239_s6  }
   0x9   :  { %3228 = dma.done.wait [#allocation3], 6912  }
   0xa   :  { %3229 = vsyncadd [#allocation3], 4294960384 }
   0xb   :  { %3230 = dma.done.wait [#allocation6], 2048  }
   0xc   :  { %3231 = vsyncadd [#allocation6], 4294965248  ;;  %v162_v0 = vld [vmem:[#allocation2 + $0x168] sm:$0xff]  ;;  %v168_v1 = vld [vmem:[#allocation2 + $0x198] sm:$0xff]  ;;  %vm179_vm0 = vcmask 130048   ;;  %s3240_s24 = smov [#allocation7]  }
   0xd   :  { %v159_v2 = vld [vmem:[#allocation2 + $0x150] sm:$0xff]  ;;  %2735 = vmatpush.msra.mxu2 %v162_v0  ;;  %403 = vmatpush.msra.mxu1 %v168_v1  ;;  %v165_v3 = vld [vmem:[#allocation2 + $0x180] sm:$0xff]  ;;  %v156_v5 = vld [vmem:[#allocation2 + $0x138] sm:$0xff]  ;;  %s2559_s25 = sshll.u32 %s3240_s24, 4  ;;  %s2561_s28 = sshll.u32 %s6330_s5, 4  ;;  %s2560_s25 = int_to_ptr.vmem [resolvable:$true] %s2559_s25  ;;  %s2562_s28 = int_to_ptr.hbm [resolvable:$true] %s2561_s28 }
   0xe   :  { %v3283_v4 = vld [vmem:[%s6325_s0] sm:$0xff]  ;;  %276 = vmatpush.msra.mxu0 %v162_v0  ;;  %v150_v7 = vld [vmem:[#allocation2 + $0x108] sm:$0xff]  ;;  %v147_v8 = vld [vmem:[#allocation2 + $0xf0] sm:$0xff] }
   0xf   :  { %2736 = vmatpush.msra.mxu2 %v159_v2  ;;  %404 = vmatpush.msra.mxu1 %v165_v3  ;;  %v153_v6 = vld [vmem:[#allocation2 + $0x120] sm:$0xff]  ;;  %v3290_v9 = vld [vmem:[%s6325_s0 + $0x8] sm:$0xff]  ;;  %v144_v10 = vld [vmem:[#allocation2 + $0xd8] sm:$0xff] }
  0x10   :  { %2575 = vmatmul.msk.f32.vlgmr.msra.gmra.mxu1 %vm179_vm0, %v3283_v4  ;;  %277 = vmatpush.msra.mxu0 %v159_v2  ;;  %v141_v11 = vld [vmem:[#allocation2 + $0xc0] sm:$0xff]  ;;  %v138_v12 = vld [vmem:[#allocation2 + $0xa8] sm:$0xff]  ;;  %v135_v13 = vld [vmem:[#allocation2 + $0x90] sm:$0xff] }
  0x11   :  { %2737 = vmatpush.msra.mxu2 %v156_v5  ;;  %v3297_v14 = vld [vmem:[%s6325_s0 + $0x10] sm:$0xff]  ;;  %v132_v15 = vld [vmem:[#allocation2 + $0x78] sm:$0xff]  ;;  %v129_v16 = vld [vmem:[#allocation2 + $0x60] sm:$0xff] }
  0x12   :  { %278 = vmatpush.msra.mxu0 %v156_v5  ;;  %v126_v17 = vld [vmem:[#allocation2 + $0x48] sm:$0xff]  ;;  %v123_v18 = vld [vmem:[#allocation2 + $0x30] sm:$0xff]  ;;  %v3304_v19 = vld [vmem:[%s6325_s0 + $0x18] sm:$0xff] }
  0x13   :  { %2738 = vmatpush.msra.mxu2 %v153_v6  ;;  %v120_v20 = vld [vmem:[#allocation2 + $0x18] sm:$0xff]  ;;  %v117_v21 = vld [vmem:[#allocation2] sm:$0xff]  ;;  %v3330_v25 = vld [vmem:[%s6325_s0 + $0x28] sm:$0xff] }
  0x14   :  { %279 = vmatpush.msra.mxu0 %v153_v6  ;;  %v3311_v22 = vld [vmem:[%s6326_s1 + $0xb8] sm:$0xff]  ;;  %v3317_v23 = vld [vmem:[%s6325_s0 + $0x20] sm:$0xff]  ;;  %v3337_v26 = vld [vmem:[%s6326_s1 + $0xc8] sm:$0xff] }
  0x15   :  { %2739 = vmatpush.msra.mxu2 %v150_v7  ;;  %v3324_v24 = vld [vmem:[%s6326_s1 + $0xc0] sm:$0xff]  ;;  %v3343_v27 = vld [vmem:[%s6325_s0 + $0x30] sm:$0xff]  ;;  %v3356_v29 = vld [vmem:[%s6325_s0 + $0x38] sm:$0xff] }
  0x16   :  { %280 = vmatpush.msra.mxu0 %v150_v7  ;;  %v3350_v28 = vld [vmem:[%s6326_s1 + $0xd0] sm:$0xff]  ;;  %v3363_v30 = vld [vmem:[%s6326_s1 + $0xd8] sm:$0xff]  ;;  %v3369_v31 = vld [vmem:[%s6325_s0 + $0x40] sm:$0xff] }
  0x17   :  { %2740 = vmatpush.msra.mxu2 %v147_v8  ;;  %v3376_v32 = vld [vmem:[%s6326_s1 + $0xe0] sm:$0xff]  ;;  %v163_v33 = vld [vmem:[#allocation2 + $0x170] sm:$0xff]  ;;  %v160_v34 = vld [vmem:[#allocation2 + $0x158] sm:$0xff] }
  0x18   :  { %2576 = vmatmul.msk.f32.gmra.mxu1 %vm179_vm0, %v3290_v9  ;;  %281 = vmatpush.msra.mxu0 %v147_v8  ;;  %v3382_v35 = vld [vmem:[%s6325_s0 + $0x48] sm:$0xff]  ;;  %v157_v36 = vld [vmem:[#allocation2 + $0x140] sm:$0xff]  ;;  %v3395_v39 = vld [vmem:[%s6325_s0 + $0x50] sm:$0xff] }
  0x19   :  { %2741 = vmatpush.msra.mxu2 %v144_v10  ;;  %v3389_v37 = vld [vmem:[%s6326_s1 + $0xe8] sm:$0xff]  ;;  %v151_v40 = vld [vmem:[#allocation2 + $0x110] sm:$0xff]  ;;  %v148_v41 = vld [vmem:[#allocation2 + $0xf8] sm:$0xff] }
  0x1a   :  { %282 = vmatpush.msra.mxu0 %v144_v10  ;;  %v154_v38 = vld [vmem:[#allocation2 + $0x128] sm:$0xff]  ;;  %v3402_v42 = vld [vmem:[%s6326_s1 + $0xf0] sm:$0xff]  ;;  %v145_v43 = vld [vmem:[#allocation2 + $0xe0] sm:$0xff] }
  0x1b   :  { %2742 = vmatpush.msra.mxu2 %v141_v11  ;;  %v3408_v44 = vld [vmem:[%s6325_s0 + $0x58] sm:$0xff]  ;;  %v142_v45 = vld [vmem:[#allocation2 + $0xc8] sm:$0xff]  ;;  %v139_v47 = vld [vmem:[#allocation2 + $0xb0] sm:$0xff] }
  0x1c   :  { %283 = vmatpush.msra.mxu0 %v141_v11  ;;  %v3415_v46 = vld [vmem:[%s6326_s1 + $0xf8] sm:$0xff]  ;;  %v3421_v48 = vld [vmem:[%s6325_s0 + $0x60] sm:$0xff]  ;;  %v3428_v51 = vld [vmem:[%s6325_s0 + $0xd0] sm:$0xff] }
  0x1d   :  { %2743 = vmatpush.msra.mxu2 %v138_v12  ;;  %v136_v49 = vld [vmem:[#allocation2 + $0x98] sm:$0xff]  ;;  %v133_v50 = vld [vmem:[#allocation2 + $0x80] sm:$0xff]  ;;  %v3435_v52 = vld [vmem:[%s6325_s0 + $0x68] sm:$0xff] }
  0x1e   :  { %284 = vmatpush.msra.mxu0 %v138_v12  ;;  %v130_v53 = vld [vmem:[#allocation2 + $0x68] sm:$0xff]  ;;  %v127_v54 = vld [vmem:[#allocation2 + $0x50] sm:$0xff]  ;;  %v124_v55 = vld [vmem:[#allocation2 + $0x38] sm:$0xff] }
  0x1f   :  { %2744 = vmatpush.msra.mxu2 %v135_v13  ;;  %v3442_v56 = vld [vmem:[%s6325_s0 + $0xd8] sm:$0xff]  ;;  %v3449_v57 = vld [vmem:[%s6325_s0 + $0x70] sm:$0xff]  ;;  %v121_v58 = vld [vmem:[#allocation2 + $0x20] sm:$0xff] }
  0x20   :  { %2577 = vmatmul.msk.f32.gmra.mxu1 %vm179_vm0, %v3297_v14  ;;  %285 = vmatpush.msra.mxu0 %v135_v13  ;;  %v118_v59 = vld [vmem:[#allocation2 + $0x8] sm:$0xff]  ;;  %v3456_v60 = vld [vmem:[%s6326_s1] sm:$0xff]  ;;  %v3469_v63 = vld [vmem:[%s6325_s0 + $0x78] sm:$0xff] }
  0x21   :  { %2745 = vmatpush.msra.mxu2 %v132_v15  ;;  %v3461_v61 = vld [vmem:[%s6325_s0 + $0xe0] sm:$0xff]  ;;  %v3476_v0 = vld [vmem:[%s6326_s1 + $0x8] sm:$0xff]  ;;  %v3501_v5 = vld [vmem:[%s6325_s0 + $0xf0] sm:$0xff] }
  0x22   :  { %286 = vmatpush.msra.mxu0 %v132_v15  ;;  %v169_v62 = vld [vmem:[#allocation2 + $0x1a0] sm:$0xff]  ;;  %v3509_v6 = vld [vmem:[%s6325_s0 + $0x88] sm:$0xff]  ;;  %v3516_v7 = vld [vmem:[%s6326_s1 + $0x18] sm:$0xff] }
  0x23   :  { %2746 = vmatpush.msra.mxu2 %v129_v16  ;;  %2753 = vmatpush.msra.mxu3 %v169_v62  ;;  %v3489_v2 = vld [vmem:[%s6325_s0 + $0x80] sm:$0xff]  ;;  %v3521_v8 = vld [vmem:[%s6325_s0 + $0xf8] sm:$0xff]  ;;  %v3529_v10 = vld [vmem:[%s6325_s0 + $0x90] sm:$0xff] }
  0x24   :  { %287 = vmatpush.msra.mxu0 %v129_v16  ;;  %v3536_v11 = vld [vmem:[%s6326_s1 + $0x20] sm:$0xff]  ;;  %v3543_v12 = vld [vmem:[%s6325_s0 + $0x98] sm:$0xff]  ;;  %v3550_v13 = vld [vmem:[%s6326_s1 + $0x28] sm:$0xff] }
  0x25   :  { %2747 = vmatpush.msra.mxu2 %v126_v17  ;;  %6335 = vst [vmem:[#allocation11_spill] sm:$0xff] %v3536_v11  ;;  %v3557_v15 = vld [vmem:[%s6325_s0 + $0xa0] sm:$0xff] }
  0x26   :  { %288 = vmatpush.msra.mxu0 %v126_v17  ;;  %6336 = vst [vmem:[#allocation12_spill] sm:$0xff] %v3550_v13  ;;  %v3566_v17 = vld [vmem:[%s6326_s1 + $0x30] sm:$0xff] }
  0x27   :  { %2748 = vmatpush.msra.mxu2 %v123_v18  ;;  %6338 = vst [vmem:[#allocation14_spill] sm:$0xff] %v3566_v17 }
  0x28   :  { %2578 = vmatmul.msk.f32.gmra.mxu1 %vm179_vm0, %v3304_v19  ;;  %289 = vmatpush.msra.mxu0 %v123_v18  ;;  %v166_v18 = vld [vmem:[#allocation2 + $0x188] sm:$0xff] }
  0x29   :  { %2749 = vmatpush.msra.mxu2 %v120_v20  ;;  %2754 = vmatpush.msra.mxu3 %v166_v18 }
  0x2a   :  { %290 = vmatpush.msra.mxu0 %v120_v20  ;;  %v3573_v20 = vld [vmem:[%s6325_s0 + $0xa8] sm:$0xff]  ;;  %2613 = vmatmul.msk.f32.vlgmr.msra.gmra.mxu3 %vm179_vm0, %v3343_v27 }
  0x2b   :  { %2750 = vmatpush.msra.mxu2 %v117_v21 }
  0x2c   :  { %361 = vmatmul.f32.vlgmr.msra.gmra.mxu2 %v3311_v22  ;;  %291 = vmatpush.msra.mxu0 %v117_v21 }
  0x2d   :  { %2751 = vmatpush.msrb.mxu2 %v168_v1  ;;  %292 = vmatmul.f32.vlgmr.msra.gmra.mxu0 %v3456_v60  ;;  %v3481_v1 = vld [vmem:[%s6325_s0 + $0xe8] sm:$0xff] }
  0x2f   :  { %2752 = vmatpush.msrb.mxu2 %v165_v3  ;;  %v3496_v3 = vld [vmem:[%s6326_s1 + $0x10] sm:$0xff] }
  0x30   :  { %2579 = vmatmul.msk.f32.gmra.mxu1 %vm179_vm0, %v3317_v23 }
  0x31   :  { %502 = vmatpush.msra.mxu2 %v163_v33  ;;  %v3584_v33 = vld [vmem:[%s6326_s1 + $0x38] sm:$0xff] }
  0x32   :  { %6340 = vst [vmem:[#allocation16_spill] sm:$0xff] %v3584_v33  ;;  %2614 = vmatmul.msk.f32.gmra.mxu3 %vm179_vm0, %v3356_v29 }
  0x33   :  { %503 = vmatpush.msra.mxu2 %v160_v34  ;;  %v3591_v34 = vld [vmem:[%s6325_s0 + $0xb0] sm:$0xff] }
  0x34   :  { %364 = vmatmul.f32.gmra.mxu2 %v3324_v24 }
  0x35   :  { %504 = vmatpush.msra.mxu2 %v157_v36  ;;  %295 = vmatmul.f32.gmra.mxu0 %v3476_v0 }
  0x37   :  { %505 = vmatpush.msra.mxu2 %v154_v38  ;;  %v93_v38 = vld [vmem:[%s6326_s1 + $0x40] sm:$0xff] }
  0x38   :  { %2580 = vmatmul.msk.f32.gmra.mxu1 %vm179_vm0, %v3330_v25 }
  0x39   :  { %506 = vmatpush.msra.mxu2 %v151_v40  ;;  %v3606_v40 = vld [vmem:[%s6325_s0 + $0xb8] sm:$0xff] }
  0x3a   :  { %2615 = vmatmul.msk.f32.gmra.mxu3 %vm179_vm0, %v3369_v31 }
  0x3b   :  { %507 = vmatpush.msra.mxu2 %v148_v41 }
  0x3c   :  { %367 = vmatmul.f32.gmra.mxu2 %v3337_v26 }
  0x3d   :  { %508 = vmatpush.msra.mxu2 %v145_v43  ;;  %298 = vmatmul.f32.gmra.mxu0 %v3496_v3  ;;  %v94_v43 = vld [vmem:[%s6326_s1 + $0x48] sm:$0xff] }
  0x3f   :  { %509 = vmatpush.msra.mxu2 %v142_v45  ;;  %v3619_v45 = vld [vmem:[%s6325_s0 + $0xc0] sm:$0xff] }
  0x40   :  { %2581 = vmatmul.msk.f32.gmra.mxu1 %vm179_vm0, %v3343_v27 }
  0x41   :  { %510 = vmatpush.msra.mxu2 %v139_v47 }
  0x42   :  { %2616 = vmatmul.msk.f32.gmra.mxu3 %vm179_vm0, %v3382_v35 }
  0x43   :  { %511 = vmatpush.msra.mxu2 %v136_v49 }
  0x44   :  { %370 = vmatmul.f32.gmra.mxu2 %v3350_v28 }
  0x45   :  { %512 = vmatpush.msra.mxu2 %v133_v50  ;;  %301 = vmatmul.f32.gmra.mxu0 %v3516_v7  ;;  %v95_v50 = vld [vmem:[%s6326_s1 + $0x50] sm:$0xff] }
  0x47   :  { %513 = vmatpush.msra.mxu2 %v130_v53  ;;  %v3634_v53 = vld [vmem:[%s6325_s0 + $0xc8] sm:$0xff] }
  0x48   :  { %2582 = vmatmul.msk.f32.gmra.mxu1 %vm179_vm0, %v3356_v29 }
  0x49   :  { %514 = vmatpush.msra.mxu2 %v127_v54 }
  0x4a   :  { %2617 = vmatmul.msk.f32.gmra.mxu3 %vm179_vm0, %v3395_v39 }
  0x4b   :  { %515 = vmatpush.msra.mxu2 %v124_v55 }
  0x4c   :  { %373 = vmatmul.f32.gmra.mxu2 %v3363_v30 }
  0x4d   :  { %516 = vmatpush.msra.mxu2 %v121_v58  ;;  %304 = vmatmul.f32.gmra.mxu0 %v3536_v11  ;;  %v96_v58 = vld [vmem:[%s6326_s1 + $0x58] sm:$0xff] }
  0x4f   :  { %517 = vmatpush.msra.mxu2 %v118_v59 }
  0x50   :  { %2583 = vmatmul.msk.f32.gmra.mxu1 %vm179_vm0, %v3369_v31 }
  0x52   :  { %2618 = vmatmul.msk.f32.gmra.mxu3 %vm179_vm0, %v3408_v44 }
  0x54   :  { %376 = vmatmul.f32.gmra.mxu2 %v3376_v32 }
  0x55   :  { %307 = vmatmul.f32.gmra.mxu0 %v3550_v13 }
  0x58   :  { %2584 = vmatmul.msk.f32.gmra.mxu1 %vm179_vm0, %v3382_v35 }
  0x5a   :  { %2619 = vmatmul.msk.f32.gmra.mxu3 %vm179_vm0, %v3421_v48 }
  0x5c   :  { %379 = vmatmul.f32.gmra.mxu2 %v3389_v37 }
  0x5d   :  { %310 = vmatmul.f32.gmra.mxu0 %v3566_v17 }
  0x60   :  { %2585 = vmatmul.msk.f32.gmra.mxu1 %vm179_vm0, %v3395_v39 }
  0x62   :  { %2620 = vmatmul.msk.f32.gmra.mxu3 %vm179_vm0, %v3435_v52 }
  0x64   :  { %382 = vmatmul.f32.gmra.mxu2 %v3402_v42 }
  0x65   :  { %313 = vmatmul.f32.gmra.mxu0 %v3584_v33 }
  0x68   :  { %2586 = vmatmul.msk.f32.gmra.mxu1 %vm179_vm0, %v3408_v44 }
  0x6a   :  { %2621 = vmatmul.msk.f32.gmra.mxu3 %vm179_vm0, %v3449_v57 }
  0x6c   :  { %385 = vmatmul.f32.gmra.mxu2 %v3415_v46 }
  0x6d   :  { %316 = vmatmul.f32.gmra.mxu0 %v93_v38 }
  0x70   :  { %2587 = vmatmul.msk.f32.gmra.mxu1 %vm179_vm0, %v3421_v48 }
  0x72   :  { %2622 = vmatmul.msk.f32.gmra.mxu3 %vm179_vm0, %v3469_v63 }
  0x74   :  { %2601 = vmatmul.msk.f32.vlgmr.msrb.gmra.mxu2 %vm179_vm0, %v3428_v51 }
  0x75   :  { %629 = vmatpush.msrb.mxu2 %v169_v62  ;;  %319 = vmatmul.f32.gmra.mxu0 %v94_v43  ;;  %v97_v62 = vld [vmem:[%s6326_s1 + $0x60] sm:$0xff] }
  0x77   :  { %630 = vmatpush.msrb.mxu2 %v166_v18 }
  0x78   :  { %2588 = vmatmul.msk.f32.gmra.mxu1 %vm179_vm0, %v3435_v52 }
  0x7a   :  { %2623 = vmatmul.msk.f32.gmra.mxu3 %vm179_vm0, %v3489_v2 }
  0x7c   :  { %2602 = vmatmul.msk.f32.gmra.mxu2 %vm179_vm0, %v3442_v56 }
  0x7d   :  { %322 = vmatmul.f32.gmra.mxu0 %v95_v50 }
  0x80   :  { %2589 = vmatmul.msk.f32.gmra.mxu1 %vm179_vm0, %v3449_v57 }
  0x82   :  { %2624 = vmatmul.msk.f32.gmra.mxu3 %vm179_vm0, %v3509_v6 }
  0x84   :  { %2603 = vmatmul.msk.f32.gmra.mxu2 %vm179_vm0, %v3461_v61 }
  0x85   :  { %325 = vmatmul.f32.gmra.mxu0 %v96_v58 }
  0x88   :  { %2590 = vmatmul.msk.f32.gmra.mxu1 %vm179_vm0, %v3469_v63 }
  0x8a   :  { %2625 = vmatmul.msk.f32.gmra.mxu3 %vm179_vm0, %v3529_v10 }
  0x8c   :  { %2604 = vmatmul.msk.f32.gmra.mxu2 %vm179_vm0, %v3481_v1 }
  0x8d   :  { %v3621_v47 = vpop.f32.mrf.mxu1  ;;  %328 = vmatmul.f32.gmra.mxu0 %v97_v62 }
  0x8e   :  { %6342 = vst [vmem:[#allocation18_spill] sm:$0xff] %v3621_v47 }
  0x90   :  { %2591 = vmatmul.msk.f32.gmra.mxu1 %vm179_vm0, %v3489_v2 }
  0x92   :  { %2626 = vmatmul.msk.f32.gmra.mxu3 %vm179_vm0, %v3543_v12 }
  0x94   :  { %2605 = vmatmul.msk.f32.gmra.mxu2 %vm179_vm0, %v3501_v5 }
  0x95   :  { %v3638_v55 = vpop.f32.mrf.mxu1 }
  0x96   :  { %6343 = vst [vmem:[#allocation19_spill] sm:$0xff] %v3638_v55 }
  0x98   :  { %2592 = vmatmul.msk.f32.gmra.mxu1 %vm179_vm0, %v3509_v6 }
  0x9a   :  { %2627 = vmatmul.msk.f32.gmra.mxu3 %vm179_vm0, %v3557_v15 }
  0x9c   :  { %2606 = vmatmul.msk.f32.gmra.mxu2 %vm179_vm0, %v3521_v8 }
  0xa0   :  { %2593 = vmatmul.msk.f32.gmra.mxu1 %vm179_vm0, %v3529_v10 }
  0xa2   :  { %2628 = vmatmul.msk.f32.gmra.mxu3 %vm179_vm0, %v3573_v20 }
  0xa4   :  { %518 = vmatmul.f32.vlgmr.msra.gmra.mxu2 %v3456_v60 }
  0xa8   :  { %2594 = vmatmul.msk.f32.gmra.mxu1 %vm179_vm0, %v3543_v12 }
  0xaa   :  { %2629 = vmatmul.msk.f32.gmra.mxu3 %vm179_vm0, %v3591_v34 }
  0xac   :  { %521 = vmatmul.f32.gmra.mxu2 %v3476_v0 }
  0xaf   :  { %v3559_v16 = vpop.f32.mrf.mxu2 }
  0xb0   :  { %6337 = vst [vmem:[#allocation13_spill] sm:$0xff] %v3559_v16  ;;  %2595 = vmatmul.msk.f32.gmra.mxu1 %vm179_vm0, %v3557_v15  ;;  %v3661_v16 = vld [vmem:[%s6328_s3] sm:$0x7] }
  0xb1   :  { %v3667_v55 = vperm.slane %v3661_v16, 0 }
  0xb2   :  { %2630 = vmatmul.msk.f32.gmra.mxu3 %vm179_vm0, %v3606_v40 }
  0xb4   :  { %524 = vmatmul.f32.gmra.mxu2 %v3496_v3 }
  0xb7   :  { %v3577_v21 = vpop.f32.mrf.mxu2 }
  0xb8   :  { %6339 = vst [vmem:[#allocation15_spill] sm:$0xff] %v3577_v21  ;;  %2596 = vmatmul.msk.f32.gmra.mxu1 %vm179_vm0, %v3573_v20 }
  0xba   :  { %2631 = vmatmul.msk.f32.gmra.mxu3 %vm179_vm0, %v3619_v45 }
  0xbc   :  { %527 = vmatmul.f32.gmra.mxu2 %v3516_v7 }
  0xbf   :  { %v3595_v36 = vpop.f32.mrf.mxu2 }
  0xc0   :  { %6341 = vst [vmem:[#allocation17_spill] sm:$0xff] %v3595_v36  ;;  %2597 = vmatmul.msk.f32.gmra.mxu1 %vm179_vm0, %v3591_v34  ;;  %v98_v36 = vld [vmem:[%s6326_s1 + $0x68] sm:$0xff]  ;;  %v650_v34 = vpop.f32.mrf.mxu3 }
  0xc1   :  { %331 = vmatmul.f32.gmra.mxu0 %v98_v36 }
  0xc2   :  { %2632 = vmatmul.msk.f32.gmra.mxu3 %vm179_vm0, %v3634_v53 }
  0xc4   :  { %530 = vmatmul.f32.gmra.mxu2 %v3536_v11 }
  0xc7   :  { %v371_v41 = vpop.f32.mrf.mxu2 }
  0xc8   :  { %2598 = vmatmul.msk.f32.gmra.mxu1 %vm179_vm0, %v3606_v40 }
  0xca   :  { %2633 = vmatmul.msk.f32.gmra.mxu3 %vm179_vm0, %v3428_v51 }
  0xcc   :  { %533 = vmatmul.f32.gmra.mxu2 %v3550_v13 }
  0xcf   :  { %v374_v49 = vpop.f32.mrf.mxu2 }
  0xd0   :  { %2599 = vmatmul.msk.f32.gmra.mxu1 %vm179_vm0, %v3619_v45  ;;  %v375_v13 = vadd.f32 %v374_v49, %v3667_v55  ;;  %v102_v49 = vld [vmem:[%s6326_s1 + $0x88] sm:$0xff] }
  0xd2   :  { %2634 = vmatmul.msk.f32.gmra.mxu3 %vm179_vm0, %v3442_v56  ;;  %v161_v56 = vld [vmem:[#allocation2 + $0x160] sm:$0xff] }
  0xd4   :  { %536 = vmatmul.f32.gmra.mxu2 %v3566_v17  ;;  %v100_v17 = vld [vmem:[%s6326_s1 + $0x78] sm:$0xff] }
  0xd7   :  { %v377_v54 = vpop.f32.mrf.mxu2 }
  0xd8   :  { %2600 = vmatmul.msk.f32.gmra.mxu1 %vm179_vm0, %v3634_v53 }
  0xda   :  { %2635 = vmatmul.msk.f32.gmra.mxu3 %vm179_vm0, %v3461_v61  ;;  %v2217_v61 = vld [vmem:[#allocation5 + $0x78] sm:$0xff] }
  0xdb   :  { %2218 = vmatpush.msrb.mxu0 %v2217_v61 }
  0xdc   :  { %539 = vmatmul.f32.gmra.mxu2 %v3584_v33 }
  0xdf   :  { %v380_v59 = vpop.f32.mrf.mxu2 }
  0xe2   :  { %2636 = vmatmul.msk.f32.gmra.mxu3 %vm179_vm0, %v3481_v1 }
  0xe4   :  { %542 = vmatmul.f32.gmra.mxu2 %v93_v38  ;;  %v99_v38 = vld [vmem:[%s6326_s1 + $0x70] sm:$0xff] }
  0xe5   :  { %334 = vmatmul.f32.gmra.mxu0 %v99_v38 }
  0xe7   :  { %v383_v18 = vpop.f32.mrf.mxu2 }
  0xea   :  { %2637 = vmatmul.msk.f32.gmra.mxu3 %vm179_vm0, %v3501_v5 }
  0xec   :  { %545 = vmatmul.f32.gmra.mxu2 %v94_v43  ;;  %v372_v43 = vadd.f32 %v371_v41, %v3667_v55  ;;  %v101_v41 = vld [vmem:[%s6326_s1 + $0x80] sm:$0xff] }
  0xed   :  { %337 = vmatmul.f32.gmra.mxu0 %v100_v17 }
  0xef   :  { %v386_v21 = vpop.f32.mrf.mxu2 }
  0xf4   :  { %548 = vmatmul.f32.gmra.mxu2 %v95_v50 }
  0xf5   :  { %340 = vmatmul.f32.gmra.mxu0 %v101_v41 }
  0xf7   :  { %v484_v47 = vpop.f32.mrf.mxu2 }
  0xf8   :  { %v3672_v33 = vadd.f32 %v484_v47, %v372_v43  ;;  %v378_v47 = vadd.f32 %v377_v54, %v3667_v55  ;;  %v103_v54 = vld [vmem:[%s6326_s1 + $0x90] sm:$0xff] }
  0xfa   :  { %6344 = vst [vmem:[#allocation20_spill] sm:$0xff] %v3672_v33 }
  0xfc   :  { %551 = vmatmul.f32.gmra.mxu2 %v96_v58 }
  0xfd   :  { %343 = vmatmul.f32.gmra.mxu0 %v102_v49 }
  0xff   :  { %v487_v50 = vpop.f32.mrf.mxu2 }
 0x100   :  { %v3680_v11 = vadd.f32 %v487_v50, %v375_v13  ;;  %v381_v13 = vadd.f32 %v380_v59, %v3667_v55  ;;  %v104_v59 = vld [vmem:[%s6326_s1 + $0x98] sm:$0xff] }
 0x102   :  { %6345 = vst [vmem:[#allocation21_spill] sm:$0xff] %v3680_v11 }
 0x104   :  { %554 = vmatmul.f32.gmra.mxu2 %v97_v62 }
 0x105   :  { %346 = vmatmul.f32.gmra.mxu0 %v103_v54 }
 0x107   :  { %v490_v58 = vpop.f32.mrf.mxu2 }
 0x108   :  { %v3688_v43 = vadd.f32 %v490_v58, %v378_v47  ;;  %v384_v47 = vadd.f32 %v383_v18, %v3667_v55  ;;  %v105_v18 = vld [vmem:[%s6326_s1 + $0xa0] sm:$0xff] }
 0x10a   :  { %6346 = vst [vmem:[#allocation22_spill] sm:$0xff] %v3688_v43  ;;  %v2209_v43 = vld [vmem:[#allocation5 + $0x38] sm:$0xff] }
 0x10c   :  { %557 = vmatmul.f32.gmra.mxu2 %v98_v36 }
 0x10d   :  { %349 = vmatmul.f32.gmra.mxu0 %v104_v59 }
 0x10f   :  { %v493_v62 = vpop.f32.mrf.mxu2 }
 0x110   :  { %v3696_v50 = vadd.f32 %v493_v62, %v381_v13  ;;  %v387_v13 = vadd.f32 %v386_v21, %v3667_v55 }
 0x112   :  { %6347 = vst [vmem:[#allocation23_spill] sm:$0xff] %v3696_v50 }
 0x114   :  { %560 = vmatmul.f32.gmra.mxu2 %v99_v38 }
 0x115   :  { %352 = vmatmul.f32.gmra.mxu0 %v105_v18 }
 0x117   :  { %v496_v36 = vpop.f32.mrf.mxu2 }
 0x118   :  { %v3704_v58 = vadd.f32 %v496_v36, %v384_v47  ;;  %v3748_v36 = vperm.slane %v3661_v16, 1 }
 0x11a   :  { %6348 = vst [vmem:[#allocation24_spill] sm:$0xff] %v3704_v58 }
 0x11c   :  { %563 = vmatmul.f32.gmra.mxu2 %v100_v17  ;;  %v106_v17 = vld [vmem:[%s6326_s1 + $0xa8] sm:$0xff] }
 0x11d   :  { %355 = vmatmul.f32.gmra.mxu0 %v106_v17 }
 0x11f   :  { %v499_v38 = vpop.f32.mrf.mxu2 }
 0x120   :  { %v3712_v62 = vadd.f32 %v499_v38, %v387_v13  ;;  %v653_v38 = vpop.f32.mrf.mxu3  ;;  %2638 = vmatmul.msk.f32.gmra.mxu3 %vm179_vm0, %v3521_v8 }
 0x122   :  { %6349 = vst [vmem:[#allocation25_spill] sm:$0xff] %v3712_v62  ;;  %v140_v62 = vld [vmem:[#allocation2 + $0xb8] sm:$0xff] }
 0x124   :  { %566 = vmatmul.f32.gmra.mxu2 %v101_v41  ;;  %v107_v41 = vld [vmem:[%s6326_s1 + $0xb0] sm:$0xff] }
 0x125   :  { %358 = vmatmul.f32.gmra.mxu0 %v107_v41 }
 0x127   :  { %v3719_v47 = vpop.f32.mrf.mxu2 }
 0x12c   :  { %569 = vmatmul.f32.gmra.mxu2 %v102_v49 }
 0x12f   :  { %v3726_v21 = vpop.f32.mrf.mxu2 }
 0x134   :  { %572 = vmatmul.f32.gmra.mxu2 %v103_v54 }
 0x137   :  { %v3733_v15 = vpop.f32.mrf.mxu2 }
 0x13c   :  { %575 = vmatmul.f32.gmra.mxu2 %v104_v59  ;;  %v170_v59 = vld [vmem:[#allocation2 + $0x1a8] sm:$0xff] }
 0x13d   :  { %855 = vmatpush.msrb.mxu3 %v170_v59  ;;  %v152_v59 = vld [vmem:[#allocation2 + $0x118] sm:$0xff] }
 0x13f   :  { %v3737_v49 = vpop.f32.mrf.mxu2 }
 0x144   :  { %578 = vmatmul.f32.gmra.mxu2 %v105_v18  ;;  %v164_v18 = vld [vmem:[#allocation2 + $0x178] sm:$0xff] }
 0x145   :  { %728 = vmatpush.msrb.mxu1 %v164_v18 }
 0x147   :  { %v3741_v20 = vpop.f32.mrf.mxu2  ;;  %729 = vmatpush.msrb.mxu1 %v161_v56 }
 0x14c   :  { %581 = vmatmul.f32.gmra.mxu2 %v106_v17 }
 0x14f   :  { %v3745_v54 = vpop.f32.mrf.mxu2 }
 0x154   :  { %584 = vmatmul.f32.gmra.mxu2 %v107_v41  ;;  %v158_v41 = vld [vmem:[#allocation2 + $0x148] sm:$0xff] }
 0x155   :  { %730 = vmatpush.msrb.mxu1 %v158_v41  ;;  %v3809_v41 = vpop.f32.mrf.mxu1 }
 0x156   :  { %6350 = vst [vmem:[#allocation26_spill] sm:$0xff] %v3809_v41 }
 0x157   :  { %v537_v40 = vpop.f32.mrf.mxu2 }
 0x158   :  { %v538_v45 = vadd.f32 %v537_v40, %v3748_v36  ;;  %v2215_v40 = vld [vmem:[#allocation5 + $0x68] sm:$0xff] }
 0x15a   :  { %v3753_v13 = vadd.f32 %v650_v34, %v538_v45  ;;  %v2216_v34 = vld [vmem:[#allocation5 + $0x70] sm:$0xff] }
 0x15b   :  { %2219 = vmatpush.msrb.mxu0 %v2216_v34  ;;  %v143_v34 = vld [vmem:[#allocation2 + $0xd0] sm:$0xff] }
 0x15c   :  { %587 = vmatmul.f32.gmra.mxu2 %v3311_v22 }
 0x15d   :  { %2220 = vmatpush.msrb.mxu0 %v2215_v40 }
 0x15f   :  { %v540_v53 = vpop.f32.mrf.mxu2 }
 0x160   :  { %v541_v16 = vadd.f32 %v540_v53, %v3748_v36  ;;  %v2214_v53 = vld [vmem:[#allocation5 + $0x60] sm:$0xff] }
 0x161   :  { %2221 = vmatpush.msrb.mxu0 %v2214_v53 }
 0x162   :  { %v3759_v17 = vadd.f32 %v653_v38, %v541_v16  ;;  %v146_v16 = vld [vmem:[#allocation2 + $0xe8] sm:$0xff] }
 0x164   :  { %590 = vmatmul.f32.gmra.mxu2 %v3324_v24 }
 0x167   :  { %v3764_v51 = vpop.f32.mrf.mxu2 }
 0x16c   :  { %593 = vmatmul.f32.gmra.mxu2 %v3337_v26 }
 0x16f   :  { %v3769_v22 = vpop.f32.mrf.mxu2 }
 0x174   :  { %596 = vmatmul.f32.gmra.mxu2 %v3350_v28  ;;  %v155_v28 = vld [vmem:[#allocation2 + $0x130] sm:$0xff] }
 0x175   :  { %731 = vmatpush.msrb.mxu1 %v155_v28  ;;  %v2212_v28 = vld [vmem:[#allocation5 + $0x50] sm:$0xff] }
 0x177   :  { %v3774_v24 = vpop.f32.mrf.mxu2  ;;  %732 = vmatpush.msrb.mxu1 %v152_v59  ;;  %v3819_v59 = vpop.f32.mrf.mxu1 }
 0x178   :  { %6351 = vst [vmem:[#allocation27_spill] sm:$0xff] %v3819_v59  ;;  %v128_v59 = vld [vmem:[#allocation2 + $0x58] sm:$0xff] }
 0x17c   :  { %599 = vmatmul.f32.gmra.mxu2 %v3363_v30  ;;  %v3787_v30 = vpop.f32.mrf.mxu3 }
 0x17f   :  { %v3779_v26 = vpop.f32.mrf.mxu2 }
 0x184   :  { %602 = vmatmul.f32.gmra.mxu2 %v3376_v32  ;;  %v3793_v32 = vpop.f32.mrf.mxu3 }
 0x187   :  { %v3782_v1 = vpop.f32.mrf.mxu2 }
 0x18c   :  { %605 = vmatmul.f32.gmra.mxu2 %v3389_v37  ;;  %v149_v37 = vld [vmem:[#allocation2 + $0x100] sm:$0xff]  ;;  %v3799_v38 = vpop.f32.mrf.mxu3 }
 0x18d   :  { %733 = vmatpush.msrb.mxu1 %v149_v37  ;;  %v2211_v37 = vld [vmem:[#allocation5 + $0x48] sm:$0xff] }
 0x18f   :  { %v3785_v5 = vpop.f32.mrf.mxu2  ;;  %734 = vmatpush.msrb.mxu1 %v146_v16 }
 0x191   :  { %735 = vmatpush.msrb.mxu1 %v143_v34 }
 0x193   :  { %736 = vmatpush.msrb.mxu1 %v140_v62  ;;  %v137_v62 = vld [vmem:[#allocation2 + $0xa0] sm:$0xff] }
 0x194   :  { %608 = vmatmul.f32.gmra.mxu2 %v3402_v42  ;;  %v2213_v42 = vld [vmem:[#allocation5 + $0x58] sm:$0xff]  ;;  %v3807_v56 = vpop.f32.mrf.mxu3 }
 0x195   :  { %2222 = vmatpush.msrb.mxu0 %v2213_v42  ;;  %v167_v42 = vld [vmem:[#allocation2 + $0x190] sm:$0xff]  ;;  %737 = vmatpush.msrb.mxu1 %v137_v62 }
 0x196   :  { %856 = vmatpush.msrb.mxu3 %v167_v42  ;;  %v2210_v42 = vld [vmem:[#allocation5 + $0x40] sm:$0xff] }
 0x197   :  { %v3790_v8 = vpop.f32.mrf.mxu2  ;;  %2223 = vmatpush.msrb.mxu0 %v2212_v28  ;;  %2639 = vmatmul.msk.f32.vlgmr.msrb.gmra.mxu3 %vm179_vm0, %v3283_v4  ;;  %v3829_v28 = vpop.f32.mrf.mxu1 }
 0x198   :  { %6352 = vst [vmem:[#allocation28_spill] sm:$0xff] %v3829_v28  ;;  %v3855_v28 = vpop.f32.mrf.mxu0 }
 0x199   :  { %2224 = vmatpush.msrb.mxu0 %v2211_v37 }
 0x19b   :  { %2225 = vmatpush.msrb.mxu0 %v2210_v42  ;;  %v134_v42 = vld [vmem:[#allocation2 + $0x88] sm:$0xff] }
 0x19c   :  { %611 = vmatmul.f32.gmra.mxu2 %v3415_v46  ;;  %v3815_v40 = vpop.f32.mrf.mxu3  ;;  %738 = vmatpush.msrb.mxu1 %v134_v42 }
 0x19d   :  { %2226 = vmatpush.msrb.mxu0 %v2209_v43 }
 0x19f   :  { %v3795_v45 = vpop.f32.mrf.mxu2  ;;  %2640 = vmatmul.msk.f32.gmra.mxu3 %vm179_vm0, %v3290_v9  ;;  %v3841_v58 = vpop.f32.mrf.mxu1 }
 0x1a0   :  { %6353 = vst [vmem:[#allocation29_spill] sm:$0xff] %v3841_v58  ;;  %v2208_v58 = vld [vmem:[#allocation5 + $0x30] sm:$0xff] }
 0x1a1   :  { %2227 = vmatpush.msrb.mxu0 %v2208_v58  ;;  %v131_v58 = vld [vmem:[#allocation2 + $0x70] sm:$0xff] }
 0x1a2   :  { %739 = vmatpush.msrb.mxu1 %v131_v58 }
 0x1a4   :  { %2607 = vmatmul.msk.f32.vlgmr.msrb.gmra.mxu2 %vm179_vm0, %v3283_v4  ;;  %v3827_v16 = vpop.f32.mrf.mxu3  ;;  %740 = vmatpush.msrb.mxu1 %v128_v59  ;;  %v125_v59 = vld [vmem:[#allocation2 + $0x40] sm:$0xff] }
 0x1a6   :  { %741 = vmatpush.msrb.mxu1 %v125_v59 }
 0x1a7   :  { %v3801_v18 = vpop.f32.mrf.mxu2  ;;  %2641 = vmatmul.msk.f32.gmra.mxu3 %vm179_vm0, %v3297_v14  ;;  %v3851_v11 = vpop.f32.mrf.mxu1 }
 0x1a8   :  { %6355 = vst [vmem:[#allocation31_spill] sm:$0xff] %v3851_v11 }
 0x1ac   :  { %2608 = vmatmul.msk.f32.gmra.mxu2 %vm179_vm0, %v3290_v9  ;;  %v3837_v37 = vpop.f32.mrf.mxu3 }
 0x1af   :  { %v3805_v46 = vpop.f32.mrf.mxu2  ;;  %2642 = vmatmul.msk.f32.gmra.mxu3 %vm179_vm0, %v3304_v19  ;;  %v3861_v43 = vpop.f32.mrf.mxu1 }
 0x1b0   :  { %6357 = vst [vmem:[#allocation33_spill] sm:$0xff] %v3861_v43 }
 0x1b4   :  { %2609 = vmatmul.msk.f32.gmra.mxu2 %vm179_vm0, %v3297_v14  ;;  %v3847_v9 = vpop.f32.mrf.mxu3 }
 0x1b7   :  { %v3813_v61 = vpop.f32.mrf.mxu2  ;;  %2643 = vmatmul.msk.f32.gmra.mxu3 %vm179_vm0, %v3317_v23 }
 0x1bc   :  { %2610 = vmatmul.msk.f32.gmra.mxu2 %vm179_vm0, %v3304_v19  ;;  %v3859_v14 = vpop.f32.mrf.mxu3  ;;  %v3867_v19 = vpop.f32.mrf.mxu0 }
 0x1bf   :  { %v3821_v53 = vpop.f32.mrf.mxu2  ;;  %2644 = vmatmul.msk.f32.gmra.mxu3 %vm179_vm0, %v3330_v25 }
 0x1c4   :  { %2611 = vmatmul.msk.f32.gmra.mxu2 %vm179_vm0, %v3317_v23  ;;  %v3869_v11 = vpop.f32.mrf.mxu3  ;;  %v3877_v23 = vpop.f32.mrf.mxu0 }
 0x1c7   :  { %v3831_v34 = vpop.f32.mrf.mxu2  ;;  %2645 = vmatmul.msk.f32.gmra.mxu3 %vm179_vm0, %v3343_v27 }
 0x1cc   :  { %2612 = vmatmul.msk.f32.gmra.mxu2 %vm179_vm0, %v3330_v25  ;;  %v3879_v43 = vpop.f32.mrf.mxu3  ;;  %v3887_v58 = vpop.f32.mrf.mxu0 }
 0x1cf   :  { %v3839_v4 = vpop.f32.mrf.mxu2  ;;  %2646 = vmatmul.msk.f32.gmra.mxu3 %vm179_vm0, %v3356_v29 }
 0x1d4   :  { %v3891_v27 = vpop.f32.mrf.mxu3  ;;  %v3899_v41 = vpop.f32.mrf.mxu0 }
 0x1d7   :  { %v3845_v50 = vpop.f32.mrf.mxu2  ;;  %2647 = vmatmul.msk.f32.gmra.mxu3 %vm179_vm0, %v3369_v31  ;;  %v2204_v31 = vld [vmem:[#allocation5 + $0x10] sm:$0xff] }
 0x1d8   :  { %6354 = vst [vmem:[#allocation30_spill] sm:$0xff] %v3845_v50  ;;  %v2207_v50 = vld [vmem:[#allocation5 + $0x28] sm:$0xff] }
 0x1d9   :  { %2228 = vmatpush.msrb.mxu0 %v2207_v50 }
 0x1dc   :  { %v3903_v29 = vpop.f32.mrf.mxu3 }
 0x1df   :  { %v3853_v33 = vpop.f32.mrf.mxu2  ;;  %2648 = vmatmul.msk.f32.gmra.mxu3 %vm179_vm0, %v3382_v35 }
 0x1e0   :  { %6356 = vst [vmem:[#allocation32_spill] sm:$0xff] %v3853_v33  ;;  %v3871_v33 = vpop.f32.mrf.mxu1 }
 0x1e1   :  { %6359 = vst [vmem:[#allocation35_spill] sm:$0xff] %v3871_v33 }
 0x1e7   :  { %v3863_v62 = vpop.f32.mrf.mxu2  ;;  %2649 = vmatmul.msk.f32.gmra.mxu3 %vm179_vm0, %v3395_v39 }
 0x1e8   :  { %6358 = vst [vmem:[#allocation34_spill] sm:$0xff] %v3863_v62  ;;  %v2206_v62 = vld [vmem:[#allocation5 + $0x20] sm:$0xff]  ;;  %v3883_v33 = vpop.f32.mrf.mxu1 }
 0x1e9   :  { %2229 = vmatpush.msrb.mxu0 %v2206_v62  ;;  %6362 = vst [vmem:[#allocation38_spill] sm:$0xff] %v3883_v33  ;;  %v2205_v62 = vld [vmem:[#allocation5 + $0x18] sm:$0xff] }
 0x1eb   :  { %2230 = vmatpush.msrb.mxu0 %v2205_v62 }
 0x1ed   :  { %2231 = vmatpush.msrb.mxu0 %v2204_v31 }
 0x1ef   :  { %v3873_v42 = vpop.f32.mrf.mxu2  ;;  %2650 = vmatmul.msk.f32.gmra.mxu3 %vm179_vm0, %v3408_v44  ;;  %v520_v44 = vadd.f32 %v3719_v47, %v3748_v36  ;;  %v523_v47 = vadd.f32 %v3726_v21, %v3748_v36  ;;  %v526_v21 = vadd.f32 %v3733_v15, %v3748_v36 }
 0x1f0   :  { %6360 = vst [vmem:[#allocation36_spill] sm:$0xff] %v3873_v42  ;;  %v3895_v42 = vpop.f32.mrf.mxu1 }
 0x1f1   :  { %6364 = vst [vmem:[#allocation40_spill] sm:$0xff] %v3895_v42  ;;  %v3911_v42 = vpop.f32.mrf.mxu0 }
 0x1f2   :  { %6368 = vst [vmem:[#allocation44_spill] sm:$0xff] %v3911_v42  ;;  %v119_v42 = vld [vmem:[#allocation2 + $0x10] sm:$0xff] }
 0x1f7   :  { %v3881_v25 = vpop.f32.mrf.mxu2  ;;  %2651 = vmatmul.msk.f32.gmra.mxu3 %vm179_vm0, %v3421_v48 }
 0x1f8   :  { %6361 = vst [vmem:[#allocation37_spill] sm:$0xff] %v3881_v25  ;;  %v3905_v33 = vpop.f32.mrf.mxu1 }
 0x1f9   :  { %6366 = vst [vmem:[#allocation42_spill] sm:$0xff] %v3905_v33  ;;  %v3921_v35 = vpop.f32.mrf.mxu0  ;;  %v122_v33 = vld [vmem:[#allocation2 + $0x28] sm:$0xff] }
 0x1fa   :  { %6371 = vst [vmem:[#allocation47_spill] sm:$0xff] %v3921_v35  ;;  %742 = vmatpush.msrb.mxu1 %v122_v33  ;;  %v2202_v33 = vld [vmem:[#allocation5] sm:$0xff] }
 0x1fc   :  { %743 = vmatpush.msrb.mxu1 %v119_v42 }
 0x1fd   :  { %744 = vmatmul.f32.vlgmr.msrb.gmra.mxu1 %v3456_v60 }
 0x1ff   :  { %v3889_v50 = vpop.f32.mrf.mxu2 }
 0x200   :  { %6363 = vst [vmem:[#allocation39_spill] sm:$0xff] %v3889_v50  ;;  %v3915_v62 = vpop.f32.mrf.mxu1 }
 0x201   :  { %6369 = vst [vmem:[#allocation45_spill] sm:$0xff] %v3915_v62  ;;  %v2203_v62 = vld [vmem:[#allocation5 + $0x8] sm:$0xff] }
 0x202   :  { %2232 = vmatpush.msrb.mxu0 %v2203_v62  ;;  %v2684_v62 = vmul.f32 -1.442695, %v3753_v13 }
 0x204   :  { %2233 = vmatpush.msrb.mxu0 %v2202_v33 }
 0x205   :  { %747 = vmatmul.f32.gmra.mxu1 %v3476_v0 }
 0x207   :  { %v3897_v25 = vpop.f32.mrf.mxu2 }
 0x208   :  { %6365 = vst [vmem:[#allocation41_spill] sm:$0xff] %v3897_v25  ;;  %v3913_v25 = vpop.f32.mrf.mxu3  ;;  %v3927_v39 = vpop.f32.mrf.mxu1  ;;  %2652 = vmatmul.msk.f32.gmra.mxu3 %vm179_vm0, %v3435_v52 }
 0x209   :  { %6374 = vst [vmem:[#allocation50_spill] sm:$0xff] %v3927_v39 }
 0x20d   :  { %750 = vmatmul.f32.gmra.mxu1 %v3496_v3 }
 0x20f   :  { %v3907_v50 = vpop.f32.mrf.mxu2 }
 0x210   :  { %6367 = vst [vmem:[#allocation43_spill] sm:$0xff] %v3907_v50  ;;  %v3923_v50 = vpop.f32.mrf.mxu3  ;;  %v3940_v42 = vpop.f32.mrf.mxu1  ;;  %2653 = vmatmul.msk.f32.gmra.mxu3 %vm179_vm0, %v3449_v57 }
 0x211   :  { %6372 = vst [vmem:[#allocation48_spill] sm:$0xff] %v3923_v50 }
 0x212   :  { %6376 = vst [vmem:[#allocation52_spill] sm:$0xff] %v3940_v42  ;;  %v2686_v42 = vmul.f32 -1.442695, %v3759_v17 }
 0x215   :  { %753 = vmatmul.f32.gmra.mxu1 %v3516_v7 }
 0x217   :  { %v3917_v59 = vpop.f32.mrf.mxu2 }
 0x218   :  { %6370 = vst [vmem:[#allocation46_spill] sm:$0xff] %v3917_v59  ;;  %v3934_v59 = vpop.f32.mrf.mxu0  ;;  %v3936_v50 = vpop.f32.mrf.mxu3  ;;  %2654 = vmatmul.msk.f32.gmra.mxu3 %vm179_vm0, %v3469_v63  ;;  %v529_v63 = vadd.f32 %v3737_v49, %v3748_v36 }
 0x219   :  { %6375 = vst [vmem:[#allocation51_spill] sm:$0xff] %v3934_v59  ;;  %v3953_v13 = vpop.f32.mrf.mxu1 }
 0x21a   :  { %6379 = vst [vmem:[#allocation55_spill] sm:$0xff] %v3953_v13 }
 0x21f   :  { %v3925_v31 = vpop.f32.mrf.mxu2 }
 0x220   :  { %6373 = vst [vmem:[#allocation49_spill] sm:$0xff] %v3925_v31  ;;  %v3946_v59 = vpop.f32.mrf.mxu0 }
 0x221   :  { %6377 = vst [vmem:[#allocation53_spill] sm:$0xff] %v3946_v59 }
 0x227   :  { %v632_v35 = vpop.f32.mrf.mxu2 }
 0x228   :  { %v633_v31 = vadd.f32 %v632_v35, %v520_v44  ;;  %v3950_v44 = vpop.f32.mrf.mxu3  ;;  %2655 = vmatmul.msk.f32.gmra.mxu3 %vm179_vm0, %v3489_v2 }
 0x229   :  { %6378 = vst [vmem:[#allocation54_spill] sm:$0xff] %v3950_v44 }
 0x22a   :  { %v2672_v48 = vmul.f32 -1.442695, %v633_v31 }
 0x22c   :  { %2762 = vpow2.f32 %v2672_v48 }
 0x22d   :  { %2764 = vpow2.f32 %v2684_v62 }
 0x22f   :  { %v635_v39 = vpop.f32.mrf.mxu2 }
 0x230   :  { %v636_v35 = vadd.f32 %v635_v39, %v523_v47  ;;  %v544_v39 = vadd.f32 %v3764_v51, %v3748_v36  ;;  %v3970_v51 = vpop.f32.mrf.mxu3  ;;  %2656 = vmatmul.msk.f32.gmra.mxu3 %vm179_vm0, %v3509_v6  ;;  %v6384_v6 = vld [vmem:[#allocation12_spill] sm:$0xff] }
 0x232   :  { %v2763_v52 = vpop.eup %2762  ;;  %v2674_v31 = vmul.f32 -1.442695, %v636_v35  ;;  %v657_v15 = vadd.f32 %v3787_v30, %v544_v39  ;;  %v547_v30 = vadd.f32 %v3769_v22, %v3748_v36 }
 0x233   :  { %v1147_v33 = vadd.f32 1.0, %v2763_v52  ;;  %v2765_v48 = vpop.eup %2764  ;;  %v3963_v52 = vpop.f32.mrf.mxu0 }
 0x234   :  { %2766 = vpow2.f32 %v2674_v31  ;;  %v3961_v35 = vadd.f32 1.0, %v2765_v48  ;;  %6380 = vst [vmem:[#allocation56_spill] sm:$0xff] %v3963_v52  ;;  %v3976_v48 = vpop.f32.mrf.mxu1  ;;  %v2688_v17 = vmul.f32 -1.442695, %v657_v15  ;;  %v660_v22 = vadd.f32 %v3793_v32, %v547_v30 }
 0x235   :  { %2768 = vrcp.f32 %v1147_v33  ;;  %6381 = vst [vmem:[#allocation57_spill] sm:$0xff] %v3976_v48  ;;  %vm1230_vm2 = vweird.f32 %v1147_v33  ;;  %v532_v32 = vadd.f32 %v3741_v20, %v3748_v36 }
 0x236   :  { %vm1410_vm9 = vweird.f32 %v3961_v35 }
 0x237   :  { %v638_v62 = vpop.f32.mrf.mxu2 }
 0x238   :  { %v639_v57 = vadd.f32 %v638_v62, %v526_v21  ;;  %v1236_v62 = vand.u32 2147483648, %v1147_v33 }
 0x23a   :  { %v2767_v47 = vpop.eup %2766  ;;  %v2676_v31 = vmul.f32 -1.442695, %v639_v57 }
 0x23b   :  { %v2769_v13 = vpop.eup %2768  ;;  %v3967_v59 = vadd.f32 1.0, %v2767_v47  ;;  %v1234_v47 = vand.u32 2147483647, %v1147_v33  ;;  %v3990_v2 = vpop.f32.mrf.mxu0 }
 0x23c   :  { %v1226_v44 = vmul.f32 %v2769_v13, %v1147_v33  ;;  %2770 = vpow2.f32 %v2676_v31  ;;  %vm1231_vm1 = vweird.f32 %v2769_v13 }
 0x23d   :  { %2772 = vrcp.f32 %v3967_v59  ;;  %vm1232_vm3 = vmor %vm1230_vm2, %vm1231_vm1  ;;  %vm1235_vm4 = vcmp.eq.f32.partialorder %v1234_v47, 8.507059e+37  ;;  %v1264_v20 = vand.u32 2147483647, %v3967_v59  ;;  %vm1260_vm6 = vweird.f32 %v3967_v59 }
 0x23e   :  { %2774 = vrcp.f32 %v3961_v35  ;;  %v1227_v21 = vsub.f32 1.0, %v1226_v44  ;;  %v550_v44 = vadd.f32 %v3774_v24, %v3748_v36  ;;  %v6382_v24 = vld [vmem:[#allocation11_spill] sm:$0xff] }
 0x23f   :  { %2776 = vpow2.f32 %v2686_v42  ;;  %v641_v39 = vpop.f32.mrf.mxu2  ;;  %756 = vmatmul.f32.gmra.mxu1 %v6382_v24  ;;  %vm1265_vm8 = vcmp.eq.f32.partialorder %v1264_v20, 8.507059e+37 }
 0x240   :  { %v642_v7 = vadd.f32 %v641_v39, %v529_v63  ;;  %v1228_v57 = vmul.f32 %v2769_v13, %v1227_v21  ;;  %2778 = vpow2.f32 %v2688_v17  ;;  %v1237_v63 = vor.u32 1.1754944e-38, %v1236_v62 }
 0x241   :  { %v663_v30 = vadd.f32 %v3799_v38, %v550_v44  ;;  %v4004_v38 = vpop.f32.mrf.mxu1  ;;  %v553_v44 = vadd.f32 %v3779_v26, %v3748_v36 }
 0x242   :  { %v2771_v49 = vpop.eup %2770  ;;  %v2678_v31 = vmul.f32 -1.442695, %v642_v7  ;;  %v1229_v48 = vadd.f32 %v2769_v13, %v1228_v57  ;;  %v2690_v57 = vmul.f32 -1.442695, %v660_v22  ;;  %6383 = vst [vmem:[#allocation11_spill] sm:$0xff] %v4004_v38 }
 0x243   :  { %v2773_v42 = vpop.eup %2772  ;;  %v3985_v15 = vadd.f32 1.0, %v2771_v49  ;;  %v3998_v49 = vpop.f32.mrf.mxu3  ;;  %2657 = vmatmul.msk.f32.gmra.mxu3 %vm179_vm0, %v3529_v10 }
 0x244   :  { %v3987_v21 = vpop.eup %2774  ;;  %v1256_v39 = vmul.f32 %v2773_v42, %v3967_v59  ;;  %2780 = vpow2.f32 %v2678_v31  ;;  %v1233_v52 = vsel %vm1232_vm3, %v2769_v13, %v1229_v48  ;;  %v1266_v13 = vand.u32 2147483648, %v3967_v59 }
 0x245   :  { %v2777_v33 = vpop.eup %2776  ;;  %2782 = vrcp.f32 %v3985_v15  ;;  %v1238_v17 = vsel %vm1235_vm4, %v1237_v63, %v1233_v52  ;;  %v1406_v48 = vmul.f32 %v3987_v21, %v3961_v35  ;;  %vm1261_vm5 = vweird.f32 %v2773_v42 }
 0x246   :  { %v2170_v62 = vmul.f32 %v1238_v17, %v3456_v60  ;;  %v1257_v7 = vsub.f32 1.0, %v1256_v39  ;;  %v2779_v63 = vpop.eup %2778  ;;  %v4006_v60 = vadd.f32 1.0, %v2777_v33  ;;  %v2692_v39 = vmul.f32 -1.442695, %v663_v30  ;;  %vm1262_vm7 = vmor %vm1260_vm6, %vm1261_vm5 }
 0x247   :  { %v644_v31 = vpop.f32.mrf.mxu2  ;;  %2784 = vpow2.f32 %v2690_v57  ;;  %v1267_v33 = vor.u32 1.1754944e-38, %v1266_v13  ;;  %759 = vmatmul.f32.gmra.mxu1 %v6384_v6  ;;  %v4018_v30 = vadd.f32 1.0, %v2779_v63  ;;  %v535_v57 = vadd.f32 %v3745_v54, %v3748_v36  ;;  %v4024_v13 = vpop.f32.mrf.mxu0 }
 0x248   :  { %v645_v47 = vadd.f32 %v644_v31, %v532_v32  ;;  %2234 = vmatmul.f32.vlgmr.msrb.gmra.mxu0 %v2170_v62  ;;  %v1258_v52 = vmul.f32 %v2773_v42, %v1257_v7  ;;  %v1407_v7 = vsub.f32 1.0, %v1406_v48  ;;  %v1296_v20 = vand.u32 2147483648, %v3985_v15 }
 0x249   :  { %v1416_v63 = vand.u32 2147483648, %v3961_v35  ;;  %vm1411_vm11 = vweird.f32 %v3987_v21  ;;  %vm1290_vm12 = vweird.f32 %v3985_v15 }
 0x24a   :  { %v2781_v22 = vpop.eup %2780  ;;  %v2680_v24 = vmul.f32 -1.442695, %v645_v47  ;;  %v1259_v17 = vadd.f32 %v2773_v42, %v1258_v52  ;;  %v666_v47 = vadd.f32 %v3807_v56, %v553_v44  ;;  %v1414_v56 = vand.u32 2147483647, %v3961_v35  ;;  %vm4084_vm2 = vmor %vm1410_vm9, %vm1411_vm11 }
 0x24b   :  { %v2783_v32 = vpop.eup %2782  ;;  %v4013_v62 = vadd.f32 1.0, %v2781_v22  ;;  %v1294_v22 = vand.u32 2147483647, %v3985_v15  ;;  %v1297_v10 = vor.u32 1.1754944e-38, %v1296_v20  ;;  %vm1470_vm11 = vweird.f32 %v4018_v30 }
 0x24c   :  { %v1286_v31 = vmul.f32 %v2783_v32, %v3985_v15  ;;  %2786 = vpow2.f32 %v2680_v24  ;;  %v1263_v26 = vsel %vm1262_vm7, %v2773_v42, %v1259_v17  ;;  %vm1291_vm10 = vweird.f32 %v2783_v32  ;;  %v4034_v24 = vpop.f32.mrf.mxu3  ;;  %2658 = vmatmul.msk.f32.gmra.mxu3 %vm179_vm0, %v3543_v12 }
 0x24d   :  { %2788 = vrcp.f32 %v4013_v62  ;;  %v1268_v59 = vsel %vm1265_vm8, %v1267_v33, %v1263_v26  ;;  %v1408_v17 = vmul.f32 %v3987_v21, %v1407_v7  ;;  %v559_v7 = vadd.f32 %v3785_v5, %v3748_v36  ;;  %vm1292_vm13 = vmor %vm1290_vm12, %vm1291_vm10 }
 0x24e   :  { %2790 = vpow2.f32 %v2692_v39  ;;  %v2171_v48 = vmul.f32 %v1268_v59, %v3476_v0  ;;  %v1287_v52 = vsub.f32 1.0, %v1286_v31  ;;  %v2785_v39 = vpop.eup %2784  ;;  %v2694_v0 = vmul.f32 -1.442695, %v666_v47  ;;  %v4045_v47 = vpop.f32.mrf.mxu1 }
 0x24f   :  { %2792 = vrcp.f32 %v4006_v60  ;;  %v647_v42 = vpop.f32.mrf.mxu2  ;;  %v556_v31 = vadd.f32 %v3782_v1, %v3748_v36  ;;  %6385 = vst [vmem:[#allocation12_spill] sm:$0xff] %v4045_v47  ;;  %vm1295_vm14 = vcmp.eq.f32.partialorder %v1294_v22, 8.507059e+37  ;;  %vm4056_vm15 = vcmp.eq.f32.partialorder %v1414_v56, 8.507059e+37 }
 0x250   :  { %v648_v44 = vadd.f32 %v647_v42, %v535_v57  ;;  %2237 = vmatmul.f32.gmra.mxu0 %v2171_v48  ;;  %v1288_v54 = vmul.f32 %v2783_v32, %v1287_v52  ;;  %2794 = vrcp.f32 %v4018_v30  ;;  %v1446_v48 = vand.u32 2147483648, %v4006_v60  ;;  %v6386_v42 = vld [vmem:[#allocation14_spill] sm:$0xff] }
 0x251   :  { %762 = vmatmul.f32.gmra.mxu1 %v6386_v42  ;;  %v1326_v42 = vand.u32 2147483648, %v4013_v62  ;;  %v1417_v47 = vor.u32 1.1754944e-38, %v1416_v63  ;;  %v672_v38 = vadd.f32 %v3827_v16, %v559_v7  ;;  %v562_v16 = vadd.f32 %v3790_v8, %v3748_v36 }
 0x252   :  { %v2787_v33 = vpop.eup %2786  ;;  %v2682_v26 = vmul.f32 -1.442695, %v648_v44  ;;  %v1289_v6 = vadd.f32 %v2783_v32, %v1288_v54  ;;  %v4062_v54 = vadd.f32 1.0, %v2785_v39  ;;  %v1444_v39 = vand.u32 2147483647, %v4006_v60 }
 0x253   :  { %v4043_v59 = vpop.eup %2788  ;;  %v4049_v57 = vadd.f32 1.0, %v2787_v33  ;;  %v1409_v33 = vadd.f32 %v3987_v21, %v1408_v17  ;;  %vm1320_vm3 = vweird.f32 %v4013_v62  ;;  %v1327_v12 = vor.u32 1.1754944e-38, %v1326_v42 }
 0x254   :  { %v2791_v52 = vpop.eup %2790  ;;  %v1316_v1 = vmul.f32 %v4043_v59, %v4013_v62  ;;  %2796 = vpow2.f32 %v2682_v26  ;;  %v1293_v15 = vsel %vm1292_vm13, %v2783_v32, %v1289_v6  ;;  %v669_v26 = vadd.f32 %v3815_v40, %v556_v31 }
 0x255   :  { %v4060_v5 = vpop.eup %2792  ;;  %2798 = vrcp.f32 %v4049_v57  ;;  %v1298_v20 = vsel %vm1295_vm14, %v1297_v10, %v1293_v15  ;;  %v4070_v56 = vadd.f32 1.0, %v2791_v52  ;;  %v4075_v10 = vpop.f32.mrf.mxu0  ;;  %vm1321_vm1 = vweird.f32 %v4043_v59 }
 0x256   :  { %2800 = vpow2.f32 %v2694_v0  ;;  %v2172_v32 = vmul.f32 %v1298_v20, %v3496_v3  ;;  %v1317_v22 = vsub.f32 1.0, %v1316_v1  ;;  %v4068_v6 = vpop.eup %2794  ;;  %v1324_v3 = vand.u32 2147483647, %v4013_v62  ;;  %vm1322_vm4 = vmor %vm1320_vm3, %vm1321_vm1 }
 0x257   :  { %v1413_v63 = vsel %vm4084_vm2, %v3987_v21, %v1409_v33  ;;  %v1436_v17 = vmul.f32 %v4060_v5, %v4006_v60  ;;  %v4095_v31 = vor.u32 1.1754944e-38, %v1446_v48  ;;  %2802 = vrcp.f32 %v4062_v54  ;;  %v4105_v21 = vpop.f32.mrf.mxu3 }
 0x258   :  { %2240 = vmatmul.f32.gmra.mxu0 %v2172_v32  ;;  %v1318_v0 = vmul.f32 %v4043_v59, %v1317_v22  ;;  %v2696_v7 = vmul.f32 -1.442695, %v669_v26  ;;  %2804 = vrcp.f32 %v4070_v56  ;;  %v1466_v48 = vmul.f32 %v4068_v6, %v4018_v30  ;;  %v6391_v26 = vld [vmem:[#allocation16_spill] sm:$0xff]  ;;  %v4117_v32 = vpop.f32.mrf.mxu1 }
 0x259   :  { %v2698_v20 = vmul.f32 -1.442695, %v672_v38  ;;  %vm1325_vm5 = vcmp.eq.f32.partialorder %v1324_v3, 8.507059e+37  ;;  %765 = vmatmul.f32.gmra.mxu1 %v6391_v26  ;;  %6392 = vst [vmem:[#allocation14_spill] sm:$0xff] %v4117_v32  ;;  %v675_v22 = vadd.f32 %v3837_v37, %v562_v16  ;;  %v565_v38 = vadd.f32 %v3795_v45, %v3748_v36 }
 0x25a   :  { %v2797_v35 = vpop.eup %2796  ;;  %v1319_v52 = vadd.f32 %v4043_v59, %v1318_v0  ;;  %v1418_v0 = vsel %vm4056_vm15, %v1417_v47, %v1413_v63  ;;  %v1356_v37 = vand.u32 2147483648, %v4049_v57  ;;  %v1437_v16 = vsub.f32 1.0, %v1436_v17 }
 0x25b   :  { %v4102_v8 = vpop.eup %2798  ;;  %v4107_v1 = vadd.f32 1.0, %v2797_v35  ;;  %v1354_v45 = vand.u32 2147483647, %v4049_v57  ;;  %v2700_v63 = vmul.f32 -1.442695, %v675_v22  ;;  %vm1440_vm7 = vweird.f32 %v4006_v60 }
 0x25c   :  { %v2801_v15 = vpop.eup %2800  ;;  %v1346_v62 = vmul.f32 %v4102_v8, %v4049_v57  ;;  %v1323_v33 = vsel %vm1322_vm4, %v4043_v59, %v1319_v52  ;;  %v3082_v59 = vld [vmem:[%s6326_s1 + $0x18] sm:$0xff]  ;;  %v1467_v52 = vsub.f32 1.0, %v1466_v48  ;;  %vm1351_vm6 = vweird.f32 %v4102_v8  ;;  %v3084_v48 = vld [vmem:[%s6325_s0 + $0xa0] sm:$0xff] }
 0x25d   :  { %2806 = vrcp.f32 %v4107_v1  ;;  %v1328_v42 = vsel %vm1325_vm5, %v1327_v12, %v1323_v33  ;;  %v4128_v35 = vadd.f32 1.0, %v2801_v15  ;;  %v4131_v12 = vpop.eup %2802  ;;  %vm1441_vm8 = vweird.f32 %v4060_v5  ;;  %2659 = vmatmul.msk.f32.gmra.mxu3 %vm179_vm0, %v3084_v48  ;;  %v4153_v33 = vpop.f32.mrf.mxu0  ;;  %v3086_v48 = vld [vmem:[%s6326_s1 + $0x20] sm:$0xff] }
 0x25e   :  { %2808 = vpow2.f32 %v2696_v7  ;;  %v2173_v3 = vmul.f32 %v3082_v59, %v1328_v42  ;;  %v1347_v40 = vsub.f32 1.0, %v1346_v62  ;;  %v4136_v44 = vpop.eup %2804  ;;  %v3083_v7 = vld [vmem:[%s6326_s1 + $0x30] sm:$0xff]  ;;  %v1474_v17 = vand.u32 2147483647, %v4018_v30  ;;  %vm4224_vm2 = vmor %vm1440_vm7, %vm1441_vm8 }
 0x25f   :  { %2810 = vpow2.f32 %v2698_v20  ;;  %v4141_v15 = vmul.f32 %v3083_v7, %v1418_v0  ;;  %v678_v20 = vadd.f32 %v3847_v9, %v565_v38  ;;  %v568_v62 = vadd.f32 %v3801_v18, %v3748_v36 }
 0x260   :  { %2243 = vmatmul.f32.gmra.mxu0 %v2173_v3  ;;  %v1348_v47 = vmul.f32 %v4102_v8, %v1347_v40  ;;  %vm1350_vm9 = vweird.f32 %v4049_v57  ;;  %v1357_v0 = vor.u32 1.1754944e-38, %v1356_v37  ;;  %v1438_v9 = vmul.f32 %v4060_v5, %v1437_v16  ;;  %v4178_v40 = vld [vmem:[%s6326_s1 + $0x40] sm:$0xff]  ;;  %v4181_v37 = vpop.f32.mrf.mxu3 }
 0x261   :  { %vm4161_vm10 = vmor %vm1350_vm9, %vm1351_vm6  ;;  %v1468_v38 = vmul.f32 %v4068_v6, %v1467_v52  ;;  %2812 = vrcp.f32 %v4128_v35  ;;  %vm1355_vm12 = vcmp.eq.f32.partialorder %v1354_v45, 8.507059e+37  ;;  %768 = vmatmul.f32.gmra.mxu1 %v4178_v40  ;;  %v1496_v52 = vmul.f32 %v4131_v12, %v4062_v54 }
 0x262   :  { %v1349_v26 = vadd.f32 %v4102_v8, %v1348_v47  ;;  %2814 = vpow2.f32 %v2700_v63  ;;  %v1526_v47 = vmul.f32 %v4136_v44, %v4070_v56  ;;  %v681_v45 = vadd.f32 %v3859_v14, %v568_v62 }
 0x263   :  { %v4157_v22 = vpop.eup %2806  ;;  %vm4193_vm13 = vcmp.eq.f32.partialorder %v1444_v39, 8.507059e+37  ;;  %v1386_v14 = vand.u32 2147483648, %v4107_v1  ;;  %v1439_v62 = vadd.f32 %v4060_v5, %v1438_v9  ;;  %v1384_v39 = vand.u32 2147483647, %v4107_v1 }
 0x264   :  { %v2809_v59 = vpop.eup %2808  ;;  %v1376_v57 = vmul.f32 %v4157_v22, %v4107_v1  ;;  %v1353_v3 = vsel %vm4161_vm10, %v4102_v8, %v1349_v26  ;;  %v2702_v8 = vmul.f32 -1.442695, %v678_v20  ;;  %v571_v20 = vadd.f32 %v3805_v46, %v3748_v36  ;;  %v3087_v46 = vld [vmem:[%s6325_s0 + $0xa8] sm:$0xff] }
 0x265   :  { %v1358_v16 = vsel %vm1355_vm12, %v1357_v0, %v1353_v3  ;;  %v2811_v7 = vpop.eup %2810  ;;  %v4197_v0 = vpop.f32.mrf.mxu1  ;;  %v4199_v3 = vadd.f32 1.0, %v2809_v59  ;;  %vm1381_vm14 = vweird.f32 %v4157_v22  ;;  %vm1471_vm15 = vweird.f32 %v4068_v6  ;;  %2660 = vmatmul.msk.f32.gmra.mxu3 %vm179_vm0, %v3087_v46 }
 0x266   :  { %v2174_v26 = vmul.f32 %v3086_v48, %v1358_v16  ;;  %v1377_v42 = vsub.f32 1.0, %v1376_v57  ;;  %6397 = vst [vmem:[#allocation16_spill] sm:$0xff] %v4197_v0  ;;  %v4209_v16 = vadd.f32 1.0, %v2811_v7  ;;  %v1469_v59 = vadd.f32 %v4068_v6, %v1468_v38  ;;  %vm4248_vm6 = vmor %vm1470_vm11, %vm1471_vm15 }
 0x267   :  { %v1497_v48 = vsub.f32 1.0, %v1496_v52  ;;  %v1527_v18 = vsub.f32 1.0, %v1526_v47  ;;  %v4216_v9 = vpop.eup %2812  ;;  %2816 = vpow2.f32 %v2702_v8  ;;  %vm1380_vm1 = vweird.f32 %v4107_v1  ;;  %v4238_v1 = vpop.f32.mrf.mxu0 }
 0x268   :  { %2246 = vmatmul.f32.gmra.mxu0 %v2174_v26  ;;  %v1378_v57 = vmul.f32 %v4157_v22, %v1377_v42  ;;  %v2704_v26 = vmul.f32 -1.442695, %v681_v45  ;;  %v2815_v52 = vpop.eup %2814  ;;  %2818 = vrcp.f32 %v4199_v3  ;;  %v684_v47 = vadd.f32 %v3869_v11, %v571_v20  ;;  %vm1382_vm3 = vmor %vm1380_vm1, %vm1381_vm14  ;;  %6402 = vst [vmem:[#allocation58_spill] sm:$0xff] %v4238_v1 }
 0x269   :  { %v1387_v7 = vor.u32 1.1754944e-38, %v1386_v14  ;;  %vm4232_vm4 = vcmp.eq.f32.partialorder %v1474_v17, 8.507059e+37  ;;  %v574_v60 = vadd.f32 %v3813_v61, %v3748_v36  ;;  %vm1385_vm5 = vcmp.eq.f32.partialorder %v1384_v39, 8.507059e+37  ;;  %v4255_v61 = vld [vmem:[%s6326_s1 + $0x48] sm:$0xff] }
 0x26a   :  { %v1379_v42 = vadd.f32 %v4157_v22, %v1378_v57  ;;  %v1443_v11 = vsel %vm4224_vm2, %v4060_v5, %v1439_v62  ;;  %771 = vmatmul.f32.gmra.mxu1 %v4255_v61  ;;  %2820 = vrcp.f32 %v4209_v16  ;;  %v1473_v5 = vsel %vm4248_vm6, %v4068_v6, %v1469_v59  ;;  %v3089_v62 = vld [vmem:[%s6326_s1 + $0x28] sm:$0xff] }
 0x26b   :  { %v1498_v20 = vmul.f32 %v4131_v12, %v1497_v48  ;;  %v4263_v14 = vadd.f32 1.0, %v2815_v52  ;;  %2822 = vpow2.f32 %v2704_v26  ;;  %v1528_v39 = vmul.f32 %v4136_v44, %v1527_v18 }
 0x26c   :  { %v1383_v45 = vsel %vm1382_vm3, %v4157_v22, %v1379_v42  ;;  %v2706_v46 = vmul.f32 -1.442695, %v684_v47  ;;  %v4269_v42 = vpop.f32.mrf.mxu3  ;;  %v1448_v38 = vsel %vm4193_vm13, %v4095_v31, %v1443_v11  ;;  %v6405_v6 = vand.u32 2147483648, %v4018_v30 }
 0x26d   :  { %v1388_v22 = vsel %vm1385_vm5, %v1387_v7, %v1383_v45  ;;  %v1556_v48 = vmul.f32 %v4216_v9, %v4128_v35  ;;  %v2817_v26 = vpop.eup %2816  ;;  %v687_v52 = vadd.f32 %v3879_v43, %v574_v60  ;;  %vm1500_vm7 = vweird.f32 %v4062_v54  ;;  %v4284_v63 = vpop.f32.mrf.mxu1  ;;  %v3090_v60 = vld [vmem:[%s6325_s0 + $0xb0] sm:$0xff] }
 0x26e   :  { %v2175_v57 = vmul.f32 %v3089_v62, %v1388_v22  ;;  %v1477_v59 = vor.u32 1.1754944e-38, %v6405_v6  ;;  %v1504_v18 = vand.u32 2147483647, %v4062_v54  ;;  %v1506_v47 = vand.u32 2147483648, %v4062_v54  ;;  %v4282_v7 = vpop.eup %2818  ;;  %6406 = vst [vmem:[#allocation59_spill] sm:$0xff] %v4284_v63  ;;  %2661 = vmatmul.msk.f32.gmra.mxu3 %vm179_vm0, %v3090_v60  ;;  %v3091_v22 = vld [vmem:[%s6326_s1 + $0x38] sm:$0xff] }
 0x26f   :  { %v1499_v31 = vadd.f32 %v4131_v12, %v1498_v20  ;;  %vm1501_vm8 = vweird.f32 %v4131_v12  ;;  %v1534_v43 = vand.u32 2147483647, %v4070_v56  ;;  %2824 = vrcp.f32 %v4263_v14 }
 0x270   :  { %2249 = vmatmul.f32.gmra.mxu0 %v2175_v57  ;;  %v1478_v30 = vsel %vm4232_vm4, %v1477_v59, %v1473_v5  ;;  %v1529_v45 = vadd.f32 %v4136_v44, %v1528_v39  ;;  %vm1531_vm9 = vweird.f32 %v4136_v44  ;;  %v1536_v8 = vand.u32 2147483648, %v4070_v56  ;;  %v4299_v11 = vpop.eup %2820  ;;  %vm4312_vm10 = vmor %vm1500_vm7, %vm1501_vm8 }
 0x271   :  { %v4301_v17 = vadd.f32 1.0, %v2817_v26  ;;  %2826 = vpow2.f32 %v2706_v46  ;;  %v4306_v5 = vmul.f32 %v3091_v22, %v1448_v38  ;;  %v1557_v20 = vsub.f32 1.0, %v1556_v48  ;;  %v2823_v62 = vpop.eup %2822  ;;  %v3092_v46 = vld [vmem:[%s6326_s1 + $0x50] sm:$0xff] }
 0x272   :  { %v2708_v57 = vmul.f32 -1.442695, %v687_v52  ;;  %vm4316_vm11 = vcmp.eq.f32.partialorder %v1504_v18, 8.507059e+37  ;;  %774 = vmatmul.f32.gmra.mxu1 %v3092_v46  ;;  %vm1530_vm12 = vweird.f32 %v4070_v56  ;;  %v1586_v38 = vmul.f32 %v4282_v7, %v4199_v3  ;;  %v4342_v18 = vpop.f32.mrf.mxu0 }
 0x273   :  { %v577_v54 = vadd.f32 %v3821_v53, %v3748_v36  ;;  %v4329_v59 = vmul.f32 %v4178_v40, %v1478_v30  ;;  %v1503_v48 = vsel %vm4312_vm10, %v4131_v12, %v1499_v31  ;;  %v1507_v26 = vor.u32 1.1754944e-38, %v1506_v47  ;;  %vm4336_vm13 = vmor %vm1530_vm12, %vm1531_vm9  ;;  %6413 = vst [vmem:[#allocation60_spill] sm:$0xff] %v4342_v18  ;;  %v3094_v40 = vld [vmem:[%s6326_s1 + $0x58] sm:$0xff] }
 0x274   :  { %v294_v56 = vadd.f32 %v3855_v28, %v3667_v55  ;;  %v1533_v53 = vsel %vm4336_vm13, %v4136_v44, %v1529_v45  ;;  %vm4347_vm14 = vcmp.eq.f32.partialorder %v1534_v43, 8.507059e+37  ;;  %v1537_v12 = vor.u32 1.1754944e-38, %v1536_v8  ;;  %v4364_v8 = vpop.f32.mrf.mxu3 }
 0x275   :  { %2828 = vrcp.f32 %v4301_v17  ;;  %v4352_v47 = vadd.f32 1.0, %v2823_v62  ;;  %v1558_v30 = vmul.f32 %v4216_v9, %v1557_v20  ;;  %v1616_v28 = vmul.f32 %v4299_v11, %v4209_v16  ;;  %v4357_v31 = vpop.eup %2824  ;;  %v6416_v62 = vld [vmem:[#allocation18_spill] sm:$0xff] }
 0x276   :  { %2830 = vpow2.f32 %v2708_v57  ;;  %v1508_v44 = vsel %vm4316_vm11, %v1507_v26, %v1503_v48  ;;  %vm1560_vm15 = vweird.f32 %v4128_v35  ;;  %v1587_v43 = vsub.f32 1.0, %v1586_v38  ;;  %v4378_v38 = vpop.f32.mrf.mxu1 }
 0x277   :  { %v2827_v60 = vpop.eup %2826  ;;  %v690_v45 = vadd.f32 %v3891_v27, %v577_v54  ;;  %vm1561_vm1 = vweird.f32 %v4216_v9  ;;  %v1564_v22 = vand.u32 2147483647, %v4128_v35  ;;  %v1566_v20 = vand.u32 2147483648, %v4128_v35  ;;  %6417 = vst [vmem:[#allocation18_spill] sm:$0xff] %v4378_v38 }
 0x278   :  { %2252 = vmatmul.f32.gmra.mxu0 %v4141_v15  ;;  %v3093_v15 = vld [vmem:[%s6325_s0 + $0xb8] sm:$0xff]  ;;  %v407_v57 = vadd.f32 %v6416_v62, %v294_v56  ;;  %v1538_v39 = vsel %vm4347_vm14, %v1537_v12, %v1533_v53  ;;  %v1594_v27 = vand.u32 2147483647, %v4199_v3  ;;  %v1596_v6 = vand.u32 2147483648, %v4199_v3  ;;  %vm4409_vm3 = vmor %vm1560_vm15, %vm1561_vm1 }
 0x279   :  { %2662 = vmatmul.msk.f32.gmra.mxu3 %vm179_vm0, %v3093_v15  ;;  %2832 = vrcp.f32 %v4352_v47  ;;  %v1559_v54 = vadd.f32 %v4216_v9, %v1558_v30  ;;  %v1617_v48 = vsub.f32 1.0, %v1616_v28  ;;  %v1646_v26 = vmul.f32 %v4357_v31, %v4263_v14 }
 0x27a   :  { %v4384_v52 = vadd.f32 1.0, %v2827_v60  ;;  %v580_v56 = vadd.f32 %v3831_v34, %v3748_v36  ;;  %v4389_v53 = vmul.f32 %v4255_v61, %v1508_v44  ;;  %777 = vmatmul.f32.gmra.mxu1 %v3094_v40  ;;  %v1588_v12 = vmul.f32 %v4282_v7, %v1587_v43 }
 0x27b   :  { %v4395_v30 = vpop.eup %2828  ;;  %v2710_v28 = vmul.f32 -1.442695, %v690_v45  ;;  %v297_v60 = vadd.f32 %v3867_v19, %v3667_v55  ;;  %vm4399_vm2 = vcmp.eq.f32.partialorder %v1564_v22, 8.507059e+37  ;;  %v1567_v34 = vor.u32 1.1754944e-38, %v1566_v20 }
 0x27c   :  { %v2831_v61 = vpop.eup %2830  ;;  %v2671_v44 = vmul.f32 -1.442695, %v407_v57  ;;  %v4403_v62 = vmul.f32 %v3092_v46, %v1538_v39  ;;  %vm1590_vm4 = vweird.f32 %v4199_v3  ;;  %vm4414_vm5 = vcmp.eq.f32.partialorder %v1594_v27, 8.507059e+37  ;;  %v4424_v57 = vpop.f32.mrf.mxu0  ;;  %v3095_v3 = vld [vmem:[%s6326_s1 + $0x60] sm:$0xff] }
 0x27d   :  { %v1563_v45 = vsel %vm4409_vm3, %v4216_v9, %v1559_v54  ;;  %v1597_v46 = vor.u32 1.1754944e-38, %v1596_v6  ;;  %v1618_v22 = vmul.f32 %v4299_v11, %v1617_v48  ;;  %v1647_v20 = vsub.f32 1.0, %v1646_v26  ;;  %6424 = vst [vmem:[#allocation61_spill] sm:$0xff] %v4424_v57  ;;  %v6425_v9 = vld [vmem:[#allocation19_spill] sm:$0xff] }
 0x27e   :  { %2834 = vrcp.f32 %v4384_v52  ;;  %v693_v35 = vadd.f32 %v3903_v29, %v580_v56  ;;  %v1589_v39 = vadd.f32 %v4282_v7, %v1588_v12  ;;  %vm1591_vm6 = vweird.f32 %v4282_v7 }
 0x27f   :  { %v4429_v27 = vpop.eup %2832  ;;  %v4431_v43 = vadd.f32 1.0, %v2831_v61  ;;  %2836 = vpow2.f32 %v2710_v28  ;;  %v410_v6 = vadd.f32 %v6425_v9, %v297_v60  ;;  %v1676_v54 = vmul.f32 %v4395_v30, %v4301_v17  ;;  %vm4442_vm7 = vmor %vm1590_vm4, %vm1591_vm6  ;;  %v4460_v61 = vpop.f32.mrf.mxu1 }
 0x280   :  { %2255 = vmatmul.f32.gmra.mxu0 %v4306_v5  ;;  %2838 = vpow2.f32 %v2671_v44  ;;  %v1568_v29 = vsel %vm4399_vm2, %v1567_v34, %v1563_v45  ;;  %v1624_v5 = vand.u32 2147483647, %v4209_v16  ;;  %v1626_v48 = vand.u32 2147483648, %v4209_v16  ;;  %6428 = vst [vmem:[#allocation19_spill] sm:$0xff] %v4460_v61 }
 0x281   :  { %v1619_v56 = vadd.f32 %v4299_v11, %v1618_v22  ;;  %vm1620_vm8 = vweird.f32 %v4209_v16  ;;  %vm1621_vm9 = vweird.f32 %v4299_v11  ;;  %v1648_v12 = vmul.f32 %v4357_v31, %v1647_v20  ;;  %v3096_v20 = vld [vmem:[%s6326_s1 + $0x68] sm:$0xff] }
 0x282   :  { %v2712_v28 = vmul.f32 -1.442695, %v693_v35  ;;  %v300_v60 = vadd.f32 %v3877_v23, %v3667_v55  ;;  %780 = vmatmul.f32.gmra.mxu1 %v3095_v3  ;;  %v1593_v15 = vsel %vm4442_vm7, %v4282_v7, %v1589_v39  ;;  %v1706_v34 = vmul.f32 %v4429_v27, %v4352_v47  ;;  %vm4469_vm10 = vmor %vm1620_vm8, %vm1621_vm9 }
 0x283   :  { %2840 = vrcp.f32 %v4431_v43  ;;  %v2673_v44 = vmul.f32 -1.442695, %v410_v6  ;;  %v4463_v45 = vmul.f32 %v3094_v40, %v1568_v29  ;;  %v1677_v23 = vsub.f32 1.0, %v1676_v54 }
 0x284   :  { %v4465_v22 = vpop.eup %2834  ;;  %vm4473_vm11 = vcmp.eq.f32.partialorder %v1624_v5, 8.507059e+37  ;;  %v1627_v35 = vor.u32 1.1754944e-38, %v1626_v48  ;;  %v1654_v39 = vand.u32 2147483647, %v4263_v14  ;;  %v1656_v9 = vand.u32 2147483648, %v4263_v14  ;;  %v6433_v48 = vld [vmem:[#allocation26_spill] sm:$0xff] }
 0x285   :  { %v2837_v40 = vpop.eup %2836  ;;  %v1598_v6 = vsel %vm4414_vm5, %v1597_v46, %v1593_v15  ;;  %v1623_v16 = vsel %vm4469_vm10, %v4299_v11, %v1619_v56  ;;  %v1649_v54 = vadd.f32 %v4357_v31, %v1648_v12  ;;  %vm1651_vm12 = vweird.f32 %v4357_v31  ;;  %v4496_v56 = vpop.f32.mrf.mxu0 }
 0x286   :  { %v2839_v29 = vpop.eup %2838  ;;  %2842 = vpow2.f32 %v2712_v28  ;;  %v583_v5 = vadd.f32 %v3839_v4, %v3748_v36  ;;  %v413_v26 = vadd.f32 %v6433_v48, %v300_v60  ;;  %v1707_v61 = vsub.f32 1.0, %v1706_v34  ;;  %6434 = vst [vmem:[#allocation26_spill] sm:$0xff] %v4496_v56 }
 0x287   :  { %2844 = vpow2.f32 %v2673_v44  ;;  %vm1650_vm13 = vweird.f32 %v4263_v14  ;;  %v1678_v19 = vmul.f32 %v4395_v30, %v1677_v23  ;;  %v1736_v11 = vmul.f32 %v4465_v22, %v4384_v52 }
 0x288   :  { %2258 = vmatmul.f32.gmra.mxu0 %v4329_v59  ;;  %v4494_v46 = vadd.f32 1.0, %v2837_v40  ;;  %v4498_v12 = vmul.f32 %v3095_v3, %v1598_v6  ;;  %vm4500_vm14 = vmor %vm1650_vm13, %vm1651_vm12  ;;  %vm4504_vm15 = vcmp.eq.f32.partialorder %v1654_v39, 8.507059e+37  ;;  %v1657_v14 = vor.u32 1.1754944e-38, %v1656_v9 }
 0x289   :  { %v4508_v28 = vpop.eup %2840  ;;  %v4510_v60 = vadd.f32 1.0, %v2839_v29  ;;  %v303_v15 = vadd.f32 %v3887_v58, %v3667_v55  ;;  %v1628_v3 = vsel %vm4473_vm11, %v1627_v35, %v1623_v16  ;;  %v1653_v34 = vsel %vm4500_vm14, %v4357_v31, %v1649_v54  ;;  %v6440_v16 = vld [vmem:[#allocation27_spill] sm:$0xff] }
 0x28a   :  { %v696_v44 = vadd.f32 %v3913_v25, %v583_v5  ;;  %v2675_v23 = vmul.f32 -1.442695, %v413_v26  ;;  %783 = vmatmul.f32.gmra.mxu1 %v3096_v20  ;;  %vm1680_vm1 = vweird.f32 %v4301_v17  ;;  %v1708_v39 = vmul.f32 %v4429_v27, %v1707_v61  ;;  %v4534_v61 = vpop.f32.mrf.mxu1 }
 0x28b   :  { %v1679_v58 = vadd.f32 %v4395_v30, %v1678_v19  ;;  %vm1681_vm2 = vweird.f32 %v4395_v30  ;;  %v1684_v7 = vand.u32 2147483647, %v4301_v17  ;;  %v1737_v35 = vsub.f32 1.0, %v1736_v11  ;;  %6439 = vst [vmem:[#allocation62_spill] sm:$0xff] %v4534_v61 }
 0x28c   :  { %v2843_v31 = vpop.eup %2842  ;;  %2846 = vrcp.f32 %v4494_v46  ;;  %v1658_v25 = vsel %vm4504_vm15, %v1657_v14, %v1653_v34  ;;  %v1686_v9 = vand.u32 2147483648, %v4301_v17  ;;  %v1766_v40 = vmul.f32 %v4508_v28, %v4431_v43  ;;  %vm4545_vm3 = vmor %vm1680_vm1, %vm1681_vm2 }
 0x28d   :  { %v2845_v6 = vpop.eup %2844  ;;  %2848 = vrcp.f32 %v4510_v60  ;;  %v416_v54 = vadd.f32 %v6440_v16, %v303_v15  ;;  %v1714_v29 = vand.u32 2147483647, %v4352_v47  ;;  %v1716_v5 = vand.u32 2147483648, %v4352_v47 }
 0x28e   :  { %v2714_v48 = vmul.f32 -1.442695, %v696_v44  ;;  %2850 = vpow2.f32 %v2675_v23  ;;  %v1709_v19 = vadd.f32 %v4429_v27, %v1708_v39  ;;  %vm1711_vm4 = vweird.f32 %v4429_v27  ;;  %v3097_v44 = vld [vmem:[%s6326_s1 + $0x70] sm:$0xff] }
 0x28f   :  { %v4551_v11 = vadd.f32 1.0, %v2843_v31  ;;  %v4553_v4 = vmul.f32 %v3096_v20, %v1628_v3  ;;  %v1738_v59 = vmul.f32 %v4465_v22, %v1737_v35  ;;  %v4559_v14 = vadd.f32 1.0, %v2845_v6  ;;  %v6453_v3 = vld [vmem:[#allocation48_spill] sm:$0xff] }
 0x290   :  { %2261 = vmatmul.f32.gmra.mxu0 %v4389_v53  ;;  %v1683_v53 = vsel %vm4545_vm3, %v4395_v30, %v1679_v58  ;;  %v1687_v17 = vor.u32 1.1754944e-38, %v1686_v9  ;;  %vm1710_vm5 = vweird.f32 %v4352_v47  ;;  %v1767_v15 = vsub.f32 1.0, %v1766_v40  ;;  %v4577_v47 = vpop.f32.mrf.mxu0  ;;  %v6448_v40 = vld [vmem:[#allocation30_spill] sm:$0xff] }
 0x291   :  { %v2677_v34 = vmul.f32 -1.442695, %v416_v54  ;;  %v4565_v23 = vmul.f32 %v3097_v44, %v1658_v25  ;;  %vm1685_vm6 = vcmp.eq.f32.partialorder %v1684_v7, 8.507059e+37  ;;  %vm4567_vm7 = vmor %vm1710_vm5, %vm1711_vm4  ;;  %vm4571_vm8 = vcmp.eq.f32.partialorder %v1714_v29, 8.507059e+37  ;;  %6447 = vst [vmem:[#allocation27_spill] sm:$0xff] %v4577_v47 }
 0x292   :  { %v4575_v20 = vpop.eup %2846  ;;  %2852 = vpow2.f32 %v2714_v48  ;;  %786 = vmatmul.f32.gmra.mxu1 %v3097_v44  ;;  %v1688_v39 = vsel %vm1685_vm6, %v1687_v17, %v1683_v53  ;;  %v1713_v58 = vsel %vm4567_vm7, %v4429_v27, %v1709_v19  ;;  %v1717_v7 = vor.u32 1.1754944e-38, %v1716_v5 }
 0x293   :  { %v4582_v35 = vpop.eup %2848  ;;  %2854 = vrcp.f32 %v4551_v11  ;;  %v306_v31 = vadd.f32 %v3899_v41, %v3667_v55  ;;  %v1739_v25 = vadd.f32 %v4465_v22, %v1738_v59  ;;  %vm1741_vm9 = vweird.f32 %v4465_v22  ;;  %v6452_v59 = vld [vmem:[#allocation28_spill] sm:$0xff] }
 0x294   :  { %v2851_v9 = vpop.eup %2850  ;;  %v586_v6 = vadd.f32 %v6448_v40, %v3748_v36  ;;  %2856 = vrcp.f32 %v4559_v14  ;;  %v1746_v27 = vand.u32 2147483648, %v4384_v52  ;;  %v1768_v16 = vmul.f32 %v4508_v28, %v1767_v15 }
 0x295   :  { %2858 = vpow2.f32 %v2677_v34  ;;  %vm1740_vm10 = vweird.f32 %v4384_v52  ;;  %v1744_v54 = vand.u32 2147483647, %v4384_v52  ;;  %v1796_v41 = vmul.f32 %v4575_v20, %v4494_v46  ;;  %v4609_v52 = vpop.f32.mrf.mxu1 }
 0x296   :  { %v1211_v29 = vmul.f32 %v4582_v35, %v4510_v60  ;;  %v1718_v5 = vsel %vm4571_vm8, %v1717_v7, %v1713_v58  ;;  %vm4603_vm11 = vmor %vm1740_vm10, %vm1741_vm9  ;;  %v1774_v26 = vand.u32 2147483647, %v4431_v43  ;;  %v1776_v19 = vand.u32 2147483648, %v4431_v43  ;;  %6451 = vst [vmem:[#allocation30_spill] sm:$0xff] %v4609_v52 }
 0x297   :  { %v4611_v53 = vadd.f32 1.0, %v2851_v9  ;;  %v419_v17 = vadd.f32 %v6452_v59, %v306_v31  ;;  %v1743_v34 = vsel %vm4603_vm11, %v4465_v22, %v1739_v25  ;;  %v699_v30 = vadd.f32 %v6453_v3, %v586_v6  ;;  %v3099_v31 = vld [vmem:[%s6326_s1 + $0x80] sm:$0xff]  ;;  %v6456_v59 = vld [vmem:[#allocation32_spill] sm:$0xff] }
 0x298   :  { %2264 = vmatmul.f32.gmra.mxu0 %v4403_v62  ;;  %v3098_v62 = vld [vmem:[%s6326_s1 + $0x78] sm:$0xff]  ;;  %v2853_v44 = vpop.eup %2852  ;;  %v1747_v58 = vor.u32 1.1754944e-38, %v1746_v27  ;;  %v1769_v7 = vadd.f32 %v4508_v28, %v1768_v16  ;;  %vm1771_vm12 = vweird.f32 %v4508_v28  ;;  %vm1745_vm13 = vcmp.eq.f32.partialorder %v1744_v54, 8.507059e+37  ;;  %v6484_v27 = vld [vmem:[#allocation37_spill] sm:$0xff] }
 0x299   :  { %v4617_v15 = vmul.f32 %v3098_v62, %v1688_v39  ;;  %v4625_v9 = vpop.eup %2854  ;;  %v4630_v39 = vmul.f32 %v3099_v31, %v1718_v5  ;;  %vm1770_vm14 = vweird.f32 %v4431_v43  ;;  %v1797_v22 = vsub.f32 1.0, %v1796_v41 }
 0x29a   :  { %v4633_v25 = vpop.eup %2856  ;;  %v1212_v40 = vsub.f32 1.0, %v1211_v29  ;;  %789 = vmatmul.f32.gmra.mxu1 %v3098_v62  ;;  %v1748_v6 = vsel %vm1745_vm13, %v1747_v58, %v1743_v34  ;;  %vm4635_vm15 = vcmp.eq.f32.partialorder %v1774_v26, 8.507059e+37  ;;  %v1777_v16 = vor.u32 1.1754944e-38, %v1776_v19  ;;  %vm4644_vm1 = vmor %vm1770_vm14, %vm1771_vm12  ;;  %v4649_v29 = vpop.f32.mrf.mxu0  ;;  %v6460_v34 = vld [vmem:[#allocation44_spill] sm:$0xff] }
 0x29b   :  { %v2859_v48 = vpop.eup %2858  ;;  %v589_v3 = vadd.f32 %v6456_v59, %v3748_v36  ;;  %2860 = vrcp.f32 %v4611_v53  ;;  %v2679_v54 = vmul.f32 -1.442695, %v419_v17  ;;  %vm1800_vm2 = vweird.f32 %v4494_v46  ;;  %6459 = vst [vmem:[#allocation28_spill] sm:$0xff] %v4649_v29 }
 0x29c   :  { %v2716_v41 = vmul.f32 -1.442695, %v699_v30  ;;  %v1773_v5 = vsel %vm4644_vm1, %v4508_v28, %v1769_v7  ;;  %v1804_v26 = vand.u32 2147483647, %v4494_v46  ;;  %v1826_v19 = vmul.f32 %v4625_v9, %v4551_v11  ;;  %v4667_v28 = vpop.f32.mrf.mxu3 }
 0x29d   :  { %v4657_v17 = vadd.f32 1.0, %v2853_v44  ;;  %v1241_v62 = vmul.f32 %v4633_v25, %v4559_v14  ;;  %v309_v58 = vadd.f32 %v6460_v34, %v3667_v55  ;;  %v1798_v30 = vmul.f32 %v4575_v20, %v1797_v22  ;;  %v4673_v44 = vld [vmem:[%s6326_s1 + $0x88] sm:$0xff]  ;;  %v3101_v22 = vld [vmem:[%s6325_s0 + $0xc0] sm:$0xff] }
 0x29e   :  { %v4664_v59 = vadd.f32 1.0, %v2859_v48  ;;  %v1213_v7 = vmul.f32 %v4582_v35, %v1212_v40  ;;  %v4676_v43 = vmul.f32 %v4673_v44, %v1748_v6  ;;  %v1806_v34 = vand.u32 2147483648, %v4494_v46  ;;  %2663 = vmatmul.msk.f32.gmra.mxu3 %vm179_vm0, %v3101_v22  ;;  %v4684_v40 = vpop.f32.mrf.mxu1 }
 0x29f   :  { %2862 = vpow2.f32 %v2679_v54  ;;  %v1778_v48 = vsel %vm4635_vm15, %v1777_v16, %v1773_v5  ;;  %vm1801_vm3 = vweird.f32 %v4575_v20  ;;  %vm1215_vm4 = vweird.f32 %v4510_v60 }
 0x2a0   :  { %2267 = vmatmul.f32.gmra.mxu0 %v4463_v45  ;;  %v702_v45 = vadd.f32 %v3936_v50, %v589_v3  ;;  %2864 = vpow2.f32 %v2716_v41  ;;  %vm1216_vm5 = vweird.f32 %v4582_v35  ;;  %v1827_v6 = vsub.f32 1.0, %v1826_v19  ;;  %v6461_v50 = vld [vmem:[#allocation29_spill] sm:$0xff]  ;;  %vm4727_vm9 = vmor %vm1800_vm2, %vm1801_vm3 }
 0x2a1   :  { %v4691_v52 = vpop.eup %2860  ;;  %2866 = vrcp.f32 %v4657_v17  ;;  %v1242_v22 = vsub.f32 1.0, %v1241_v62  ;;  %v422_v3 = vadd.f32 %v6461_v50, %v309_v58  ;;  %v1799_v54 = vadd.f32 %v4575_v20, %v1798_v30  ;;  %vm4706_vm7 = vmor %vm1215_vm4, %vm1216_vm5  ;;  %v6466_v30 = vld [vmem:[#allocation34_spill] sm:$0xff]  ;;  %v6473_v62 = vld [vmem:[#allocation36_spill] sm:$0xff] }
 0x2a2   :  { %vm4696_vm6 = vcmp.eq.f32.partialorder %v1804_v26, 8.507059e+37  ;;  %2868 = vrcp.f32 %v4664_v59  ;;  %792 = vmatmul.f32.gmra.mxu1 %v3099_v31  ;;  %v1214_v16 = vadd.f32 %v4582_v35, %v1213_v7  ;;  %v1219_v41 = vand.u32 2147483647, %v4510_v60  ;;  %v4713_v26 = vld [vmem:[%s6326_s1 + $0x90] sm:$0xff]  ;;  %v4738_v46 = vpop.f32.mrf.mxu0 }
 0x2a3   :  { %v1221_v5 = vand.u32 2147483648, %v4510_v60  ;;  %v2718_v19 = vmul.f32 -1.442695, %v702_v45  ;;  %v4716_v31 = vmul.f32 %v4713_v26, %v1778_v48  ;;  %v1807_v58 = vor.u32 1.1754944e-38, %v1806_v34  ;;  %6469 = vst [vmem:[#allocation48_spill] sm:$0xff] %v4738_v46 }
 0x2a4   :  { %vm1830_vm8 = vweird.f32 %v4551_v11  ;;  %v592_v7 = vadd.f32 %v6466_v30, %v3748_v36  ;;  %v1271_v60 = vmul.f32 %v4691_v52, %v4611_v53  ;;  %v1828_v48 = vmul.f32 %v4625_v9, %v1827_v6 }
 0x2a5   :  { %v1834_v34 = vand.u32 2147483647, %v4551_v11  ;;  %v2863_v50 = vpop.eup %2862  ;;  %v2681_v61 = vmul.f32 -1.442695, %v422_v3  ;;  %v1243_v38 = vmul.f32 %v4633_v25, %v1242_v22  ;;  %v1803_v30 = vsel %vm4727_vm9, %v4575_v20, %v1799_v54  ;;  %v6472_v54 = vld [vmem:[#allocation54_spill] sm:$0xff] }
 0x2a6   :  { %v1836_v63 = vand.u32 2147483648, %v4551_v11  ;;  %v2865_v0 = vpop.eup %2864  ;;  %v1218_v6 = vsel %vm4706_vm7, %v4582_v35, %v1214_v16  ;;  %vm4744_vm10 = vcmp.eq.f32.partialorder %v1219_v41, 8.507059e+37  ;;  %v1222_v22 = vor.u32 1.1754944e-38, %v1221_v5 }
 0x2a7   :  { %vm1831_vm11 = vweird.f32 %v4625_v9  ;;  %v4749_v3 = vpop.eup %2866  ;;  %2870 = vpow2.f32 %v2718_v19  ;;  %vm1245_vm12 = vweird.f32 %v4559_v14  ;;  %vm1246_vm13 = vweird.f32 %v4633_v25  ;;  %v4762_v19 = vpop.f32.mrf.mxu1 }
 0x2a8   :  { %2270 = vmatmul.f32.gmra.mxu0 %v4498_v12  ;;  %v1251_v12 = vand.u32 2147483648, %v4559_v14  ;;  %v4754_v20 = vpop.eup %2868  ;;  %v705_v35 = vadd.f32 %v6472_v54, %v592_v7  ;;  %v1272_v16 = vsub.f32 1.0, %v1271_v60  ;;  %v4757_v41 = vadd.f32 1.0, %v2863_v50  ;;  %vm4773_vm14 = vmor %vm1245_vm12, %vm1246_vm13 }
 0x2a9   :  { %v1829_v5 = vadd.f32 %v4625_v9, %v1828_v48  ;;  %v595_v45 = vadd.f32 %v6473_v62, %v3748_v36  ;;  %2872 = vpow2.f32 %v2681_v61  ;;  %v1244_v46 = vadd.f32 %v4633_v25, %v1243_v38  ;;  %vm4793_vm1 = vmor %vm1830_vm8, %vm1831_vm11 }
 0x2aa   :  { %v1249_v29 = vand.u32 2147483647, %v4559_v14  ;;  %v4768_v47 = vsel %vm4744_vm10, %v1222_v22, %v1218_v6  ;;  %795 = vmatmul.f32.gmra.mxu1 %v4673_v44  ;;  %v1808_v61 = vsel %vm4696_vm6, %v1807_v58, %v1803_v30  ;;  %vm4779_vm15 = vcmp.eq.f32.partialorder %v1834_v34, 8.507059e+37  ;;  %v4787_v44 = vpop.f32.mrf.mxu3 }
 0x2ab   :  { %v1837_v38 = vor.u32 1.1754944e-38, %v1836_v63  ;;  %v4783_v48 = vadd.f32 1.0, %v2865_v0  ;;  %v1301_v32 = vmul.f32 %v4754_v20, %v4664_v59  ;;  %v1252_v14 = vor.u32 1.1754944e-38, %v1251_v12  ;;  %v3103_v0 = vld [vmem:[%s6325_s0 + $0xc8] sm:$0xff]  ;;  %v6480_v12 = vld [vmem:[#allocation47_spill] sm:$0xff] }
 0x2ac   :  { %v1856_v58 = vmul.f32 %v4749_v3, %v4657_v17  ;;  %2664 = vmatmul.msk.f32.gmra.mxu3 %vm179_vm0, %v3103_v0  ;;  %v2720_v63 = vmul.f32 -1.442695, %v705_v35  ;;  %2874 = vrcp.f32 %v4757_v41  ;;  %v1273_v34 = vmul.f32 %v4691_v52, %v1272_v16 }
 0x2ad   :  { %v1833_v11 = vsel %vm4793_vm1, %v4625_v9, %v1829_v5  ;;  %v2871_v50 = vpop.eup %2870  ;;  %v708_v30 = vadd.f32 %v3970_v51, %v595_v45  ;;  %v2395_v6 = vsub.f32 1.0, %v4768_v47  ;;  %v1248_v22 = vsel %vm4773_vm14, %v4633_v25, %v1244_v46  ;;  %v4821_v51 = vld [vmem:[%s6326_s1 + $0x98] sm:$0xff]  ;;  %v4829_v46 = vpop.f32.mrf.mxu0 }
 0x2ae   :  { %vm1250_vm2 = vcmp.eq.f32.partialorder %v1249_v29, 8.507059e+37  ;;  %v312_v54 = vadd.f32 %v6480_v12, %v3667_v55  ;;  %vm1275_vm3 = vweird.f32 %v4611_v53  ;;  %vm1276_vm4 = vweird.f32 %v4691_v52  ;;  %6481 = vst [vmem:[#allocation32_spill] sm:$0xff] %v4829_v46 }
 0x2af   :  { %v4824_v9 = vmul.f32 %v4821_v51, %v1808_v61  ;;  %v2873_v35 = vpop.eup %2872  ;;  %2876 = vrcp.f32 %v4783_v48  ;;  %v1302_v25 = vsub.f32 1.0, %v1301_v32  ;;  %v1838_v29 = vsel %vm4779_vm15, %v1837_v38, %v1833_v11  ;;  %v3105_v61 = vld [vmem:[%s6326_s1] sm:$0xff]  ;;  %v4842_v60 = vpop.f32.mrf.mxu1  ;;  %vm4848_vm5 = vmor %vm1275_vm3, %vm1276_vm4 }
 0x2b0   :  { %2273 = vmatmul.f32.gmra.mxu0 %v4553_v4  ;;  %v1857_v4 = vsub.f32 1.0, %v1856_v58  ;;  %2878 = vpow2.f32 %v2720_v63  ;;  %v4831_v16 = vsel %vm1250_vm2, %v1252_v14, %v1248_v22  ;;  %v1274_v5 = vadd.f32 %v4691_v52, %v1273_v34  ;;  %v6485_v63 = vld [vmem:[#allocation31_spill] sm:$0xff]  ;;  %v4865_v11 = vld [vmem:[%s6326_s1 + $0xa0] sm:$0xff] }
 0x2b1   :  { %v1281_v62 = vand.u32 2147483648, %v4611_v53  ;;  %v4835_v45 = vadd.f32 1.0, %v2871_v50  ;;  %v2722_v7 = vmul.f32 -1.442695, %v708_v30  ;;  %v4840_v32 = vmul.f32 %v3105_v61, %v2395_v6 }
 0x2b2   :  { %vm1860_vm6 = vweird.f32 %v4657_v17  ;;  %vm1861_vm7 = vweird.f32 %v4749_v3  ;;  %v4854_v14 = vpop.eup %2874  ;;  %v598_v58 = vadd.f32 %v6484_v27, %v3748_v36  ;;  %v4858_v0 = vadd.f32 1.0, %v2873_v35  ;;  %798 = vmatmul.f32.gmra.mxu1 %v4713_v26  ;;  %v4871_v6 = vpop.f32.mrf.mxu3  ;;  %v3107_v26 = vld [vmem:[%s6325_s0 + $0xd0] sm:$0xff] }
 0x2b3   :  { %v425_v34 = vadd.f32 %v6485_v63, %v312_v54  ;;  %v4868_v50 = vmul.f32 %v4865_v11, %v1838_v29  ;;  %v2396_v30 = vsub.f32 1.0, %v4831_v16  ;;  %v1279_v22 = vand.u32 2147483647, %v4611_v53  ;;  %v6486_v35 = vld [vmem:[#allocation51_spill] sm:$0xff]  ;;  %vm4939_vm12 = vmor %vm1860_vm6, %vm1861_vm7 }
 0x2b4   :  { %v1303_v12 = vmul.f32 %v4754_v20, %v1302_v25  ;;  %v1858_v54 = vmul.f32 %v4749_v3, %v1857_v4  ;;  %2665 = vmatmul.msk.f32.gmra.mxu3 %vm179_vm0, %v3107_v26  ;;  %v315_v29 = vadd.f32 %v6486_v35, %v3667_v55  ;;  %v1278_v61 = vsel %vm4848_vm5, %v4691_v52, %v1274_v5 }
 0x2b5   :  { %v1282_v27 = vor.u32 1.1754944e-38, %v1281_v62  ;;  %v1864_v53 = vand.u32 2147483647, %v4657_v17  ;;  %v4886_v63 = vpop.eup %2876  ;;  %2880 = vpow2.f32 %v2722_v7  ;;  %v1331_v25 = vmul.f32 %v4854_v14, %v4757_v41 }
 0x2b6   :  { %vm1305_vm8 = vweird.f32 %v4664_v59  ;;  %vm1306_vm9 = vweird.f32 %v4754_v20  ;;  %v2879_v4 = vpop.eup %2878  ;;  %v711_v26 = vadd.f32 %v3998_v49, %v598_v58  ;;  %2882 = vrcp.f32 %v4858_v0  ;;  %v6489_v49 = vld [vmem:[#allocation33_spill] sm:$0xff] }
 0x2b7   :  { %v2683_v38 = vmul.f32 -1.442695, %v425_v34  ;;  %v1311_v52 = vand.u32 2147483648, %v4664_v59  ;;  %vm4896_vm10 = vcmp.eq.f32.partialorder %v1279_v22, 8.507059e+37  ;;  %v1304_v62 = vadd.f32 %v4754_v20, %v1303_v12  ;;  %vm4914_vm11 = vmor %vm1305_vm8, %vm1306_vm9 }
 0x2b8   :  { %2276 = vmatmul.f32.gmra.mxu0 %v4565_v23  ;;  %v1309_v7 = vand.u32 2147483647, %v4664_v59  ;;  %v1859_v35 = vadd.f32 %v4749_v3, %v1858_v54  ;;  %2884 = vrcp.f32 %v4835_v45  ;;  %v428_v58 = vadd.f32 %v6489_v49, %v315_v29  ;;  %v3108_v23 = vld [vmem:[%s6328_s3] sm:$0x7]  ;;  %v3109_v29 = vld [vmem:[%s6326_s1 + $0x8] sm:$0xff]  ;;  %v4928_v59 = vpop.f32.mrf.mxu0 }
 0x2b9   :  { %v4908_v34 = vperm.slane %v3108_v23, 2  ;;  %v1866_v12 = vand.u32 2147483648, %v4657_v17  ;;  %v4919_v54 = vadd.f32 1.0, %v2879_v4  ;;  %v1332_v46 = vsub.f32 1.0, %v1331_v25  ;;  %6492 = vst [vmem:[#allocation44_spill] sm:$0xff] %v4928_v59 }
 0x2ba   :  { %v4924_v49 = vmul.f32 %v3109_v29, %v2396_v30  ;;  %v1886_v23 = vmul.f32 %v4886_v63, %v4783_v48  ;;  %v2724_v56 = vmul.f32 -1.442695, %v711_v26  ;;  %2886 = vpow2.f32 %v2683_v38  ;;  %801 = vmatmul.f32.gmra.mxu1 %v4821_v51  ;;  %v4943_v26 = vpop.f32.mrf.mxu1  ;;  %v4945_v38 = vpop.f32.mrf.mxu3 }
 0x2bb   :  { %v4932_v57 = vsel %vm4896_vm10, %v1282_v27, %v1278_v61  ;;  %v1312_v25 = vor.u32 1.1754944e-38, %v1311_v52  ;;  %v2881_v4 = vpop.eup %2880  ;;  %v1308_v61 = vsel %vm4914_vm11, %v4754_v20, %v1304_v62  ;;  %vm4950_vm13 = vcmp.eq.f32.partialorder %v1309_v7, 8.507059e+37  ;;  %v3110_v52 = vld [vmem:[%s6325_s0 + $0xd8] sm:$0xff]  ;;  %v6499_v62 = vld [vmem:[#allocation53_spill] sm:$0xff] }
 0x2bc   :  { %v1863_v17 = vsel %vm4939_vm12, %v4749_v3, %v1859_v35  ;;  %vm4957_vm14 = vcmp.eq.f32.partialorder %v1864_v53, 8.507059e+37  ;;  %2666 = vmatmul.msk.f32.gmra.mxu3 %vm179_vm0, %v3110_v52  ;;  %v4965_v5 = vpop.eup %2882  ;;  %v2685_v20 = vmul.f32 -1.442695, %v428_v58  ;;  %v318_v7 = vadd.f32 %v6499_v62, %v3667_v55  ;;  %v6500_v52 = vld [vmem:[#allocation39_spill] sm:$0xff] }
 0x2bd   :  { %v746_v22 = vadd.f32 %v4684_v40, %v4908_v34  ;;  %v1867_v3 = vor.u32 1.1754944e-38, %v1866_v12  ;;  %2888 = vrcp.f32 %v4919_v54  ;;  %v2397_v53 = vsub.f32 1.0, %v4932_v57 }
 0x2be   :  { %v1333_v35 = vmul.f32 %v4854_v14, %v1332_v46  ;;  %v1887_v29 = vsub.f32 1.0, %v1886_v23  ;;  %v4974_v30 = vpop.eup %2884  ;;  %2890 = vpow2.f32 %v2724_v56  ;;  %v601_v58 = vadd.f32 %v6500_v52, %v3748_v36  ;;  %v6501_v23 = vld [vmem:[#allocation35_spill] sm:$0xff] }
 0x2bf   :  { %v4981_v62 = vsel %vm4950_vm13, %v1312_v25, %v1308_v61  ;;  %v1868_v40 = vsel %vm4957_vm14, %v1867_v3, %v1863_v17  ;;  %v4985_v12 = vadd.f32 1.0, %v2881_v4  ;;  %v1361_v46 = vmul.f32 %v4965_v5, %v4858_v0 }
 0x2c0   :  { %2279 = vmatmul.f32.gmra.mxu0 %v4617_v15  ;;  %vm1335_vm15 = vweird.f32 %v4757_v41  ;;  %vm1336_vm1 = vweird.f32 %v4854_v14  ;;  %v2887_v56 = vpop.eup %2886  ;;  %2892 = vpow2.f32 %v2685_v20  ;;  %v431_v15 = vadd.f32 %v6501_v23, %v318_v7  ;;  %v3111_v20 = vld [vmem:[%s6326_s1 + $0x10] sm:$0xff]  ;;  %v3112_v7 = vld [vmem:[%s6326_s1 + $0xa8] sm:$0xff] }
 0x2c1   :  { %v859_v51 = vadd.f32 %v4667_v28, %v746_v22  ;;  %v1341_v25 = vand.u32 2147483648, %v4757_v41  ;;  %v2398_v61 = vsub.f32 1.0, %v4981_v62  ;;  %v1334_v4 = vadd.f32 %v4854_v14, %v1333_v35  ;;  %vm5007_vm2 = vmor %vm1335_vm15, %vm1336_vm1 }
 0x2c2   :  { %v1339_v17 = vand.u32 2147483647, %v4757_v41  ;;  %v1888_v27 = vmul.f32 %v4886_v63, %v1887_v29  ;;  %v714_v3 = vadd.f32 %v4034_v24, %v601_v58  ;;  %v5002_v52 = vmul.f32 %v3111_v20, %v2397_v53  ;;  %804 = vmatmul.f32.gmra.mxu1 %v4865_v11  ;;  %v5022_v35 = vpop.f32.mrf.mxu3  ;;  %v3113_v29 = vld [vmem:[%s6325_s0 + $0xe0] sm:$0xff]  ;;  %v5036_v18 = vpop.f32.mrf.mxu1 }
 0x2c3   :  { %v5014_v22 = vmul.f32 %v3112_v7, %v1868_v40  ;;  %vm1890_vm3 = vweird.f32 %v4783_v48  ;;  %v5017_v24 = vpop.eup %2888  ;;  %2894 = vrcp.f32 %v4985_v12  ;;  %v1362_v53 = vsub.f32 1.0, %v1361_v46 }
 0x2c4   :  { %v5020_v11 = vadd.f32 1.0, %v2887_v56  ;;  %vm1891_vm4 = vweird.f32 %v4886_v63  ;;  %2667 = vmatmul.msk.f32.gmra.mxu3 %vm179_vm0, %v3113_v29  ;;  %v2891_v58 = vpop.eup %2890  ;;  %v2687_v40 = vmul.f32 -1.442695, %v431_v15  ;;  %v749_v20 = vadd.f32 %v4762_v19, %v4908_v34  ;;  %v3114_v56 = vld [vmem:[%s6326_s1 + $0x18] sm:$0xff]  ;;  %v6504_v19 = vld [vmem:[#allocation41_spill] sm:$0xff] }
 0x2c5   :  { %v2235_v41 = vpop.f32.mrf.mxu0  ;;  %v1342_v46 = vor.u32 1.1754944e-38, %v1341_v25  ;;  %v5034_v59 = vmul.f32 %v3114_v56, %v2398_v61  ;;  %v1338_v1 = vsel %vm5007_vm2, %v4854_v14, %v1334_v4  ;;  %vm1340_vm5 = vcmp.eq.f32.partialorder %v1339_v17, 8.507059e+37  ;;  %v6505_v17 = vld [vmem:[#allocation56_spill] sm:$0xff]  ;;  %vm5063_vm6 = vmor %vm1890_vm3, %vm1891_vm4 }
 0x2c6   :  { %v2331_v23 = vadd.f32 %v2235_v41, %v859_v51  ;;  %v5042_v15 = vadd.f32 %v4886_v63, %v1888_v27  ;;  %v2893_v51 = vpop.eup %2892  ;;  %v2726_v41 = vmul.f32 -1.442695, %v714_v3  ;;  %v604_v25 = vadd.f32 %v6504_v19, %v3748_v36 }
 0x2c7   :  { %v1916_v61 = vmul.f32 %v4974_v30, %v4835_v45  ;;  %v5049_v29 = vadd.f32 1.0, %v2891_v58  ;;  %v1363_v14 = vmul.f32 %v4965_v5, %v1362_v53  ;;  %v1894_v4 = vand.u32 2147483647, %v4783_v48 }
 0x2c8   :  { %2896 = vtanh.f32 %v2331_v23  ;;  %2282 = vmatmul.f32.gmra.mxu0 %v4630_v39  ;;  %v321_v27 = vadd.f32 %v6505_v17, %v3667_v55  ;;  %v862_v3 = vadd.f32 %v4787_v44, %v749_v20  ;;  %v5057_v28 = vsel %vm1340_vm5, %v1342_v46, %v1338_v1  ;;  %v6508_v17 = vld [vmem:[#allocation38_spill] sm:$0xff] }
 0x2c9   :  { %2898 = vrcp.f32 %v5020_v11  ;;  %v5067_v58 = vpop.eup %2894  ;;  %v5069_v53 = vadd.f32 1.0, %v2893_v51  ;;  %vm1365_vm7 = vweird.f32 %v4858_v0  ;;  %vm1366_vm8 = vweird.f32 %v4965_v5 }
 0x2ca   :  { %2900 = vpow2.f32 %v2687_v40  ;;  %v1893_v1 = vsel %vm5063_vm6, %v4886_v63, %v5042_v15  ;;  %v717_v44 = vadd.f32 %v4105_v21, %v604_v25  ;;  %807 = vmatmul.f32.gmra.mxu1 %v3112_v7  ;;  %v1896_v40 = vand.u32 2147483648, %v4783_v48  ;;  %vm5090_vm9 = vmor %vm1365_vm7, %vm1366_vm8 }
 0x2cb   :  { %2902 = vpow2.f32 %v2726_v41  ;;  %v1917_v23 = vsub.f32 1.0, %v1916_v61  ;;  %v2399_v46 = vsub.f32 1.0, %v5057_v28  ;;  %v1364_v56 = vadd.f32 %v4965_v5, %v1363_v14  ;;  %v5105_v14 = vpop.f32.mrf.mxu3 }
 0x2cc   :  { %2904 = vrcp.f32 %v5049_v29  ;;  %v1371_v51 = vand.u32 2147483648, %v4858_v0  ;;  %v434_v39 = vadd.f32 %v6508_v17, %v321_v27  ;;  %v752_v21 = vadd.f32 %v4842_v60, %v4908_v34 }
 0x2cd   :  { %v2238_v20 = vpop.f32.mrf.mxu0  ;;  %v1369_v7 = vand.u32 2147483647, %v4858_v0  ;;  %2906 = vrcp.f32 %v5069_v53  ;;  %vm5099_vm10 = vcmp.eq.f32.partialorder %v1894_v4, 8.507059e+37  ;;  %vm1920_vm11 = vweird.f32 %v4835_v45 }
 0x2ce   :  { %v2897_v19 = vpop.eup %2896  ;;  %v2332_v63 = vadd.f32 %v2238_v20, %v862_v3  ;;  %v2728_v61 = vmul.f32 -1.442695, %v717_v44  ;;  %v1897_v0 = vor.u32 1.1754944e-38, %v1896_v40  ;;  %v1918_v27 = vmul.f32 %v4974_v30, %v1917_v23  ;;  %v5115_v44 = vpop.f32.mrf.mxu1 }
 0x2cf   :  { %v5095_v15 = vpop.eup %2898  ;;  %v2459_v41 = vmul.f32 %v2897_v19, %v4768_v47  ;;  %v3115_v47 = vld [vmem:[%s6325_s0 + $0xe8] sm:$0xff]  ;;  %v324_v4 = vadd.f32 %v3990_v2, %v3667_v55  ;;  %v1372_v40 = vor.u32 1.1754944e-38, %v1371_v51  ;;  %v2689_v23 = vmul.f32 -1.442695, %v434_v39  ;;  %v3117_v39 = vld [vmem:[%s6326_s1 + $0xb0] sm:$0xff] }
 0x2d0   :  { %v2901_v60 = vpop.eup %2900  ;;  %2908 = vtanh.f32 %v2332_v63  ;;  %2285 = vmatmul.f32.gmra.mxu0 %v4676_v43  ;;  %2668 = vmatmul.msk.f32.gmra.mxu3 %vm179_vm0, %v3115_v47  ;;  %v1368_v43 = vsel %vm5090_vm9, %v4965_v5, %v1364_v56  ;;  %v865_v19 = vadd.f32 %v4871_v6, %v752_v21  ;;  %vm5121_vm12 = vcmp.eq.f32.partialorder %v1369_v7, 8.507059e+37  ;;  %v3116_v6 = vld [vmem:[%s6326_s1 + $0x20] sm:$0xff]  ;;  %v6516_v47 = vld [vmem:[#allocation40_spill] sm:$0xff] }
 0x2d1   :  { %v2491_v3 = vadd.f32 %v2459_v41, %v4840_v32  ;;  %v2903_v20 = vpop.eup %2902  ;;  %v1946_v2 = vmul.f32 %v5017_v24, %v4919_v54  ;;  %v6515_v32 = vld [vmem:[#allocation43_spill] sm:$0xff]  ;;  %v5133_v5 = vmul.f32 %v5095_v15, %v5020_v11  ;;  %v5135_v56 = vadd.f32 1.0, %v2901_v60 }
 0x2d2   :  { %v5127_v63 = vpop.eup %2904  ;;  %v607_v41 = vadd.f32 %v6515_v32, %v3748_v36  ;;  %v5140_v51 = vmul.f32 %v3116_v6, %v2399_v46  ;;  %2910 = vpow2.f32 %v2728_v61  ;;  %810 = vmatmul.f32.gmra.mxu1 %v3117_v39  ;;  %v1898_v21 = vsel %vm5099_vm10, %v1897_v0, %v1893_v1 }
 0x2d3   :  { %2523 = vst [vmem:[#allocation7] sm:$0xff] %v2491_v3  ;;  %v1919_v48 = vadd.f32 %v4974_v30, %v1918_v27  ;;  %vm1921_vm13 = vweird.f32 %v4974_v30  ;;  %v5149_v7 = vpop.eup %2906  ;;  %v5151_v60 = vadd.f32 1.0, %v2903_v20  ;;  %v437_v46 = vadd.f32 %v6516_v47, %v324_v4  ;;  %v6519_v20 = vld [vmem:[#allocation46_spill] sm:$0xff] }
 0x2d4   :  { %v5156_v61 = vsel %vm5121_vm12, %v1372_v40, %v1368_v43  ;;  %v1926_v32 = vand.u32 2147483648, %v4835_v45  ;;  %2912 = vpow2.f32 %v2689_v23  ;;  %v755_v25 = vadd.f32 %v4943_v26, %v4908_v34  ;;  %vm5168_vm14 = vmor %vm1920_vm11, %vm1921_vm13 }
 0x2d5   :  { %v2241_v3 = vpop.f32.mrf.mxu0  ;;  %v1947_v0 = vsub.f32 1.0, %v1946_v2  ;;  %v720_v27 = vadd.f32 %v4181_v37, %v607_v41  ;;  %2914 = vrcp.f32 %v5135_v56  ;;  %v1924_v40 = vand.u32 2147483647, %v4835_v45 }
 0x2d6   :  { %v2909_v6 = vpop.eup %2908  ;;  %v2333_v1 = vadd.f32 %v2241_v3, %v865_v19  ;;  %v5175_v26 = vmul.f32 %v5149_v7, %v5069_v53  ;;  %v2400_v37 = vsub.f32 1.0, %v5156_v61  ;;  %v610_v23 = vadd.f32 %v6519_v20, %v3748_v36 }
 0x2d7   :  { %v2460_v4 = vmul.f32 %v2909_v6, %v4831_v16  ;;  %v1923_v16 = vsel %vm5168_vm14, %v4974_v30, %v1919_v48  ;;  %v2691_v19 = vmul.f32 -1.442695, %v437_v46  ;;  %v1976_v45 = vmul.f32 %v5067_v58, %v4985_v12  ;;  %v5191_v48 = vpop.f32.mrf.mxu1  ;;  %v5193_v46 = vpop.f32.mrf.mxu3  ;;  %v3118_v6 = vld [vmem:[%s6325_s0 + $0xf0] sm:$0xff] }
 0x2d8   :  { %2916 = vtanh.f32 %v2333_v1  ;;  %2288 = vmatmul.f32.gmra.mxu0 %v4716_v31  ;;  %v2911_v2 = vpop.eup %2910  ;;  %v1392_v41 = vsub.f32 1.0, %v5133_v5  ;;  %v868_v31 = vadd.f32 %v4945_v38, %v755_v25  ;;  %v1927_v47 = vor.u32 1.1754944e-38, %v1926_v32  ;;  %2669 = vmatmul.msk.f32.gmra.mxu3 %vm179_vm0, %v3118_v6  ;;  %v3119_v1 = vld [vmem:[%s6326_s1 + $0x28] sm:$0xff] }
 0x2d9   :  { %v2492_v17 = vadd.f32 %v2460_v4, %v4924_v49  ;;  %v1948_v3 = vmul.f32 %v5017_v24, %v1947_v0  ;;  %2918 = vrcp.f32 %v5151_v60  ;;  %v2730_v30 = vmul.f32 -1.442695, %v720_v27 }
 0x2da   :  { %v5195_v49 = vmul.f32 %v3117_v39, %v1898_v21  ;;  %vm1925_vm15 = vcmp.eq.f32.partialorder %v1924_v40, 8.507059e+37  ;;  %v2913_v38 = vpop.eup %2912  ;;  %v1422_v32 = vsub.f32 1.0, %v5175_v26  ;;  %v5205_v25 = vmul.f32 %v3119_v1, %v2400_v37  ;;  %v3120_v39 = vld [vmem:[%s6326_s1 + $0xb8] sm:$0xff] }
 0x2db   :  { %2524 = vst [vmem:[#allocation7 + $0x8] sm:$0xff] %v2492_v17  ;;  %813 = vmatmul.f32.gmra.mxu1 %v3120_v39  ;;  %v1928_v21 = vsel %vm1925_vm15, %v1927_v47, %v1923_v16  ;;  %vm1951_vm1 = vweird.f32 %v5017_v24  ;;  %v5211_v0 = vpop.eup %2914  ;;  %v5213_v27 = vadd.f32 1.0, %v2911_v2  ;;  %v723_v4 = vadd.f32 %v4269_v42, %v610_v23 }
 0x2dc   :  { %2920 = vpow2.f32 %v2691_v19  ;;  %v1977_v40 = vsub.f32 1.0, %v1976_v45  ;;  %v327_v37 = vadd.f32 %v4024_v13, %v3667_v55  ;;  %v758_v6 = vadd.f32 %v5036_v18, %v4908_v34 }
 0x2dd   :  { %v2244_v43 = vpop.f32.mrf.mxu0  ;;  %v1949_v16 = vadd.f32 %v5017_v24, %v1948_v3  ;;  %2922 = vpow2.f32 %v2730_v30  ;;  %v1954_v2 = vand.u32 2147483647, %v4919_v54  ;;  %v1956_v42 = vand.u32 2147483648, %v4919_v54  ;;  %v6522_v30 = vld [vmem:[#allocation42_spill] sm:$0xff] }
 0x2de   :  { %v2917_v20 = vpop.eup %2916  ;;  %v2334_v17 = vadd.f32 %v2244_v43, %v868_v31  ;;  %v5226_v23 = vmul.f32 %v5211_v0, %v5135_v56  ;;  %v5228_v19 = vadd.f32 1.0, %v2913_v38  ;;  %vm1950_vm2 = vweird.f32 %v4919_v54 }
 0x2df   :  { %v2461_v47 = vmul.f32 %v2917_v20, %v4932_v57  ;;  %v5232_v13 = vpop.eup %2918  ;;  %v2732_v18 = vmul.f32 -1.442695, %v723_v4  ;;  %vm5237_vm3 = vmor %vm1950_vm2, %vm1951_vm1  ;;  %v1978_v31 = vmul.f32 %v5067_v58, %v1977_v40  ;;  %v1984_v3 = vand.u32 2147483647, %v4985_v12  ;;  %v5251_v4 = vpop.f32.mrf.mxu1 }
 0x2e0   :  { %2924 = vtanh.f32 %v2334_v17  ;;  %2291 = vmatmul.f32.gmra.mxu0 %v4824_v9  ;;  %v440_v38 = vadd.f32 %v6522_v30, %v327_v37  ;;  %v871_v9 = vadd.f32 %v5022_v35, %v758_v6  ;;  %v5245_v54 = vmul.f32 %v3120_v39, %v1928_v21  ;;  %v5253_v43 = vpop.f32.mrf.mxu3  ;;  %v3121_v35 = vld [vmem:[%s6325_s0 + $0xf8] sm:$0xff]  ;;  %v3122_v39 = vld [vmem:[%s6326_s1 + $0xc0] sm:$0xff] }
 0x2e1   :  { %v2493_v57 = vadd.f32 %v2461_v47, %v5002_v52  ;;  %v1953_v52 = vsel %vm5237_vm3, %v5017_v24, %v1949_v16  ;;  %2926 = vrcp.f32 %v5213_v27  ;;  %vm1955_vm4 = vcmp.eq.f32.partialorder %v1954_v2, 8.507059e+37  ;;  %2670 = vmatmul.msk.f32.gmra.mxu3 %vm179_vm0, %v3121_v35  ;;  %v6525_v2 = vld [vmem:[#allocation49_spill] sm:$0xff] }
 0x2e2   :  { %v2921_v1 = vpop.eup %2920  ;;  %v1957_v40 = vor.u32 1.1754944e-38, %v1956_v42  ;;  %vm1980_vm5 = vweird.f32 %v4985_v12  ;;  %v1452_v24 = vsub.f32 1.0, %v5226_v23  ;;  %2928 = vrcp.f32 %v5228_v19 }
 0x2e3   :  { %2525 = vst [vmem:[#allocation7 + $0x10] sm:$0xff] %v2493_v57  ;;  %816 = vmatmul.f32.gmra.mxu1 %v3122_v39  ;;  %vm1981_vm6 = vweird.f32 %v5067_v58  ;;  %v2006_v21 = vmul.f32 %v5127_v63, %v5049_v29  ;;  %v2923_v20 = vpop.eup %2922  ;;  %2930 = vpow2.f32 %v2732_v18  ;;  %v1979_v6 = vadd.f32 %v5067_v58, %v1978_v31 }
 0x2e4   :  { %v1958_v17 = vsel %vm1955_vm4, %v1957_v40, %v1953_v52  ;;  %vm5269_vm0 = vcmp.eq.f32.partialorder %v1984_v3, 8.507059e+37  ;;  %v613_v42 = vadd.f32 %v6525_v2, %v3748_v36  ;;  %v2693_v57 = vmul.f32 -1.442695, %v440_v38  ;;  %vm5293_vm7 = vmor %vm1980_vm5, %vm1981_vm6 }
 0x2e5   :  { %v2247_v37 = vpop.f32.mrf.mxu0  ;;  %v761_v30 = vadd.f32 %v5115_v44, %v4908_v34  ;;  %v5277_v35 = vadd.f32 1.0, %v2921_v1  ;;  %v1393_v31 = vmul.f32 %v5095_v15, %v1392_v41  ;;  %v1986_v3 = vand.u32 2147483648, %v4985_v12 }
 0x2e6   :  { %v2925_v47 = vpop.eup %2924  ;;  %v2335_v45 = vadd.f32 %v2247_v37, %v871_v9  ;;  %v5284_v52 = vadd.f32 1.0, %v2923_v20  ;;  %v330_v36 = vadd.f32 %v4075_v10, %v3667_v55  ;;  %v2007_v44 = vsub.f32 1.0, %v2006_v21  ;;  %v6528_v37 = vld [vmem:[#allocation45_spill] sm:$0xff] }
 0x2e7   :  { %v2462_v18 = vmul.f32 %v2925_v47, %v4981_v62  ;;  %v5297_v5 = vpop.eup %2926  ;;  %vm1395_vm8 = vweird.f32 %v5020_v11  ;;  %vm1396_vm9 = vweird.f32 %v5095_v15  ;;  %v1983_v10 = vsel %vm5293_vm7, %v5067_v58, %v1979_v6  ;;  %v5313_v21 = vpop.f32.mrf.mxu1  ;;  %v3123_v47 = vld [vmem:[%s6326_s1 + $0xc8] sm:$0xff] }
 0x2e8   :  { %2932 = vtanh.f32 %v2335_v45  ;;  %2294 = vmatmul.f32.gmra.mxu0 %v4868_v50  ;;  %v5305_v50 = vpop.eup %2928  ;;  %v726_v12 = vadd.f32 %v4364_v8, %v613_v42  ;;  %v874_v38 = vadd.f32 %v5105_v14, %v761_v30  ;;  %v1401_v9 = vand.u32 2147483648, %v5020_v11  ;;  %v5315_v58 = vpop.f32.mrf.mxu3  ;;  %vm5322_vm10 = vmor %vm1395_vm8, %vm1396_vm9 }
 0x2e9   :  { %v2494_v41 = vadd.f32 %v2462_v18, %v5034_v59  ;;  %2934 = vpow2.f32 %v2693_v57  ;;  %v2931_v1 = vpop.eup %2930  ;;  %v1394_v59 = vadd.f32 %v5095_v15, %v1393_v31  ;;  %v1399_v40 = vand.u32 2147483647, %v5020_v11 }
 0x2ea   :  { %2936 = vrcp.f32 %v5277_v35  ;;  %v1987_v20 = vor.u32 1.1754944e-38, %v1986_v3  ;;  %v443_v8 = vadd.f32 %v6528_v37, %v330_v36  ;;  %v5326_v6 = vmul.f32 %v3122_v39, %v1958_v17 }
 0x2eb   :  { %2526 = vst [vmem:[#allocation7 + $0x18] sm:$0xff] %v2494_v41  ;;  %819 = vmatmul.f32.gmra.mxu1 %v3123_v47  ;;  %v2008_v2 = vmul.f32 %v5127_v63, %v2007_v44  ;;  %vm2010_vm11 = vweird.f32 %v5049_v29  ;;  %v5335_v42 = vmul.f32 %v5305_v50, %v5228_v19  ;;  %vm2011_vm12 = vweird.f32 %v5127_v63 }
 0x2ec   :  { %v1988_v57 = vsel %vm5269_vm0, %v1987_v20, %v1983_v10  ;;  %v2014_v39 = vand.u32 2147483647, %v5049_v29  ;;  %v2734_v45 = vmul.f32 -1.442695, %v726_v12  ;;  %v764_v18 = vadd.f32 %v5191_v48, %v4908_v34  ;;  %vm5378_vm14 = vmor %vm2010_vm11, %vm2011_vm12 }
 0x2ed   :  { %v2250_v11 = vpop.f32.mrf.mxu0  ;;  %v1402_v31 = vor.u32 1.1754944e-38, %v1401_v9  ;;  %v5343_v3 = vadd.f32 1.0, %v2931_v1  ;;  %v1398_v16 = vsel %vm5322_vm10, %v5095_v15, %v1394_v59  ;;  %vm1400_vm13 = vcmp.eq.f32.partialorder %v1399_v40, 8.507059e+37 }
 0x2ee   :  { %v2933_v17 = vpop.eup %2932  ;;  %v2336_v30 = vadd.f32 %v2250_v11, %v874_v38  ;;  %v2695_v44 = vmul.f32 -1.442695, %v443_v8  ;;  %v2009_v41 = vadd.f32 %v5127_v63, %v2008_v2  ;;  %v2036_v48 = vmul.f32 %v5232_v13, %v5151_v60 }
 0x2ef   :  { %v2463_v36 = vmul.f32 %v2933_v17, %v5057_v28  ;;  %v2935_v62 = vpop.eup %2934  ;;  %v1482_v28 = vsub.f32 1.0, %v5335_v42  ;;  %v5358_v15 = vmul.f32 %v3123_v47, %v1988_v57  ;;  %v877_v38 = vadd.f32 %v5193_v46, %v764_v18  ;;  %v5370_v40 = vpop.f32.mrf.mxu1 }
 0x2f0   :  { %2938 = vtanh.f32 %v2336_v30  ;;  %2297 = vmatmul.f32.gmra.mxu0 %v5014_v22  ;;  %v5353_v10 = vpop.eup %2936  ;;  %v5361_v9 = vsel %vm1400_vm13, %v1402_v31, %v1398_v16  ;;  %v2016_v22 = vand.u32 2147483648, %v5049_v29  ;;  %v5365_v1 = vadd.f32 1.0, %v2935_v62  ;;  %v6537_v62 = vld [vmem:[#allocation50_spill] sm:$0xff] }
 0x2f1   :  { %2940 = vrcp.f32 %v5284_v52  ;;  %v2495_v12 = vadd.f32 %v2463_v36, %v5140_v51  ;;  %v1423_v59 = vmul.f32 %v5149_v7, %v1422_v32  ;;  %v5372_v51 = vpop.f32.mrf.mxu3  ;;  %vm5382_vm15 = vcmp.eq.f32.partialorder %v2014_v39, 8.507059e+37  ;;  %v3124_v32 = vld [vmem:[%s6326_s1 + $0xd0] sm:$0xff] }
 0x2f2   :  { %2942 = vpow2.f32 %v2734_v45  ;;  %v5388_v26 = vmul.f32 %v5353_v10, %v5277_v35  ;;  %v2013_v29 = vsel %vm5378_vm14, %v5127_v63, %v2009_v41  ;;  %v2037_v37 = vsub.f32 1.0, %v2036_v48 }
 0x2f3   :  { %2944 = vrcp.f32 %v5343_v3  ;;  %2527 = vst [vmem:[#allocation7 + $0x20] sm:$0xff] %v2495_v12  ;;  %822 = vmatmul.f32.gmra.mxu1 %v3124_v32  ;;  %v333_v8 = vadd.f32 %v4153_v33, %v3667_v55  ;;  %v2401_v47 = vsub.f32 1.0, %v5361_v9  ;;  %vm1425_vm1 = vweird.f32 %v5069_v53  ;;  %v6539_v12 = vld [vmem:[#allocation60_spill] sm:$0xff] }
 0x2f4   :  { %2946 = vpow2.f32 %v2695_v44  ;;  %vm1426_vm2 = vweird.f32 %v5149_v7  ;;  %v767_v57 = vadd.f32 %v5251_v4, %v4908_v34  ;;  %v1431_v39 = vand.u32 2147483648, %v5069_v53  ;;  %v6543_v4 = vld [vmem:[#allocation55_spill] sm:$0xff] }
 0x2f5   :  { %v2253_v14 = vpop.f32.mrf.mxu0  ;;  %v2017_v17 = vor.u32 1.1754944e-38, %v2016_v22  ;;  %2948 = vrcp.f32 %v5365_v1  ;;  %v1424_v45 = vadd.f32 %v5149_v7, %v1423_v59  ;;  %v1429_v30 = vand.u32 2147483647, %v5069_v53  ;;  %vm5413_vm3 = vmor %vm1425_vm1, %vm1426_vm2  ;;  %v3125_v22 = vld [vmem:[%s6326_s1 + $0x30] sm:$0xff] }
 0x2f6   :  { %v2939_v2 = vpop.eup %2938  ;;  %v2337_v11 = vadd.f32 %v2253_v14, %v877_v38  ;;  %v2038_v36 = vmul.f32 %v5232_v13, %v2037_v37  ;;  %vm2040_vm4 = vweird.f32 %v5151_v60  ;;  %v1512_v16 = vsub.f32 1.0, %v5388_v26  ;;  %v6549_v37 = vld [vmem:[#allocation57_spill] sm:$0xff] }
 0x2f7   :  { %v5404_v63 = vpop.eup %2940  ;;  %v2464_v33 = vmul.f32 %v2939_v2, %v5156_v61  ;;  %v2018_v31 = vsel %vm5382_vm15, %v2017_v17, %v2013_v29  ;;  %v446_v44 = vadd.f32 %v6537_v62, %v333_v8  ;;  %v339_v38 = vadd.f32 %v6539_v12, %v3667_v55 }
 0x2f8   :  { %v2943_v18 = vpop.eup %2942  ;;  %2950 = vtanh.f32 %v2337_v11  ;;  %2300 = vmatmul.f32.gmra.mxu0 %v5195_v49  ;;  %v6538_v49 = vld [vmem:[#allocation58_spill] sm:$0xff]  ;;  %v2433_v59 = vmul.f32 %v3125_v22, %v2401_v47  ;;  %v880_v46 = vadd.f32 %v5253_v43, %v767_v57  ;;  %v1432_v20 = vor.u32 1.1754944e-38, %v1431_v39  ;;  %v5453_v43 = vld [vmem:[%s6326_s1 + $0xd8] sm:$0xff] }
 0x2f9   :  { %v5421_v61 = vpop.eup %2944  ;;  %v336_v53 = vadd.f32 %v6538_v49, %v3667_v55  ;;  %v2496_v41 = vadd.f32 %v2464_v33, %v5205_v25  ;;  %v1428_v29 = vsel %vm5413_vm3, %v5149_v7, %v1424_v45  ;;  %vm5437_vm5 = vcmp.eq.f32.partialorder %v1429_v30, 8.507059e+37  ;;  %v5441_v25 = vpop.f32.mrf.mxu1  ;;  %v6542_v39 = vld [vmem:[#allocation52_spill] sm:$0xff]  ;;  %v6544_v49 = vld [vmem:[#allocation61_spill] sm:$0xff] }
 0x2fa   :  { %v2947_v48 = vpop.eup %2946  ;;  %v5443_v8 = vpop.f32.mrf.mxu3  ;;  %v5445_v14 = vmul.f32 %v3124_v32, %v2018_v31  ;;  %vm2041_vm6 = vweird.f32 %v5232_v13  ;;  %v5448_v47 = vadd.f32 1.0, %v2943_v18  ;;  %v2039_v7 = vadd.f32 %v5232_v13, %v2038_v36 }
 0x2fb   :  { %2528 = vst [vmem:[#allocation7 + $0x28] sm:$0xff] %v2496_v41  ;;  %825 = vmatmul.f32.gmra.mxu1 %v5453_v43  ;;  %v2044_v2 = vand.u32 2147483647, %v5151_v60  ;;  %v2046_v11 = vand.u32 2147483648, %v5151_v60  ;;  %v5459_v57 = vpop.eup %2948  ;;  %v2697_v32 = vmul.f32 -1.442695, %v446_v44  ;;  %v449_v17 = vadd.f32 %v6542_v39, %v336_v53  ;;  %vm5481_vm8 = vmor %vm2040_vm4, %vm2041_vm6 }
 0x2fc   :  { %v1453_v45 = vmul.f32 %v5211_v0, %v1452_v24  ;;  %v2066_v30 = vmul.f32 %v5297_v5, %v5213_v27  ;;  %v452_v31 = vadd.f32 %v6543_v4, %v339_v38  ;;  %v1433_v36 = vsel %vm5437_vm5, %v1432_v20, %v1428_v29  ;;  %v6550_v24 = vld [vmem:[#allocation26_spill] sm:$0xff] }
 0x2fd   :  { %v2256_v33 = vpop.f32.mrf.mxu0  ;;  %v770_v44 = vadd.f32 %v5313_v21, %v4908_v34  ;;  %v342_v53 = vadd.f32 %v6544_v49, %v3667_v55  ;;  %vm1455_vm0 = vweird.f32 %v5135_v56  ;;  %vm1456_vm7 = vweird.f32 %v5211_v0 }
 0x2fe   :  { %v2951_v18 = vpop.eup %2950  ;;  %v2338_v62 = vadd.f32 %v2256_v33, %v880_v46  ;;  %v5485_v41 = vadd.f32 1.0, %v2947_v48  ;;  %v1461_v21 = vand.u32 2147483648, %v5135_v56  ;;  %v2699_v12 = vmul.f32 -1.442695, %v449_v17  ;;  %vm5497_vm9 = vmor %vm1455_vm0, %vm1456_vm7 }
 0x2ff   :  { %v2465_v23 = vmul.f32 %v2951_v18, %v5361_v9  ;;  %v2043_v9 = vsel %vm5481_vm8, %v5232_v13, %v2039_v7  ;;  %v1454_v22 = vadd.f32 %v5211_v0, %v1453_v45  ;;  %v1459_v60 = vand.u32 2147483647, %v5135_v56 }
 0x300   :  { %2952 = vtanh.f32 %v2338_v62  ;;  %2303 = vmatmul.f32.gmra.mxu0 %v5245_v54  ;;  %v2701_v46 = vmul.f32 -1.442695, %v452_v31  ;;  %v2402_v20 = vsub.f32 1.0, %v1433_v36  ;;  %v883_v48 = vadd.f32 %v5315_v58, %v770_v44 }
 0x301   :  { %v2497_v38 = vadd.f32 %v2465_v23, %v2433_v59  ;;  %v2047_v29 = vor.u32 1.1754944e-38, %v2046_v11  ;;  %2954 = vpow2.f32 %v2697_v32  ;;  %v455_v13 = vadd.f32 %v6549_v37, %v342_v53  ;;  %v5502_v59 = vpop.f32.mrf.mxu1  ;;  %v5514_v11 = vld [vmem:[%s6326_s1 + $0xe0] sm:$0xff] }
 0x302   :  { %v5504_v7 = vpop.f32.mrf.mxu3  ;;  %vm2045_vm10 = vcmp.eq.f32.partialorder %v2044_v2, 8.507059e+37  ;;  %v2067_v39 = vsub.f32 1.0, %v2066_v30  ;;  %v5508_v58 = vmul.f32 %v5459_v57, %v5365_v1  ;;  %2956 = vrcp.f32 %v5485_v41  ;;  %v3128_v30 = vld [vmem:[%s6326_s1 + $0x38] sm:$0xff] }
 0x303   :  { %2529 = vst [vmem:[#allocation7 + $0x30] sm:$0xff] %v2497_v38  ;;  %v1462_v56 = vor.u32 1.1754944e-38, %v1461_v21  ;;  %v2048_v17 = vsel %vm2045_vm10, %v2047_v29, %v2043_v9  ;;  %828 = vmatmul.f32.gmra.mxu1 %v5514_v11  ;;  %2958 = vpow2.f32 %v2699_v12  ;;  %v1458_v2 = vsel %vm5497_vm9, %v5211_v0, %v1454_v22 }
 0x304   :  { %vm1460_vm11 = vcmp.eq.f32.partialorder %v1459_v60, 8.507059e+37  ;;  %v1483_v33 = vmul.f32 %v5305_v50, %v1482_v28  ;;  %2960 = vpow2.f32 %v2701_v46  ;;  %v2434_v18 = vmul.f32 %v3128_v30, %v2402_v20  ;;  %v3130_v30 = vld [vmem:[%s6326_s1 + $0x40] sm:$0xff] }
 0x305   :  { %v2259_v32 = vpop.f32.mrf.mxu0  ;;  %v773_v31 = vadd.f32 %v5370_v40, %v4908_v34  ;;  %v2703_v62 = vmul.f32 -1.442695, %v455_v13  ;;  %vm1485_vm12 = vweird.f32 %v5228_v19  ;;  %vm1486_vm13 = vweird.f32 %v5305_v50 }
 0x306   :  { %v2953_v45 = vpop.eup %2952  ;;  %v2339_v4 = vadd.f32 %v2259_v32, %v883_v48  ;;  %v1463_v0 = vsel %vm1460_vm11, %v1462_v56, %v1458_v2  ;;  %v1491_v42 = vand.u32 2147483648, %v5228_v19  ;;  %v2068_v28 = vmul.f32 %v5297_v5, %v2067_v39  ;;  %vm5546_vm15 = vmor %vm1485_vm12, %vm1486_vm13  ;;  %v6553_v2 = vld [vmem:[#allocation11_spill] sm:$0xff] }
 0x307   :  { %v2466_v44 = vmul.f32 %v2953_v45, %v1433_v36  ;;  %v2955_v49 = vpop.eup %2954  ;;  %v1484_v23 = vadd.f32 %v5305_v50, %v1483_v33  ;;  %v1489_v40 = vand.u32 2147483647, %v5228_v19  ;;  %vm2070_vm14 = vweird.f32 %v5213_v27 }
 0x308   :  { %2962 = vtanh.f32 %v2339_v4  ;;  %2306 = vmatmul.f32.gmra.mxu0 %v5326_v6  ;;  %v5536_v36 = vpop.eup %2956  ;;  %v345_v21 = vadd.f32 %v6550_v24, %v3667_v55  ;;  %v886_v6 = vadd.f32 %v5372_v51, %v773_v31  ;;  %vm2071_vm1 = vweird.f32 %v5297_v5 }
 0x309   :  { %v2498_v53 = vadd.f32 %v2466_v44, %v2434_v18  ;;  %2964 = vrcp.f32 %v5448_v47  ;;  %v2959_v12 = vpop.eup %2958  ;;  %v2403_v38 = vsub.f32 1.0, %v1463_v0  ;;  %v5552_v22 = vmul.f32 %v5453_v43, %v2048_v17  ;;  %v5554_v60 = vpop.f32.mrf.mxu1  ;;  %v5568_v43 = vld [vmem:[%s6326_s1 + $0xe8] sm:$0xff]  ;;  %vm5603_vm5 = vmor %vm2070_vm14, %vm2071_vm1 }
 0x30a   :  { %2966 = vpow2.f32 %v2703_v62  ;;  %v5556_v51 = vpop.f32.mrf.mxu3  ;;  %v2074_v46 = vand.u32 2147483647, %v5213_v27  ;;  %v2961_v19 = vpop.eup %2960  ;;  %v1542_v20 = vsub.f32 1.0, %v5508_v58  ;;  %v5560_v48 = vadd.f32 1.0, %v2955_v49 }
 0x30b   :  { %2530 = vst [vmem:[#allocation7 + $0x38] sm:$0xff] %v2498_v53  ;;  %v1492_v54 = vor.u32 1.1754944e-38, %v1491_v42  ;;  %v5563_v29 = vadd.f32 %v5297_v5, %v2068_v28  ;;  %831 = vmatmul.f32.gmra.mxu1 %v5568_v43  ;;  %v5573_v37 = vmul.f32 %v5536_v36, %v5485_v41  ;;  %v1488_v13 = vsel %vm5546_vm15, %v5305_v50, %v1484_v23 }
 0x30c   :  { %vm1490_vm2 = vcmp.eq.f32.partialorder %v1489_v40, 8.507059e+37  ;;  %v1513_v58 = vmul.f32 %v5353_v10, %v1512_v16  ;;  %v5581_v17 = vadd.f32 1.0, %v2959_v12  ;;  %v458_v32 = vadd.f32 %v6553_v2, %v345_v21 }
 0x30d   :  { %v2262_v39 = vpop.f32.mrf.mxu0  ;;  %v776_v45 = vadd.f32 %v5441_v25, %v4908_v34  ;;  %v2435_v50 = vmul.f32 %v3130_v30, %v2403_v38  ;;  %vm1515_vm3 = vweird.f32 %v5277_v35  ;;  %vm1516_vm4 = vweird.f32 %v5353_v10  ;;  %v5641_v38 = vld [vmem:[%s6326_s1 + $0xf0] sm:$0xff] }
 0x30e   :  { %v2963_v56 = vpop.eup %2962  ;;  %v2340_v33 = vadd.f32 %v2262_v39, %v886_v6  ;;  %v5593_v16 = vadd.f32 1.0, %v2961_v19  ;;  %v1493_v4 = vsel %vm1490_vm2, %v1492_v54, %v1488_v13  ;;  %v1521_v25 = vand.u32 2147483648, %v5277_v35  ;;  %vm5614_vm6 = vmor %vm1515_vm3, %vm1516_vm4  ;;  %v3132_v13 = vld [vmem:[%s6326_s1 + $0x48] sm:$0xff] }
 0x30f   :  { %v2467_v18 = vmul.f32 %v2963_v56, %v1463_v0  ;;  %v5591_v26 = vpop.eup %2964  ;;  %v1514_v44 = vadd.f32 %v5353_v10, %v1513_v58  ;;  %v1519_v0 = vand.u32 2147483647, %v5277_v35  ;;  %v2076_v28 = vand.u32 2147483648, %v5213_v27 }
 0x310   :  { %2968 = vtanh.f32 %v2340_v33  ;;  %2309 = vmatmul.f32.gmra.mxu0 %v5358_v15  ;;  %v2967_v31 = vpop.eup %2966  ;;  %v2705_v15 = vmul.f32 -1.442695, %v458_v32  ;;  %v889_v49 = vadd.f32 %v5443_v8, %v776_v45  ;;  %v2073_v23 = vsel %vm5603_vm5, %v5297_v5, %v5563_v29  ;;  %v6560_v5 = vld [vmem:[#allocation27_spill] sm:$0xff] }
 0x311   :  { %v2499_v62 = vadd.f32 %v2467_v18, %v2435_v50  ;;  %2970 = vrcp.f32 %v5560_v48  ;;  %v1572_v27 = vsub.f32 1.0, %v5573_v37  ;;  %v2404_v40 = vsub.f32 1.0, %v1493_v4  ;;  %v5629_v35 = vpop.f32.mrf.mxu1  ;;  %v6563_v50 = vld [vmem:[#allocation12_spill] sm:$0xff] }
 0x312   :  { %2972 = vrcp.f32 %v5581_v17  ;;  %v1543_v8 = vmul.f32 %v5459_v57, %v1542_v20  ;;  %vm5625_vm0 = vcmp.eq.f32.partialorder %v2074_v46, 8.507059e+37  ;;  %v5631_v21 = vpop.f32.mrf.mxu3  ;;  %v5634_v6 = vadd.f32 1.0, %v2967_v31 }
 0x313   :  { %2531 = vst [vmem:[#allocation7 + $0x40] sm:$0xff] %v2499_v62  ;;  %2974 = vrcp.f32 %v5593_v16  ;;  %v348_v9 = vadd.f32 %v6560_v5, %v3667_v55  ;;  %v1522_v12 = vor.u32 1.1754944e-38, %v1521_v25  ;;  %834 = vmatmul.f32.gmra.mxu1 %v5641_v38  ;;  %v1518_v46 = vsel %vm5614_vm6, %v5353_v10, %v1514_v44 }
 0x314   :  { %vm1520_vm7 = vcmp.eq.f32.partialorder %v1519_v0, 8.507059e+37  ;;  %vm1545_vm8 = vweird.f32 %v5365_v1  ;;  %vm1546_vm9 = vweird.f32 %v5459_v57  ;;  %2976 = vpow2.f32 %v2705_v15 }
 0x315   :  { %v2265_v19 = vpop.f32.mrf.mxu0  ;;  %v779_v29 = vadd.f32 %v5502_v59, %v4908_v34  ;;  %v1551_v37 = vand.u32 2147483648, %v5365_v1  ;;  %v2436_v39 = vmul.f32 %v3132_v13, %v2404_v40  ;;  %v1544_v58 = vadd.f32 %v5459_v57, %v1543_v8  ;;  %vm5664_vm10 = vmor %vm1545_vm8, %vm1546_vm9 }
 0x316   :  { %v2969_v20 = vpop.eup %2968  ;;  %v2341_v54 = vadd.f32 %v2265_v19, %v889_v49  ;;  %v1549_v56 = vand.u32 2147483647, %v5365_v1  ;;  %v1523_v32 = vsel %vm1520_vm7, %v1522_v12, %v1518_v46  ;;  %v1573_v33 = vmul.f32 %v5536_v36, %v1572_v27  ;;  %v6568_v19 = vld [vmem:[#allocation28_spill] sm:$0xff] }
 0x317   :  { %v2468_v10 = vmul.f32 %v2969_v20, %v1493_v4  ;;  %v5657_v2 = vpop.eup %2970  ;;  %v2096_v45 = vmul.f32 %v5404_v63, %v5284_v52  ;;  %v461_v18 = vadd.f32 %v6563_v50, %v348_v9  ;;  %v2077_v4 = vor.u32 1.1754944e-38, %v2076_v28 }
 0x318   :  { %2978 = vtanh.f32 %v2341_v54  ;;  %2312 = vmatmul.f32.gmra.mxu0 %v5445_v14  ;;  %v5671_v30 = vpop.eup %2972  ;;  %v892_v1 = vadd.f32 %v5504_v7, %v779_v29  ;;  %v1552_v31 = vor.u32 1.1754944e-38, %v1551_v37  ;;  %vm1575_vm11 = vweird.f32 %v5485_v41 }
 0x319   :  { %2980 = vrcp.f32 %v5634_v6  ;;  %v2500_v14 = vadd.f32 %v2468_v10, %v2436_v39  ;;  %v5675_v25 = vpop.eup %2974  ;;  %vm1576_vm12 = vweird.f32 %v5536_v36  ;;  %v2405_v62 = vsub.f32 1.0, %v1523_v32  ;;  %v5688_v28 = vpop.f32.mrf.mxu1 }
 0x31a   :  { %v1548_v44 = vsel %vm5664_vm10, %v5459_v57, %v1544_v58  ;;  %vm5683_vm13 = vcmp.eq.f32.partialorder %v1549_v56, 8.507059e+37  ;;  %v1581_v42 = vand.u32 2147483648, %v5485_v41  ;;  %v5690_v7 = vpop.f32.mrf.mxu3  ;;  %v2977_v15 = vpop.eup %2976  ;;  %v1574_v49 = vadd.f32 %v5536_v36, %v1573_v33  ;;  %v5699_v57 = vld [vmem:[%s6326_s1 + $0xf8] sm:$0xff]  ;;  %vm5716_vm14 = vmor %vm1575_vm11, %vm1576_vm12 }
 0x31b   :  { %2532 = vst [vmem:[#allocation7 + $0x48] sm:$0xff] %v2500_v14  ;;  %v1579_v53 = vand.u32 2147483647, %v5485_v41  ;;  %v2078_v27 = vsel %vm5625_vm0, %v2077_v4, %v2073_v23  ;;  %v2097_v40 = vsub.f32 1.0, %v2096_v45  ;;  %837 = vmatmul.f32.gmra.mxu1 %v5699_v57  ;;  %v1601_v8 = vmul.f32 %v5657_v2, %v5560_v48  ;;  %v3134_v41 = vld [vmem:[%s6326_s1 + $0x50] sm:$0xff] }
 0x31c   :  { %v5706_v5 = vmul.f32 %v5671_v30, %v5581_v17  ;;  %v5710_v9 = vmul.f32 %v5675_v25, %v5593_v16  ;;  %v2707_v23 = vmul.f32 -1.442695, %v461_v18  ;;  %v351_v20 = vadd.f32 %v6568_v19, %v3667_v55 }
 0x31d   :  { %v2268_v24 = vpop.f32.mrf.mxu0  ;;  %v1553_v54 = vsel %vm5683_vm13, %v1552_v31, %v1548_v44  ;;  %v782_v37 = vadd.f32 %v5554_v60, %v4908_v34  ;;  %v2437_v39 = vmul.f32 %v3134_v41, %v2405_v62  ;;  %v1582_v58 = vor.u32 1.1754944e-38, %v1581_v42  ;;  %v6570_v42 = vld [vmem:[#allocation48_spill] sm:$0xff] }
 0x31e   :  { %v2979_v46 = vpop.eup %2978  ;;  %v2342_v29 = vadd.f32 %v2268_v24, %v892_v1  ;;  %v2126_v56 = vmul.f32 %v5421_v61, %v5343_v3  ;;  %v1578_v59 = vsel %vm5716_vm14, %v5536_v36, %v1574_v49  ;;  %vm1580_vm15 = vcmp.eq.f32.partialorder %v1579_v53, 8.507059e+37  ;;  %v6569_v36 = vld [vmem:[#allocation14_spill] sm:$0xff] }
 0x31f   :  { %v5726_v13 = vpop.eup %2980  ;;  %v2469_v10 = vmul.f32 %v2979_v46, %v1523_v32  ;;  %v2098_v60 = vmul.f32 %v5404_v63, %v2097_v40  ;;  %v1602_v33 = vsub.f32 1.0, %v1601_v8  ;;  %v1632_v45 = vsub.f32 1.0, %v5706_v5 }
 0x320   :  { %2982 = vtanh.f32 %v2342_v29  ;;  %2315 = vmatmul.f32.gmra.mxu0 %v5552_v22  ;;  %v2406_v18 = vsub.f32 1.0, %v1553_v54  ;;  %v1662_v32 = vsub.f32 1.0, %v5710_v9  ;;  %v5742_v14 = vmul.f32 %v5726_v13, %v5634_v6 }
 0x321   :  { %v2501_v50 = vadd.f32 %v2469_v10, %v2437_v39  ;;  %v5744_v4 = vadd.f32 1.0, %v2977_v15  ;;  %v895_v22 = vadd.f32 %v5556_v51, %v782_v37  ;;  %2984 = vpow2.f32 %v2707_v23  ;;  %v5748_v44 = vpop.f32.mrf.mxu1  ;;  %v3135_v51 = vld [vmem:[%s6326_s1 + $0x58] sm:$0xff] }
 0x322   :  { %v464_v1 = vadd.f32 %v6569_v36, %v351_v20  ;;  %v1583_v31 = vsel %vm1580_vm15, %v1582_v58, %v1578_v59  ;;  %v2127_v62 = vsub.f32 1.0, %v2126_v56  ;;  %v5750_v0 = vpop.f32.mrf.mxu3  ;;  %v354_v49 = vadd.f32 %v6570_v42, %v3667_v55 }
 0x323   :  { %2533 = vst [vmem:[#allocation7 + $0x50] sm:$0xff] %v2501_v50  ;;  %v2198_v53 = vmul.f32 %v5514_v11, %v2078_v27  ;;  %v2099_v15 = vadd.f32 %v5404_v63, %v2098_v60  ;;  %vm2101_vm1 = vweird.f32 %v5404_v63  ;;  %v2438_v40 = vmul.f32 %v3135_v51, %v2406_v18 }
 0x324   :  { %v1603_v23 = vmul.f32 %v5657_v2, %v1602_v33  ;;  %vm2100_vm2 = vweird.f32 %v5284_v52  ;;  %v2106_v24 = vand.u32 2147483648, %v5284_v52  ;;  %v2407_v19 = vsub.f32 1.0, %v1583_v31  ;;  %v6575_v33 = vld [vmem:[#allocation16_spill] sm:$0xff] }
 0x325   :  { %v2271_v8 = vpop.f32.mrf.mxu0  ;;  %v785_v11 = vadd.f32 %v5629_v35, %v4908_v34  ;;  %v2104_v27 = vand.u32 2147483647, %v5284_v52  ;;  %vm1605_vm3 = vweird.f32 %v5560_v48  ;;  %vm1606_vm4 = vweird.f32 %v5657_v2  ;;  %vm5770_vm5 = vmor %vm2100_vm2, %vm2101_vm1 }
 0x326   :  { %v2983_v12 = vpop.eup %2982  ;;  %v2343_v46 = vadd.f32 %v2271_v8, %v895_v22  ;;  %v2128_v37 = vmul.f32 %v5421_v61, %v2127_v62  ;;  %v1611_v41 = vand.u32 2147483648, %v5560_v48  ;;  %v2103_v52 = vsel %vm5770_vm5, %v5404_v63, %v2099_v15  ;;  %vm5789_vm6 = vmor %vm1605_vm3, %vm1606_vm4 }
 0x327   :  { %v2470_v20 = vmul.f32 %v2983_v12, %v1553_v54  ;;  %v2156_v35 = vmul.f32 %v5591_v26, %v5448_v47  ;;  %v2985_v54 = vpop.eup %2984  ;;  %v1604_v10 = vadd.f32 %v5657_v2, %v1603_v23  ;;  %v1609_v58 = vand.u32 2147483647, %v5560_v48  ;;  %v3136_v48 = vld [vmem:[%s6326_s1 + $0x60] sm:$0xff] }
 0x328   :  { %2986 = vtanh.f32 %v2343_v46  ;;  %2318 = vmatmul.f32.gmra.mxu0 %v2198_v53  ;;  %v2107_v56 = vor.u32 1.1754944e-38, %v2106_v24  ;;  %v2709_v59 = vmul.f32 -1.442695, %v464_v1  ;;  %v898_v60 = vadd.f32 %v5631_v21, %v785_v11 }
 0x329   :  { %v2502_v39 = vadd.f32 %v2470_v20, %v2438_v40  ;;  %2988 = vrcp.f32 %v5744_v4  ;;  %vm2105_vm0 = vcmp.eq.f32.partialorder %v2104_v27, 8.507059e+37  ;;  %v467_v50 = vadd.f32 %v6575_v33, %v354_v49  ;;  %v5796_v36 = vpop.f32.mrf.mxu1 }
 0x32a   :  { %v2108_v18 = vsel %vm2105_vm0, %v2107_v56, %v2103_v52  ;;  %v2129_v22 = vadd.f32 %v5421_v61, %v2128_v37  ;;  %vm2131_vm7 = vweird.f32 %v5421_v61  ;;  %v5798_v21 = vpop.f32.mrf.mxu3  ;;  %v2439_v1 = vmul.f32 %v3136_v48, %v2407_v19 }
 0x32b   :  { %2534 = vst [vmem:[#allocation7 + $0x58] sm:$0xff] %v2502_v39  ;;  %v1612_v62 = vor.u32 1.1754944e-38, %v1611_v41  ;;  %vm2130_vm8 = vweird.f32 %v5343_v3  ;;  %v2157_v42 = vsub.f32 1.0, %v2156_v35  ;;  %v1608_v49 = vsel %vm5789_vm6, %v5657_v2, %v1604_v10 }
 0x32c   :  { %vm1610_vm9 = vcmp.eq.f32.partialorder %v1609_v58, 8.507059e+37  ;;  %v1633_v15 = vmul.f32 %v5671_v30, %v1632_v45  ;;  %v2136_v51 = vand.u32 2147483648, %v5343_v3  ;;  %v2199_v23 = vmul.f32 %v5568_v43, %v2108_v18  ;;  %vm5816_vm10 = vmor %vm2130_vm8, %vm2131_vm7  ;;  %v3137_v18 = vld [vmem:[%s6326_s1 + $0x68] sm:$0xff] }
 0x32d   :  { %v2274_v53 = vpop.f32.mrf.mxu0  ;;  %v788_v24 = vadd.f32 %v5688_v28, %v4908_v34  ;;  %v2134_v2 = vand.u32 2147483647, %v5343_v3  ;;  %vm1635_vm11 = vweird.f32 %v5581_v17  ;;  %vm1636_vm12 = vweird.f32 %v5671_v30 }
 0x32e   :  { %v2987_v40 = vpop.eup %2986  ;;  %v2344_v8 = vadd.f32 %v2274_v53, %v898_v60  ;;  %v2133_v43 = vsel %vm5816_vm10, %v5421_v61, %v2129_v22  ;;  %v1613_v28 = vsel %vm1610_vm9, %v1612_v62, %v1608_v49  ;;  %v1641_v46 = vand.u32 2147483648, %v5581_v17  ;;  %vm5838_vm13 = vmor %vm1635_vm11, %vm1636_vm12  ;;  %v6584_v53 = vld [vmem:[#allocation32_spill] sm:$0xff] }
 0x32f   :  { %v2471_v5 = vmul.f32 %v2987_v40, %v1583_v31  ;;  %v5826_v45 = vpop.eup %2988  ;;  %v2158_v19 = vmul.f32 %v5591_v26, %v2157_v42  ;;  %v1634_v3 = vadd.f32 %v5671_v30, %v1633_v15  ;;  %v1639_v31 = vand.u32 2147483647, %v5581_v17 }
 0x330   :  { %2990 = vtanh.f32 %v2344_v8  ;;  %2321 = vmatmul.f32.gmra.mxu0 %v2199_v23  ;;  %v2137_v27 = vor.u32 1.1754944e-38, %v2136_v51  ;;  %v1692_v20 = vsub.f32 1.0, %v5742_v14  ;;  %v901_v61 = vadd.f32 %v5690_v7, %v788_v24 }
 0x331   :  { %v2503_v11 = vadd.f32 %v2471_v5, %v2439_v1  ;;  %2992 = vpow2.f32 %v2709_v59  ;;  %vm2135_vm14 = vcmp.eq.f32.partialorder %v2134_v2, 8.507059e+37  ;;  %v5842_v37 = vadd.f32 1.0, %v2985_v54  ;;  %v5844_v39 = vpop.f32.mrf.mxu1 }
 0x332   :  { %v2711_v41 = vmul.f32 -1.442695, %v467_v50  ;;  %v2408_v52 = vsub.f32 1.0, %v1613_v28  ;;  %v2138_v35 = vsel %vm2135_vm14, %v2137_v27, %v2133_v43  ;;  %v5846_v14 = vpop.f32.mrf.mxu3  ;;  %v1642_v7 = vor.u32 1.1754944e-38, %v1641_v46 }
 0x333   :  { %2535 = vst [vmem:[#allocation7 + $0x60] sm:$0xff] %v2503_v11  ;;  %v2159_v10 = vadd.f32 %v5591_v26, %v2158_v19  ;;  %vm2160_vm15 = vweird.f32 %v5448_v47  ;;  %vm2161_vm1 = vweird.f32 %v5591_v26  ;;  %v1638_v17 = vsel %vm5838_vm13, %v5671_v30, %v1634_v3 }
 0x334   :  { %vm5854_vm2 = vcmp.eq.f32.partialorder %v1639_v31, 8.507059e+37  ;;  %v1663_v56 = vmul.f32 %v5675_v25, %v1662_v32  ;;  %v2166_v59 = vand.u32 2147483648, %v5448_v47  ;;  %v2200_v33 = vmul.f32 %v5641_v38, %v2138_v35  ;;  %vm5875_vm5 = vmor %vm2160_vm15, %vm2161_vm1  ;;  %v3138_v31 = vld [vmem:[%s6326_s1 + $0x70] sm:$0xff] }
 0x335   :  { %v2277_v58 = vpop.f32.mrf.mxu0  ;;  %v791_v50 = vadd.f32 %v5748_v44, %v4908_v34  ;;  %v2164_v30 = vand.u32 2147483647, %v5448_v47  ;;  %v2440_v22 = vmul.f32 %v3137_v18, %v2408_v52  ;;  %vm1665_vm3 = vweird.f32 %v5593_v16 }
 0x336   :  { %v2991_v60 = vpop.eup %2990  ;;  %v2345_v63 = vadd.f32 %v2277_v58, %v901_v61  ;;  %vm1666_vm4 = vweird.f32 %v5675_v25  ;;  %v1643_v32 = vsel %vm5854_vm2, %v1642_v7, %v1638_v17  ;;  %v1671_v44 = vand.u32 2147483648, %v5593_v16 }
 0x337   :  { %v2472_v48 = vmul.f32 %v2991_v60, %v1613_v28  ;;  %v2993_v9 = vpop.eup %2992  ;;  %v2163_v1 = vsel %vm5875_vm5, %v5591_v26, %v2159_v10  ;;  %v1664_v42 = vadd.f32 %v5675_v25, %v1663_v56  ;;  %v1669_v47 = vand.u32 2147483647, %v5593_v16  ;;  %vm5892_vm6 = vmor %vm1665_vm3, %vm1666_vm4  ;;  %v6587_v28 = vld [vmem:[#allocation59_spill] sm:$0xff]  ;;  %v6588_v10 = vld [vmem:[#allocation44_spill] sm:$0xff] }
 0x338   :  { %2994 = vtanh.f32 %v2345_v63  ;;  %2324 = vmatmul.f32.gmra.mxu0 %v2200_v33  ;;  %v2167_v49 = vor.u32 1.1754944e-38, %v2166_v59  ;;  %v357_v15 = vadd.f32 %v6584_v53, %v3667_v55  ;;  %v904_v51 = vadd.f32 %v5750_v0, %v791_v50 }
 0x339   :  { %v2504_v62 = vadd.f32 %v2472_v48, %v2440_v22  ;;  %vm2165_vm0 = vcmp.eq.f32.partialorder %v2164_v30, 8.507059e+37  ;;  %v2409_v26 = vsub.f32 1.0, %v1643_v32  ;;  %v5896_v23 = vpop.f32.mrf.mxu1  ;;  %v1721_v12 = vmul.f32 %v5826_v45, %v5744_v4  ;;  %v6591_v22 = vld [vmem:[#allocation18_spill] sm:$0xff] }
 0x33a   :  { %v2168_v8 = vsel %vm2165_vm0, %v2167_v49, %v2163_v1  ;;  %v5898_v24 = vpop.f32.mrf.mxu3  ;;  %2996 = vrcp.f32 %v5842_v37  ;;  %v1672_v0 = vor.u32 1.1754944e-38, %v1671_v44  ;;  %v1668_v16 = vsel %vm5892_vm6, %v5675_v25, %v1664_v42 }
 0x33b   :  { %2536 = vst [vmem:[#allocation7 + $0x68] sm:$0xff] %v2504_v62  ;;  %2998 = vpow2.f32 %v2711_v41  ;;  %vm1670_vm7 = vcmp.eq.f32.partialorder %v1669_v47, 8.507059e+37  ;;  %v1693_v5 = vmul.f32 %v5726_v13, %v1692_v20  ;;  %v470_v46 = vadd.f32 %v6587_v28, %v357_v15 }
 0x33c   :  { %v2201_v11 = vmul.f32 %v5699_v57, %v2168_v8  ;;  %v794_v3 = vadd.f32 %v5796_v36, %v4908_v34  ;;  %v2441_v27 = vmul.f32 %v3138_v31, %v2409_v26  ;;  %vm1695_vm8 = vweird.f32 %v5634_v6 }
 0x33d   :  { %v2280_v2 = vpop.f32.mrf.mxu0  ;;  %vm1696_vm9 = vweird.f32 %v5726_v13  ;;  %v5916_v25 = vadd.f32 1.0, %v2993_v9  ;;  %v1673_v20 = vsel %vm1670_vm7, %v1672_v0, %v1668_v16  ;;  %v1701_v57 = vand.u32 2147483648, %v5634_v6 }
 0x33e   :  { %v2995_v43 = vpop.eup %2994  ;;  %v2346_v19 = vadd.f32 %v2280_v2, %v904_v51  ;;  %v1722_v29 = vsub.f32 1.0, %v1721_v12  ;;  %v1694_v36 = vadd.f32 %v5726_v13, %v1693_v5  ;;  %v1699_v52 = vand.u32 2147483647, %v5634_v6  ;;  %vm5928_vm10 = vmor %vm1695_vm8, %vm1696_vm9  ;;  %v6594_v2 = vld [vmem:[#allocation13_spill] sm:$0xff] }
 0x33f   :  { %v2473_v61 = vmul.f32 %v2995_v43, %v1643_v32  ;;  %v2713_v7 = vmul.f32 -1.442695, %v470_v46  ;;  %v360_v17 = vadd.f32 %v6588_v10, %v3667_v55  ;;  %v907_v54 = vadd.f32 %v5798_v21, %v794_v3  ;;  %v3139_v32 = vld [vmem:[%s6326_s1 + $0x78] sm:$0xff] }
 0x340   :  { %3000 = vtanh.f32 %v2346_v19  ;;  %2327 = vmatmul.f32.gmra.mxu0 %v2201_v11  ;;  %v5921_v35 = vpop.eup %2996  ;;  %v2410_v59 = vsub.f32 1.0, %v1673_v20  ;;  %v1702_v33 = vor.u32 1.1754944e-38, %v1701_v57  ;;  %v1698_v6 = vsel %vm5928_vm10, %v5726_v13, %v1694_v36  ;;  %v6595_v11 = vld [vmem:[#allocation19_spill] sm:$0xff] }
 0x341   :  { %v2505_v41 = vadd.f32 %v2473_v61, %v2441_v27  ;;  %v2999_v56 = vpop.eup %2998  ;;  %v5932_v60 = vpop.f32.mrf.mxu1  ;;  %3002 = vrcp.f32 %v5916_v25  ;;  %v1751_v50 = vmul.f32 %v5921_v35, %v5842_v37  ;;  %vm1700_vm11 = vcmp.eq.f32.partialorder %v1699_v52, 8.507059e+37  ;;  %v3140_v61 = vld [vmem:[%s6326_s1 + $0x80] sm:$0xff] }
 0x342   :  { %v5934_v63 = vpop.f32.mrf.mxu3  ;;  %v1723_v30 = vmul.f32 %v5826_v45, %v1722_v29  ;;  %3004 = vpow2.f32 %v2713_v7  ;;  %v473_v48 = vadd.f32 %v6591_v22, %v360_v17  ;;  %v797_v9 = vadd.f32 %v5844_v39, %v4908_v34 }
 0x343   :  { %2537 = vst [vmem:[#allocation7 + $0x70] sm:$0xff] %v2505_v41  ;;  %v2442_v44 = vmul.f32 %v3139_v32, %v2410_v59  ;;  %vm1725_vm12 = vweird.f32 %v5744_v4  ;;  %vm1726_vm13 = vweird.f32 %v5826_v45  ;;  %v5951_v13 = vadd.f32 1.0, %v2999_v56 }
 0x344   :  { %v1703_v62 = vsel %vm1700_vm11, %v1702_v33, %v1698_v6  ;;  %v1731_v42 = vand.u32 2147483648, %v5744_v4  ;;  %v1752_v47 = vsub.f32 1.0, %v1751_v50  ;;  %v1724_v39 = vadd.f32 %v5826_v45, %v1723_v30  ;;  %vm5959_vm14 = vmor %vm1725_vm12, %vm1726_vm13  ;;  %v6598_v6 = vld [vmem:[#allocation15_spill] sm:$0xff] }
 0x345   :  { %v2283_v21 = vpop.f32.mrf.mxu0  ;;  %v1729_v53 = vand.u32 2147483647, %v5744_v4  ;;  %v2715_v51 = vmul.f32 -1.442695, %v473_v48  ;;  %v910_v40 = vadd.f32 %v5846_v14, %v797_v9  ;;  %v2411_v8 = vsub.f32 1.0, %v1703_v62 }
 0x346   :  { %v3001_v18 = vpop.eup %3000  ;;  %v2347_v38 = vadd.f32 %v2283_v21, %v907_v54  ;;  %v363_v5 = vadd.f32 %v6594_v2, %v3667_v55  ;;  %v1732_v4 = vor.u32 1.1754944e-38, %v1731_v42  ;;  %v1728_v43 = vsel %vm5959_vm14, %v5826_v45, %v1724_v39 }
 0x347   :  { %v2474_v1 = vmul.f32 %v3001_v18, %v1673_v20  ;;  %v5956_v15 = vpop.eup %3002  ;;  %vm1730_vm15 = vcmp.eq.f32.partialorder %v1729_v53, 8.507059e+37  ;;  %v1753_v46 = vmul.f32 %v5921_v35, %v1752_v47  ;;  %v800_v27 = vadd.f32 %v5896_v23, %v4908_v34 }
 0x348   :  { %3006 = vtanh.f32 %v2347_v38  ;;  %v3005_v16 = vpop.eup %3004  ;;  %v1781_v14 = vmul.f32 %v5956_v15, %v5916_v25  ;;  %v476_v3 = vadd.f32 %v6595_v11, %v363_v5  ;;  %v2443_v20 = vmul.f32 %v3140_v61, %v2411_v8  ;;  %v6599_v38 = vld [vmem:[#allocation62_spill] sm:$0xff] }
 0x349   :  { %v2506_v49 = vadd.f32 %v2474_v1, %v2442_v44  ;;  %v5963_v12 = vpop.f32.mrf.mxu1  ;;  %3008 = vrcp.f32 %v5951_v13  ;;  %vm1755_vm1 = vweird.f32 %v5842_v37  ;;  %vm1756_vm2 = vweird.f32 %v5921_v35  ;;  %v3141_v1 = vld [vmem:[%s6326_s1 + $0x88] sm:$0xff] }
 0x34a   :  { %v5965_v0 = vpop.f32.mrf.mxu3  ;;  %3010 = vpow2.f32 %v2715_v51  ;;  %v5984_v45 = vadd.f32 1.0, %v3005_v16  ;;  %v1733_v29 = vsel %vm1730_vm15, %v1732_v4, %v1728_v43  ;;  %v1761_v41 = vand.u32 2147483648, %v5842_v37  ;;  %vm5992_vm3 = vmor %vm1755_vm1, %vm1756_vm2 }
 0x34b   :  { %2538 = vst [vmem:[#allocation7 + $0x78] sm:$0xff] %v2506_v49  ;;  %v1782_v36 = vsub.f32 1.0, %v1781_v14  ;;  %v1754_v23 = vadd.f32 %v5921_v35, %v1753_v46  ;;  %v1759_v7 = vand.u32 2147483647, %v5842_v37  ;;  %v2717_v17 = vmul.f32 -1.442695, %v476_v3 }
 0x34c   :  { %v913_v54 = vadd.f32 %v5898_v24, %v800_v27  ;;  %v2412_v56 = vsub.f32 1.0, %v1733_v29  ;;  %v366_v21 = vadd.f32 %v6598_v6, %v3667_v55  ;;  %v1762_v37 = vor.u32 1.1754944e-38, %v1761_v41  ;;  %v6602_v14 = vld [vmem:[#allocation17_spill] sm:$0xff] }
 0x34d   :  { %v2286_v28 = vpop.f32.mrf.mxu0  ;;  %v1758_v30 = vsel %vm5992_vm3, %v5921_v35, %v1754_v23  ;;  %vm1760_vm4 = vcmp.eq.f32.partialorder %v1759_v7, 8.507059e+37  ;;  %v1783_v22 = vmul.f32 %v5956_v15, %v1782_v36  ;;  %v803_v44 = vadd.f32 %v5932_v60, %v4908_v34 }
 0x34e   :  { %v3007_v19 = vpop.eup %3006  ;;  %v2348_v31 = vadd.f32 %v2286_v28, %v910_v40  ;;  %v479_v9 = vadd.f32 %v6599_v38, %v366_v21  ;;  %vm1785_vm5 = vweird.f32 %v5916_v25  ;;  %vm1786_vm6 = vweird.f32 %v5956_v15  ;;  %v3143_v38 = vld [vmem:[%s6326_s1 + $0x98] sm:$0xff] }
 0x34f   :  { %v2475_v57 = vmul.f32 %v3007_v19, %v1703_v62  ;;  %v5989_v10 = vpop.eup %3008  ;;  %v2444_v62 = vmul.f32 %v3141_v1, %v2412_v56  ;;  %v1763_v47 = vsel %vm1760_vm4, %v1762_v37, %v1758_v30  ;;  %v1791_v49 = vand.u32 2147483648, %v5916_v25  ;;  %vm6025_vm0 = vmor %vm1785_vm5, %vm1786_vm6 }
 0x350   :  { %3012 = vtanh.f32 %v2348_v31  ;;  %v3011_v50 = vpop.eup %3010  ;;  %v1811_v24 = vmul.f32 %v5989_v10, %v5951_v13  ;;  %v1784_v60 = vadd.f32 %v5956_v15, %v1783_v22  ;;  %v1789_v51 = vand.u32 2147483647, %v5916_v25  ;;  %v6603_v31 = vld [vmem:[#allocation30_spill] sm:$0xff] }
 0x351   :  { %v2507_v52 = vadd.f32 %v2475_v57, %v2443_v20  ;;  %v5996_v59 = vpop.f32.mrf.mxu1  ;;  %3014 = vrcp.f32 %v5984_v45  ;;  %v6017_v35 = vadd.f32 1.0, %v3011_v50  ;;  %v2719_v26 = vmul.f32 -1.442695, %v479_v9  ;;  %v3142_v20 = vld [vmem:[%s6326_s1 + $0x90] sm:$0xff] }
 0x352   :  { %v5998_v33 = vpop.f32.mrf.mxu3  ;;  %3016 = vpow2.f32 %v2717_v17  ;;  %v1812_v39 = vsub.f32 1.0, %v1811_v24  ;;  %v916_v8 = vadd.f32 %v5934_v63, %v803_v44  ;;  %v2413_v2 = vsub.f32 1.0, %v1763_v47 }
 0x353   :  { %2539 = vst [vmem:[#allocation7 + $0x80] sm:$0xff] %v2507_v52  ;;  %v369_v43 = vadd.f32 %v6602_v14, %v3667_v55  ;;  %v1792_v25 = vor.u32 1.1754944e-38, %v1791_v49  ;;  %v1788_v63 = vsel %vm6025_vm0, %v5956_v15, %v1784_v60  ;;  %vm1790_vm7 = vcmp.eq.f32.partialorder %v1789_v51, 8.507059e+37 }
 0x354   :  { %v1813_v19 = vmul.f32 %v5989_v10, %v1812_v39  ;;  %v806_v61 = vadd.f32 %v5963_v12, %v4908_v34  ;;  %v2445_v57 = vmul.f32 %v3142_v20, %v2413_v2  ;;  %vm1815_vm8 = vweird.f32 %v5951_v13 }
 0x355   :  { %v2289_v18 = vpop.f32.mrf.mxu0  ;;  %v482_v55 = vadd.f32 %v6603_v31, %v369_v43  ;;  %vm1816_vm9 = vweird.f32 %v5989_v10  ;;  %v1793_v41 = vsel %vm1790_vm7, %v1792_v25, %v1788_v63  ;;  %v1821_v36 = vand.u32 2147483648, %v5951_v13 }
 0x356   :  { %v3013_v48 = vpop.eup %3012  ;;  %v2349_v32 = vadd.f32 %v2289_v18, %v913_v54  ;;  %v1814_v12 = vadd.f32 %v5989_v10, %v1813_v19  ;;  %v1819_v7 = vand.u32 2147483647, %v5951_v13  ;;  %v919_v58 = vadd.f32 %v5965_v0, %v806_v61  ;;  %vm6058_vm10 = vmor %vm1815_vm8, %vm1816_vm9 }
 0x357   :  { %v2476_v42 = vmul.f32 %v3013_v48, %v1733_v29  ;;  %v6022_v40 = vpop.eup %3014  ;;  %v2721_v54 = vmul.f32 -1.442695, %v482_v55  ;;  %v2414_v50 = vsub.f32 1.0, %v1793_v41  ;;  %v1822_v37 = vor.u32 1.1754944e-38, %v1821_v36 }
 0x358   :  { %3018 = vtanh.f32 %v2349_v32  ;;  %v3017_v4 = vpop.eup %3016  ;;  %v1841_v28 = vmul.f32 %v6022_v40, %v5984_v45  ;;  %v1818_v24 = vsel %vm6058_vm10, %v5989_v10, %v1814_v12  ;;  %vm1820_vm11 = vcmp.eq.f32.partialorder %v1819_v7, 8.507059e+37 }
 0x359   :  { %v2508_v53 = vadd.f32 %v2476_v42, %v2444_v62  ;;  %v6029_v5 = vpop.f32.mrf.mxu1  ;;  %3020 = vrcp.f32 %v6017_v35  ;;  %v6050_v29 = vadd.f32 1.0, %v3017_v4  ;;  %v809_v48 = vadd.f32 %v5996_v59, %v4908_v34 }
 0x35a   :  { %v6040_v11 = vpop.f32.mrf.mxu3  ;;  %3022 = vpow2.f32 %v2719_v26  ;;  %v1842_v52 = vsub.f32 1.0, %v1841_v28  ;;  %v2446_v9 = vmul.f32 %v3143_v38, %v2414_v50  ;;  %vm1845_vm12 = vweird.f32 %v5984_v45 }
 0x35b   :  { %2540 = vst [vmem:[#allocation7 + $0x88] sm:$0xff] %v2508_v53  ;;  %vm1846_vm13 = vweird.f32 %v6022_v40  ;;  %v1823_v1 = vsel %vm1820_vm11, %v1822_v37, %v1818_v24  ;;  %v1851_v62 = vand.u32 2147483648, %v5984_v45  ;;  %v1849_v49 = vand.u32 2147483647, %v5984_v45  ;;  %v6606_v53 = vld [vmem:[#allocation20_spill] sm:$0xff] }
 0x35c   :  { %v1843_v30 = vmul.f32 %v6022_v40, %v1842_v52  ;;  %v2723_v60 = vmul.f32 -1.442695, %v6606_v53  ;;  %v922_v51 = vadd.f32 %v5998_v33, %v809_v48  ;;  %vm6089_vm14 = vmor %vm1845_vm12, %vm1846_vm13  ;;  %v812_v63 = vadd.f32 %v6029_v5, %v4908_v34  ;;  %v6611_v52 = vld [vmem:[#allocation21_spill] sm:$0xff] }
 0x35d   :  { %v2292_v46 = vpop.f32.mrf.mxu0  ;;  %v1852_v2 = vor.u32 1.1754944e-38, %v1851_v62  ;;  %vm1850_vm15 = vcmp.eq.f32.partialorder %v1849_v49, 8.507059e+37  ;;  %vm1875_vm1 = vweird.f32 %v6017_v35  ;;  %v1881_v55 = vand.u32 2147483648, %v6017_v35 }
 0x35e   :  { %v3019_v3 = vpop.eup %3018  ;;  %v2350_v27 = vadd.f32 %v2292_v46, %v916_v8  ;;  %v2415_v8 = vsub.f32 1.0, %v1823_v1  ;;  %v3144_v46 = vld [vmem:[%s6326_s1 + $0xa0] sm:$0xff]  ;;  %v1879_v20 = vand.u32 2147483647, %v6017_v35  ;;  %vm1905_vm6 = vweird.f32 %v6050_v29 }
 0x35f   :  { %v2477_v15 = vmul.f32 %v3019_v3, %v1763_v47  ;;  %v6055_v17 = vpop.eup %3020  ;;  %v1844_v47 = vadd.f32 %v6022_v40, %v1843_v30 }
 0x360   :  { %3024 = vtanh.f32 %v2350_v27  ;;  %v3023_v21 = vpop.eup %3022  ;;  %v1871_v13 = vmul.f32 %v6055_v17, %v6017_v35  ;;  %v2447_v19 = vmul.f32 %v3144_v46, %v2415_v8  ;;  %vm1876_vm2 = vweird.f32 %v6055_v17 }
 0x361   :  { %v2509_v23 = vadd.f32 %v2477_v15, %v2445_v57  ;;  %v6062_v6 = vpop.f32.mrf.mxu1  ;;  %3026 = vrcp.f32 %v6050_v29  ;;  %v6080_v44 = vadd.f32 1.0, %v3023_v21  ;;  %v1848_v45 = vsel %vm6089_vm14, %v6022_v40, %v1844_v47  ;;  %vm6119_vm3 = vmor %vm1875_vm1, %vm1876_vm2 }
 0x362   :  { %3028 = vpow2.f32 %v2721_v54  ;;  %v6078_v10 = vpop.f32.mrf.mxu3  ;;  %v1872_v42 = vsub.f32 1.0, %v1871_v13  ;;  %v1853_v31 = vsel %vm1850_vm15, %v1852_v2, %v1848_v45  ;;  %v1882_v54 = vor.u32 1.1754944e-38, %v1881_v55  ;;  %v3145_v13 = vld [vmem:[%s6326_s1 + $0xa8] sm:$0xff] }
 0x363   :  { %2541 = vst [vmem:[#allocation7 + $0x90] sm:$0xff] %v2509_v23  ;;  %v2725_v23 = vmul.f32 -1.442695, %v6611_v52  ;;  %v2416_v12 = vsub.f32 1.0, %v1853_v31  ;;  %vm1880_vm4 = vcmp.eq.f32.partialorder %v1879_v20, 8.507059e+37  ;;  %v815_v37 = vadd.f32 %v6062_v6, %v4908_v34 }
 0x364   :  { %v1873_v33 = vmul.f32 %v6055_v17, %v1872_v42  ;;  %vm1935_vm9 = vweird.f32 %v6080_v44 }
 0x365   :  { %v2295_v0 = vpop.f32.mrf.mxu0  ;;  %v2448_v24 = vmul.f32 %v3145_v13, %v2416_v12  ;;  %v928_v6 = vadd.f32 %v6078_v10, %v815_v37 }
 0x366   :  { %v3025_v18 = vpop.eup %3024  ;;  %v2351_v22 = vadd.f32 %v2295_v0, %v919_v58  ;;  %v1874_v5 = vadd.f32 %v6055_v17, %v1873_v33 }
 0x367   :  { %v2478_v32 = vmul.f32 %v3025_v18, %v1793_v41  ;;  %v6085_v39 = vpop.eup %3026  ;;  %v925_v41 = vadd.f32 %v6040_v11, %v812_v63 }
 0x368   :  { %3030 = vtanh.f32 %v2351_v22  ;;  %v3029_v16 = vpop.eup %3028  ;;  %v1901_v4 = vmul.f32 %v6085_v39, %v6050_v29  ;;  %v1878_v58 = vsel %vm6119_vm3, %v6055_v17, %v1874_v5  ;;  %vm1906_vm5 = vweird.f32 %v6085_v39 }
 0x369   :  { %v2510_v59 = vadd.f32 %v2478_v32, %v2446_v9  ;;  %3032 = vrcp.f32 %v6080_v44  ;;  %v6100_v43 = vpop.f32.mrf.mxu1  ;;  %v6109_v40 = vadd.f32 1.0, %v3029_v16  ;;  %v1883_v17 = vsel %vm1880_vm4, %v1882_v54, %v1878_v58  ;;  %vm6148_vm0 = vmor %vm1905_vm6, %vm1906_vm5 }
 0x36a   :  { %3034 = vpow2.f32 %v2723_v60  ;;  %v1902_v27 = vsub.f32 1.0, %v1901_v4  ;;  %v6114_v57 = vpop.f32.mrf.mxu3  ;;  %v1911_v32 = vand.u32 2147483648, %v6050_v29  ;;  %v2417_v42 = vsub.f32 1.0, %v1883_v17  ;;  %v3146_v4 = vld [vmem:[%s6326_s1 + $0xb0] sm:$0xff] }
 0x36b   :  { %2542 = vst [vmem:[#allocation7 + $0x98] sm:$0xff] %v2510_v59  ;;  %v1909_v59 = vand.u32 2147483647, %v6050_v29  ;;  %v818_v2 = vadd.f32 %v6100_v43, %v4908_v34  ;;  %vm1965_vm13 = vweird.f32 %v6109_v40 }
 0x36c   :  { %v1903_v56 = vmul.f32 %v6085_v39, %v1902_v27  ;;  %v1912_v29 = vor.u32 1.1754944e-38, %v1911_v32  ;;  %v2449_v45 = vmul.f32 %v3146_v4, %v2417_v42 }
 0x36d   :  { %v2298_v14 = vpop.f32.mrf.mxu0  ;;  %vm1910_vm7 = vcmp.eq.f32.partialorder %v1909_v59, 8.507059e+37 }
 0x36e   :  { %v3031_v25 = vpop.eup %3030  ;;  %v2352_v28 = vadd.f32 %v2298_v14, %v922_v51  ;;  %v1904_v38 = vadd.f32 %v6085_v39, %v1903_v56 }
 0x36f   :  { %v2479_v3 = vmul.f32 %v3031_v25, %v1823_v1  ;;  %v6116_v15 = vpop.eup %3032  ;;  %v6612_v1 = vld [vmem:[#allocation22_spill] sm:$0xff] }
 0x370   :  { %3036 = vtanh.f32 %v2352_v28  ;;  %v3035_v7 = vpop.eup %3034  ;;  %v1931_v35 = vmul.f32 %v6116_v15, %v6080_v44  ;;  %v2727_v62 = vmul.f32 -1.442695, %v6612_v1  ;;  %v1908_v60 = vsel %vm6148_vm0, %v6085_v39, %v1904_v38 }
 0x371   :  { %v2511_v61 = vadd.f32 %v2479_v3, %v2447_v19  ;;  %3038 = vrcp.f32 %v6109_v40  ;;  %v820_v30 = vpop.f32.mrf.mxu1  ;;  %v6136_v18 = vadd.f32 1.0, %v3035_v7  ;;  %v1913_v39 = vsel %vm1910_vm7, %v1912_v29, %v1908_v60 }
 0x372   :  { %3040 = vpow2.f32 %v2725_v23  ;;  %v1932_v22 = vsub.f32 1.0, %v1931_v35  ;;  %v933_v47 = vpop.f32.mrf.mxu3  ;;  %vm1936_vm8 = vweird.f32 %v6116_v15  ;;  %v931_v19 = vadd.f32 %v6114_v57, %v818_v2  ;;  %v3147_v35 = vld [vmem:[%s6326_s1 + $0xb8] sm:$0xff] }
 0x373   :  { %2543 = vst [vmem:[#allocation7 + $0xa0] sm:$0xff] %v2511_v61  ;;  %v1941_v3 = vand.u32 2147483648, %v6080_v44  ;;  %v2418_v27 = vsub.f32 1.0, %v1913_v39  ;;  %v1939_v61 = vand.u32 2147483647, %v6080_v44  ;;  %vm6175_vm10 = vmor %vm1935_vm9, %vm1936_vm8  ;;  %v821_v54 = vadd.f32 %v820_v30, %v4908_v34  ;;  %v6618_v30 = vld [vmem:[#allocation24_spill] sm:$0xff] }
 0x374   :  { %v1933_v26 = vmul.f32 %v6116_v15, %v1932_v22  ;;  %vm1995_vm2 = vweird.f32 %v6136_v18 }
 0x375   :  { %v2301_v11 = vpop.f32.mrf.mxu0  ;;  %v1942_v44 = vor.u32 1.1754944e-38, %v1941_v3  ;;  %v2450_v58 = vmul.f32 %v3147_v35, %v2418_v27  ;;  %vm1940_vm11 = vcmp.eq.f32.partialorder %v1939_v61, 8.507059e+37 }
 0x376   :  { %v3037_v50 = vpop.eup %3036  ;;  %v2353_v21 = vadd.f32 %v2301_v11, %v925_v41  ;;  %v1934_v63 = vadd.f32 %v6116_v15, %v1933_v26 }
 0x377   :  { %v2480_v0 = vmul.f32 %v3037_v50, %v1853_v31  ;;  %v6140_v9 = vpop.eup %3038  ;;  %v6615_v31 = vld [vmem:[#allocation23_spill] sm:$0xff] }
 0x378   :  { %3042 = vtanh.f32 %v2353_v21  ;;  %v3041_v53 = vpop.eup %3040  ;;  %v1961_v10 = vmul.f32 %v6140_v9, %v6109_v40  ;;  %v2729_v55 = vmul.f32 -1.442695, %v6615_v31  ;;  %v1938_v41 = vsel %vm6175_vm10, %v6116_v15, %v1934_v63 }
 0x379   :  { %v2512_v48 = vadd.f32 %v2480_v0, %v2448_v24  ;;  %3044 = vrcp.f32 %v6136_v18  ;;  %v6163_v33 = vadd.f32 1.0, %v3041_v53  ;;  %v823_v46 = vpop.f32.mrf.mxu1  ;;  %v1943_v15 = vsel %vm1940_vm11, %v1942_v44, %v1938_v41  ;;  %v3149_v41 = vld [vmem:[%s6326_s1 + $0xc8] sm:$0xff] }
 0x37a   :  { %3046 = vpow2.f32 %v2727_v62  ;;  %v1962_v25 = vsub.f32 1.0, %v1961_v10  ;;  %v936_v23 = vpop.f32.mrf.mxu3  ;;  %vm1966_vm12 = vweird.f32 %v6140_v9  ;;  %v934_v24 = vadd.f32 %v933_v47, %v821_v54  ;;  %v3148_v10 = vld [vmem:[%s6326_s1 + $0xc0] sm:$0xff] }
 0x37b   :  { %2544 = vst [vmem:[#allocation7 + $0xa8] sm:$0xff] %v2512_v48  ;;  %v1971_v0 = vand.u32 2147483648, %v6109_v40  ;;  %v2419_v22 = vsub.f32 1.0, %v1943_v15  ;;  %v1969_v48 = vand.u32 2147483647, %v6109_v40  ;;  %vm6200_vm14 = vmor %vm1965_vm13, %vm1966_vm12  ;;  %v824_v53 = vadd.f32 %v823_v46, %v4908_v34 }
 0x37c   :  { %v1963_v52 = vmul.f32 %v6140_v9, %v1962_v25  ;;  %v1999_v63 = vand.u32 2147483647, %v6136_v18  ;;  %vm2025_vm6 = vweird.f32 %v6163_v33 }
 0x37d   :  { %v2304_v51 = vpop.f32.mrf.mxu0  ;;  %v1972_v40 = vor.u32 1.1754944e-38, %v1971_v0  ;;  %v2451_v60 = vmul.f32 %v3148_v10, %v2419_v22  ;;  %vm1970_vm15 = vcmp.eq.f32.partialorder %v1969_v48, 8.507059e+37 }
 0x37e   :  { %v3043_v8 = vpop.eup %3042  ;;  %v2354_v16 = vadd.f32 %v2304_v51, %v928_v6  ;;  %v1964_v37 = vadd.f32 %v6140_v9, %v1963_v52  ;;  %vm2000_vm4 = vcmp.eq.f32.partialorder %v1999_v63, 8.507059e+37  ;;  %v3150_v6 = vld [vmem:[%s6326_s1 + $0xd0] sm:$0xff] }
 0x37f   :  { %v2481_v14 = vmul.f32 %v3043_v8, %v1883_v17  ;;  %v6167_v43 = vpop.eup %3044  ;;  %v2731_v17 = vmul.f32 -1.442695, %v6618_v30 }
 0x380   :  { %3048 = vtanh.f32 %v2354_v16  ;;  %v3047_v20 = vpop.eup %3046  ;;  %v1991_v57 = vmul.f32 %v6167_v43, %v6136_v18  ;;  %v1968_v62 = vsel %vm6200_vm14, %v6140_v9, %v1964_v37  ;;  %vm1996_vm1 = vweird.f32 %v6167_v43 }
 0x381   :  { %v2513_v28 = vadd.f32 %v2481_v14, %v2449_v45  ;;  %3050 = vrcp.f32 %v6163_v33  ;;  %v6189_v56 = vadd.f32 1.0, %v3047_v20  ;;  %v826_v38 = vpop.f32.mrf.mxu1  ;;  %v1973_v9 = vsel %vm1970_vm15, %v1972_v40, %v1968_v62  ;;  %vm6225_vm3 = vmor %vm1995_vm2, %vm1996_vm1 }
 0x382   :  { %3052 = vpow2.f32 %v2729_v55  ;;  %v1992_v50 = vsub.f32 1.0, %v1991_v57  ;;  %v939_v26 = vpop.f32.mrf.mxu3  ;;  %v937_v45 = vadd.f32 %v936_v23, %v824_v53  ;;  %v2001_v14 = vand.u32 2147483648, %v6136_v18 }
 0x383   :  { %2545 = vst [vmem:[#allocation7 + $0xb0] sm:$0xff] %v2513_v28  ;;  %v2420_v28 = vsub.f32 1.0, %v1973_v9  ;;  %v827_v57 = vadd.f32 %v826_v38, %v4908_v34  ;;  %v2061_v10 = vand.u32 2147483648, %v6189_v56  ;;  %vm2055_vm9 = vweird.f32 %v6189_v56 }
 0x384   :  { %v1993_v59 = vmul.f32 %v6167_v43, %v1992_v50  ;;  %v2002_v18 = vor.u32 1.1754944e-38, %v2001_v14  ;;  %v2029_v50 = vand.u32 2147483647, %v6163_v33 }
 0x385   :  { %v2307_v36 = vpop.f32.mrf.mxu0  ;;  %v2062_v14 = vor.u32 1.1754944e-38, %v2061_v10 }
 0x386   :  { %v3049_v12 = vpop.eup %3048  ;;  %v2355_v7 = vadd.f32 %v2307_v36, %v931_v19  ;;  %v1994_v2 = vadd.f32 %v6167_v43, %v1993_v59  ;;  %v2452_v36 = vmul.f32 %v3149_v41, %v2420_v28  ;;  %vm2030_vm7 = vcmp.eq.f32.partialorder %v2029_v50, 8.507059e+37 }
 0x387   :  { %v2482_v11 = vmul.f32 %v3049_v12, %v1913_v39  ;;  %v6193_v13 = vpop.eup %3050  ;;  %v6621_v39 = vld [vmem:[#allocation25_spill] sm:$0xff] }
 0x388   :  { %3054 = vtanh.f32 %v2355_v7  ;;  %v3053_v32 = vpop.eup %3052  ;;  %v2021_v1 = vmul.f32 %v6193_v13, %v6163_v33  ;;  %v2733_v25 = vmul.f32 -1.442695, %v6621_v39  ;;  %v1998_v31 = vsel %vm6225_vm3, %v6167_v43, %v1994_v2 }
 0x389   :  { %v2514_v21 = vadd.f32 %v2482_v11, %v2450_v58  ;;  %3056 = vrcp.f32 %v6189_v56  ;;  %v6214_v8 = vadd.f32 1.0, %v3053_v32  ;;  %v829_v61 = vpop.f32.mrf.mxu1  ;;  %v2003_v43 = vsel %vm2000_vm4, %v2002_v18, %v1998_v31 }
 0x38a   :  { %3058 = vpow2.f32 %v2731_v17  ;;  %v2022_v29 = vsub.f32 1.0, %v2021_v1  ;;  %vm2026_vm5 = vweird.f32 %v6193_v13  ;;  %v942_v54 = vpop.f32.mrf.mxu3  ;;  %v940_v58 = vadd.f32 %v939_v26, %v827_v57 }
 0x38b   :  { %2546 = vst [vmem:[#allocation7 + $0xb8] sm:$0xff] %v2514_v21  ;;  %v2031_v11 = vand.u32 2147483648, %v6163_v33  ;;  %vm6249_vm0 = vmor %vm2025_vm6, %vm2026_vm5  ;;  %v830_v38 = vadd.f32 %v829_v61, %v4908_v34  ;;  %v2091_v61 = vand.u32 2147483648, %v6214_v8  ;;  %vm2085_vm13 = vweird.f32 %v6214_v8 }
 0x38c   :  { %v2023_v27 = vmul.f32 %v6193_v13, %v2022_v29  ;;  %v2089_v18 = vand.u32 2147483647, %v6214_v8 }
 0x38d   :  { %v2310_v42 = vpop.f32.mrf.mxu0  ;;  %v2032_v48 = vor.u32 1.1754944e-38, %v2031_v11  ;;  %v943_v53 = vadd.f32 %v942_v54, %v830_v38  ;;  %v3152_v54 = vld [vmem:[%s6326_s1 + $0xe0] sm:$0xff] }
 0x38e   :  { %v3055_v47 = vpop.eup %3054  ;;  %v2356_v49 = vadd.f32 %v2310_v42, %v934_v24  ;;  %v2024_v7 = vadd.f32 %v6193_v13, %v2023_v27  ;;  %vm2090_vm15 = vcmp.eq.f32.partialorder %v2089_v18, 8.507059e+37 }
 0x38f   :  { %v2483_v51 = vmul.f32 %v3055_v47, %v1943_v15  ;;  %v6218_v4 = vpop.eup %3056  ;;  %v2421_v15 = vsub.f32 1.0, %v2003_v43 }
 0x390   :  { %3060 = vtanh.f32 %v2356_v49  ;;  %v3059_v19 = vpop.eup %3058  ;;  %v2051_v3 = vmul.f32 %v6218_v4, %v6189_v56  ;;  %v2028_v0 = vsel %vm6249_vm0, %v6193_v13, %v2024_v7  ;;  %vm2056_vm8 = vweird.f32 %v6218_v4 }
 0x391   :  { %v2515_v16 = vadd.f32 %v2483_v51, %v2451_v60  ;;  %3062 = vrcp.f32 %v6214_v8  ;;  %v6239_v23 = vadd.f32 1.0, %v3059_v19  ;;  %v2453_v32 = vmul.f32 %v3150_v6, %v2421_v15  ;;  %v832_v62 = vpop.f32.mrf.mxu1  ;;  %vm2057_vm10 = vmor %vm2055_vm9, %vm2056_vm8 }
 0x392   :  { %3064 = vpow2.f32 %v2733_v25  ;;  %v2052_v12 = vsub.f32 1.0, %v2051_v3  ;;  %v2033_v59 = vsel %vm2030_vm7, %v2032_v48, %v2028_v0  ;;  %v2059_v51 = vand.u32 2147483647, %v6189_v56  ;;  %v945_v26 = vpop.f32.mrf.mxu3  ;;  %v3151_v56 = vld [vmem:[%s6326_s1 + $0xd8] sm:$0xff] }
 0x393   :  { %2547 = vst [vmem:[#allocation7 + $0xc0] sm:$0xff] %v2515_v16  ;;  %v2422_v60 = vsub.f32 1.0, %v2033_v59  ;;  %v833_v25 = vadd.f32 %v832_v62, %v4908_v34  ;;  %vm2115_vm2 = vweird.f32 %v6239_v23  ;;  %v2119_v0 = vand.u32 2147483647, %v6239_v23 }
 0x394   :  { %v2053_v17 = vmul.f32 %v6218_v4, %v2052_v12  ;;  %vm2060_vm11 = vcmp.eq.f32.partialorder %v2059_v51, 8.507059e+37  ;;  %v2092_v12 = vor.u32 1.1754944e-38, %v2091_v61 }
 0x395   :  { %v2313_v55 = vpop.f32.mrf.mxu0  ;;  %v2454_v28 = vmul.f32 %v3151_v56, %v2422_v60  ;;  %v946_v27 = vadd.f32 %v945_v26, %v833_v25  ;;  %vm2120_vm4 = vcmp.eq.f32.partialorder %v2119_v0, 8.507059e+37  ;;  %v3155_v56 = vld [vmem:[%s6326_s1 + $0xf8] sm:$0xff] }
 0x396   :  { %v3061_v5 = vpop.eup %3060  ;;  %v2357_v20 = vadd.f32 %v2313_v55, %v937_v45  ;;  %v2054_v40 = vadd.f32 %v6218_v4, %v2053_v17 }
 0x397   :  { %v2484_v52 = vmul.f32 %v3061_v5, %v1973_v9  ;;  %v6243_v35 = vpop.eup %3062 }
 0x398   :  { %3066 = vtanh.f32 %v2357_v20  ;;  %v3065_v37 = vpop.eup %3064  ;;  %v2081_v24 = vmul.f32 %v6243_v35, %v6214_v8  ;;  %v2058_v29 = vsel %vm2057_vm10, %v6218_v4, %v2054_v40  ;;  %vm2086_vm12 = vweird.f32 %v6243_v35 }
 0x399   :  { %v2516_v44 = vadd.f32 %v2484_v52, %v2452_v36  ;;  %3068 = vrcp.f32 %v6239_v23  ;;  %v6263_v42 = vadd.f32 1.0, %v3065_v37  ;;  %v2063_v46 = vsel %vm2060_vm11, %v2062_v14, %v2058_v29  ;;  %v835_v31 = vpop.f32.mrf.mxu1  ;;  %vm2087_vm14 = vmor %vm2085_vm13, %vm2086_vm12 }
 0x39a   :  { %v2082_v13 = vsub.f32 1.0, %v2081_v24  ;;  %v2423_v5 = vsub.f32 1.0, %v2063_v46  ;;  %v948_v36 = vpop.f32.mrf.mxu3  ;;  %v836_v7 = vadd.f32 %v835_v31, %v4908_v34  ;;  %v2121_v37 = vand.u32 2147483648, %v6239_v23 }
 0x39b   :  { %2548 = vst [vmem:[#allocation7 + $0xc8] sm:$0xff] %v2516_v44  ;;  %vm2145_vm6 = vweird.f32 %v6263_v42  ;;  %v2149_v10 = vand.u32 2147483647, %v6263_v42 }
 0x39c   :  { %v2083_v2 = vmul.f32 %v6243_v35, %v2082_v13  ;;  %v2455_v8 = vmul.f32 %v3152_v54, %v2423_v5  ;;  %v949_v21 = vadd.f32 %v948_v36, %v836_v7  ;;  %v2122_v38 = vor.u32 1.1754944e-38, %v2121_v37 }
 0x39d   :  { %v2316_v30 = vpop.f32.mrf.mxu0  ;;  %vm2150_vm7 = vcmp.eq.f32.partialorder %v2149_v10, 8.507059e+37 }
 0x39e   :  { %v3067_v22 = vpop.eup %3066  ;;  %v2358_v33 = vadd.f32 %v2316_v30, %v940_v58  ;;  %v2084_v4 = vadd.f32 %v6243_v35, %v2083_v2 }
 0x39f   :  { %v2485_v1 = vmul.f32 %v3067_v22, %v2003_v43  ;;  %v6267_v49 = vpop.eup %3068 }
 0x3a0   :  { %3070 = vtanh.f32 %v2358_v33  ;;  %v2111_v9 = vmul.f32 %v6267_v49, %v6239_v23  ;;  %v2088_v57 = vsel %vm2087_vm14, %v6243_v35, %v2084_v4  ;;  %vm2116_vm1 = vweird.f32 %v6267_v49 }
 0x3a1   :  { %v2517_v47 = vadd.f32 %v2485_v1, %v2453_v32  ;;  %3072 = vrcp.f32 %v6263_v42  ;;  %v2093_v11 = vsel %vm2090_vm15, %v2092_v12, %v2088_v57  ;;  %v838_v30 = vpop.f32.mrf.mxu1  ;;  %vm2117_vm3 = vmor %vm2115_vm2, %vm2116_vm1  ;;  %v3153_v1 = vld [vmem:[%s6326_s1 + $0xe8] sm:$0xff] }
 0x3a2   :  { %v2112_v19 = vsub.f32 1.0, %v2111_v9  ;;  %v2424_v24 = vsub.f32 1.0, %v2093_v11  ;;  %v839_v32 = vadd.f32 %v838_v30, %v4908_v34  ;;  %v951_v23 = vpop.f32.mrf.mxu3 }
 0x3a3   :  { %2549 = vst [vmem:[#allocation7 + $0xd0] sm:$0xff] %v2517_v47 }
 0x3a4   :  { %v2113_v52 = vmul.f32 %v6267_v49, %v2112_v19  ;;  %v2456_v62 = vmul.f32 %v3153_v1, %v2424_v24 }
 0x3a5   :  { %v2319_v16 = vpop.f32.mrf.mxu0 }
 0x3a6   :  { %v3071_v45 = vpop.eup %3070  ;;  %v2359_v39 = vadd.f32 %v2319_v16, %v943_v53  ;;  %v2114_v50 = vadd.f32 %v6267_v49, %v2113_v52  ;;  %v2151_v53 = vand.u32 2147483648, %v6263_v42  ;;  %v3154_v16 = vld [vmem:[%s6326_s1 + $0xf0] sm:$0xff] }
 0x3a7   :  { %v2486_v63 = vmul.f32 %v3071_v45, %v2033_v59  ;;  %v6283_v55 = vpop.eup %3072 }
 0x3a8   :  { %3074 = vtanh.f32 %v2359_v39  ;;  %v2141_v20 = vmul.f32 %v6283_v55, %v6263_v42  ;;  %v2118_v17 = vsel %vm2117_vm3, %v6267_v49, %v2114_v50  ;;  %vm2146_vm5 = vweird.f32 %v6283_v55 }
 0x3a9   :  { %v2518_v3 = vadd.f32 %v2486_v63, %v2454_v28  ;;  %v2123_v13 = vsel %vm2120_vm4, %v2122_v38, %v2118_v17  ;;  %v952_v49 = vadd.f32 %v951_v23, %v839_v32  ;;  %vm2147_vm0 = vmor %vm2145_vm6, %vm2146_vm5  ;;  %v2152_v9 = vor.u32 1.1754944e-38, %v2151_v53 }
 0x3aa   :  { %v2142_v15 = vsub.f32 1.0, %v2141_v20  ;;  %v2425_v34 = vsub.f32 1.0, %v2123_v13 }
 0x3ab   :  { %2550 = vst [vmem:[#allocation7 + $0xd8] sm:$0xff] %v2518_v3 }
 0x3ac   :  { %v2143_v48 = vmul.f32 %v6283_v55, %v2142_v15  ;;  %v2457_v2 = vmul.f32 %v3154_v16, %v2425_v34 }
 0x3ad   :  { %v2322_v41 = vpop.f32.mrf.mxu0 }
 0x3ae   :  { %v3075_v43 = vpop.eup %3074  ;;  %v2360_v44 = vadd.f32 %v2322_v41, %v946_v27  ;;  %v2144_v40 = vadd.f32 %v6283_v55, %v2143_v48 }
 0x3af   :  { %v2487_v58 = vmul.f32 %v3075_v43, %v2063_v46 }
 0x3b0   :  { %3076 = vtanh.f32 %v2360_v44  ;;  %v2148_v60 = vsel %vm2147_vm0, %v6283_v55, %v2144_v40 }
 0x3b1   :  { %v2519_v35 = vadd.f32 %v2487_v58, %v2455_v8  ;;  %v2153_v14 = vsel %vm2150_vm7, %v2152_v9, %v2148_v60 }
 0x3b2   :  { %v2426_v25 = vsub.f32 1.0, %v2153_v14 }
 0x3b3   :  { %2551 = vst [vmem:[#allocation7 + $0xe0] sm:$0xff] %v2519_v35 }
 0x3b4   :  { %v2458_v28 = vmul.f32 %v3155_v56, %v2426_v25 }
 0x3b5   :  { %v2325_v22 = vpop.f32.mrf.mxu0 }
 0x3b6   :  { %v3077_v33 = vpop.eup %3076  ;;  %v2361_v6 = vadd.f32 %v2325_v22, %v949_v21 }
 0x3b7   :  { %v2488_v59 = vmul.f32 %v3077_v33, %v2093_v11 }
 0x3b8   :  { %3078 = vtanh.f32 %v2361_v6 }
 0x3b9   :  { %v2520_v47 = vadd.f32 %v2488_v59, %v2456_v62 }
 0x3bb   :  { %2552 = vst [vmem:[#allocation7 + $0xe8] sm:$0xff] %v2520_v47 }
 0x3bd   :  { %v2328_v51 = vpop.f32.mrf.mxu0 }
 0x3be   :  { %v3079_v26 = vpop.eup %3078  ;;  %v2362_v29 = vadd.f32 %v2328_v51, %v952_v49 }
 0x3bf   :  { %v2489_v45 = vmul.f32 %v3079_v26, %v2123_v13 }
 0x3c0   :  { %3080 = vtanh.f32 %v2362_v29 }
 0x3c1   :  { %v2521_v39 = vadd.f32 %v2489_v45, %v2457_v2 }
 0x3c3   :  { %2553 = vst [vmem:[#allocation7 + $0xf0] sm:$0xff] %v2521_v39 }
 0x3c6   :  { %v3081_v42 = vpop.eup %3080 }
 0x3c7   :  { %v2490_v63 = vmul.f32 %v3081_v42, %v2153_v14 }
 0x3c9   :  { %v2522_v46 = vadd.f32 %v2490_v63, %v2458_v28 }
 0x3cb   :  { %2554 = vst [vmem:[#allocation7 + $0xf8] sm:$0xff] %v2522_v46 }
 0x3cc   :  { %2567 = dma.vmem_to_hbm [thread:$0]  %s2560_s25, 4096, %s2562_s28, [#allocation4], %s3238_s30, %s3238_s30, %s3239_s6  }
 0x3cd   :  { %3232 = dma.done.wait [#allocation4], 4096  }
 0x3ce   :  { %3233 = vsyncadd [#allocation4], 4294963200 }
 0x3cf   :  { %2572 = vsyncpa [#allocation3], 1 }
 0x3d0   :  { %2573 = vsyncpa [#allocation6], 1 }
 0x3d1   :  { %2574 = vsyncpa [#allocation4], 1 }

</bundles_post_ra>
